<compile_context>
chip_gen: v5e
topology: v5e:2x2
jax: 0.10.0
libtpu: 0.0.40
codegen_flags: <defaults>
</compile_context>

<pallas_src>
import numpy as np
import jax
import jax.numpy as jnp
from jax.experimental import pallas as pl
from jax.experimental.pallas import tpu as pltpu


# ---------------------------------------------------------------------------
# Fused kernel: one grid step == one Cout tile of conv1 (+ its fc partial)
# ---------------------------------------------------------------------------
def _inception_aux_kernel(x_ref, pool_ref, w0_ref, s0_ref, b0_ref,
                          w1_ref, s1_ref, b1_ref, wfc_ref, o_ref):
    """
    x_ref:    (N, H*W, Cin)   channels-last input (resident across the grid)
    pool_ref: (P, H*W)        constant 0/1 pooling-window matrix (resident)
    w0_ref:   (Cin, C0)       1x1 conv0 weights (resident)
    s0_ref:   (1, C0)         folded BN0 scale (already includes the 1/25 avg-pool)
    b0_ref:   (1, C0)         folded BN0 bias
    w1_ref:   (P*C0, T)       bf16 conv1 weight tile (streamed across the grid)
    s1_ref:   (1, T)          folded BN1 scale tile
    b1_ref:   (1, T)          folded BN1 bias tile
    wfc_ref:  (T, NC_pad)     fc weight rows for this tile (lane-padded to 128)
    o_ref:    (1, N, NC_pad)  per-tile fc partial (reduced in a tiny epilogue)
    """
    n_batch = x_ref.shape[0]
    p_pos = pool_ref.shape[0]
    c0 = w0_ref.shape[1]

    # ---- stage 1: conv0(1x1) then avg-pool(5,3) (the two commute), BN + ReLU.
    # Recomputed per tile (~0.3 MFLOP) so the grid axis stays megacore-'parallel'.
    rows = []
    for n in range(n_batch):                         # static Python loop, tiny N
        t = jnp.dot(x_ref[n], w0_ref[...],
                    preferred_element_type=jnp.float32)          # (H*W, C0)
        pooled = jnp.dot(pool_ref[...], t,
                         preferred_element_type=jnp.float32)     # (P, C0)
        y0 = jnp.maximum(pooled * s0_ref[...] + b0_ref[...], 0.0)
        rows.append(y0.reshape(1, p_pos * c0))       # im2col row: (spatial, channel)
    x0 = jnp.concatenate(rows, axis=0).astype(jnp.bfloat16)      # (N, P*C0)

    # ---- stage 2: conv1 (5x5 'valid' on the 5x5 pooled map) == one im2col matmul
    # over K = P*C0 for this Cout tile.  bf16 operands, f32 accumulation. BN+ReLU.
    y1 = jnp.dot(x0, w1_ref[...], preferred_element_type=jnp.float32)   # (N, T)
    y1 = jnp.maximum(y1 * s1_ref[...] + b1_ref[...], 0.0)

    # ---- stage 3: fc partial for this tile; 128-lane padded output -> dense vst.
    o_ref[0] = jnp.dot(y1, wfc_ref[...], preferred_element_type=jnp.float32)


# ---------------------------------------------------------------------------
# One-time host-side parameter preparation (weights only)
# ---------------------------------------------------------------------------
def _fold_bn(gamma, beta, mean, var, eps):
    scale = (gamma / jnp.sqrt(var + eps)).astype(jnp.float32)
    bias = (beta - mean * scale).astype(jnp.float32)
    return scale.reshape(1, -1), bias.reshape(1, -1)


def _pool_matrix(h, w, k, s):
    """0/1 matrix (P, h*w): row p sums the k x k window (stride s) at position p."""
    ph = (h - k) // s + 1
    pw = (w - k) // s + 1
    m = np.zeros((ph * pw, h * w), np.float32)
    for i in range(ph):
        for j in range(pw):
            for r in range(k):
                for c in range(k):
                    m[i * pw + j, (s * i + r) * w + (s * j + c)] = 1.0
    return jnp.asarray(m), ph, pw


def prepare_params(params, *, eps=1e-3):
    """BN folding, weight relayout and bf16 cast — run ONCE, not per forward."""
    w0, g0, b0, m0, v0 = params["conv0"]
    w1, g1, b1, m1, v1 = params["conv1"]
    wfc, bfc = params["fc"]

    C0, Cin = w0.shape[0], w0.shape[1]
    C1, C1_in, KH, KW = w1.shape
    NC = wfc.shape[0]
    assert C1_in == C0

    w0_mat = jnp.transpose(w0.reshape(C0, Cin), (1, 0)).astype(jnp.float32)   # (Cin, C0)
    s0, bb0 = _fold_bn(g0, b0, m0, v0, eps)
    s0 = s0 * (1.0 / 25.0)            # fold the avg-pool normalization into BN0 scale

    # (o,c,kh,kw) -> (kh,kw,c,o) -> (KH*KW*C0, C1); K order = (spatial, channel),
    # matching the in-kernel flatten.  Streamed as bf16 (f32 accumulation inside).
    w1_mat = jnp.transpose(w1, (2, 3, 1, 0)).reshape(KH * KW * C0, C1).astype(jnp.bfloat16)
    s1, bb1 = _fold_bn(g1, b1, m1, v1, eps)

    nc_pad = max(128, ((NC + 127) // 128) * 128)     # lane-dense fc output
    wfc_mat = jnp.zeros((C1, nc_pad), jnp.float32).at[:, :NC].set(
        jnp.transpose(wfc, (1, 0)).astype(jnp.float32))
    bfc_row = bfc.reshape(1, NC).astype(jnp.float32)

    return dict(w0=w0_mat, s0=s0, b0=bb0, w1=w1_mat, s1=s1, b1=bb1,
                wfc=wfc_mat, bfc=bfc_row,
                meta=(Cin, C0, C1, KH, KW, NC, nc_pad))


# ---------------------------------------------------------------------------
# Forward
# ---------------------------------------------------------------------------
def inception_aux_forward(x_nchw, prep, *, tile=384):
    Cin, C0, C1, KH, KW, NC, nc_pad = prep["meta"]
    N, Cin_x, H, W = x_nchw.shape
    assert Cin_x == Cin

    pool_mat, PH, PW = _pool_matrix(H, W, 5, 3)
    P = PH * PW
    assert (PH, PW) == (KH, KW), "conv1 must reduce the pooled map to 1x1 for fc(768)"

    assert C1 % tile == 0
    n_tiles = C1 // tile
    K = P * C0

    # NCHW -> (N, H*W, Cin): tiny one-time layout glue so all in-kernel matmuls
    # are channels-last / lane-dense (no activation transposes inside the kernel).
    x_hwc = jnp.transpose(x_nchw, (0, 2, 3, 1)).reshape(N, H * W, Cin).astype(jnp.float32)

    partials = pl.pallas_call(
        _inception_aux_kernel,
        out_shape=jax.ShapeDtypeStruct((n_tiles, N, nc_pad), jnp.float32),
        grid_spec=pltpu.PrefetchScalarGridSpec(
            num_scalar_prefetch=0,
            grid=(n_tiles,),
            in_specs=[
                pl.BlockSpec((N, H * W, Cin), lambda j: (0, 0, 0)),   # resident
                pl.BlockSpec((P, H * W), lambda j: (0, 0)),           # resident
                pl.BlockSpec((Cin, C0), lambda j: (0, 0)),            # resident
                pl.BlockSpec((1, C0), lambda j: (0, 0)),
                pl.BlockSpec((1, C0), lambda j: (0, 0)),
                pl.BlockSpec((K, tile), lambda j: (0, j)),            # streamed bf16 weights
                pl.BlockSpec((1, tile), lambda j: (0, j)),
                pl.BlockSpec((1, tile), lambda j: (0, j)),
                pl.BlockSpec((tile, nc_pad), lambda j: (j, 0)),       # streamed fc rows
            ],
            out_specs=pl.BlockSpec((1, N, nc_pad), lambda j: (j, 0, 0)),
        ),
        compiler_params=pltpu.CompilerParams(
            dimension_semantics=("parallel",),     # v7x: one 384-wide tile per TensorCore
            vmem_limit_bytes=32 * 1024 * 1024,
        ),
    )(x_hwc, pool_mat, prep["w0"], prep["s0"], prep["b0"],
      prep["w1"], prep["s1"], prep["b1"], prep["wfc"])

    # Tiny epilogue: reduce per-tile fc partials, drop lane padding, add fc bias.
    return partials.sum(axis=0)[:, :NC] + prep["bfc"]


# ---------------------------------------------------------------------------
# Pure-JAX reference (mirrors the PyTorch module in eval mode)
# ---------------------------------------------------------------------------
def _reference(x, params, *, eps=1e-3):
    w0, g0, b0, m0, v0 = params["conv0"]
    w1, g1, b1, m1, v1 = params["conv1"]
    wfc, bfc = params["fc"]

    def conv_bn_relu(y, w, g, b, m, v):
        y = jax.lax.conv_general_dilated(
            y, w, window_strides=(1, 1), padding="VALID",
            dimension_numbers=("NCHW", "OIHW", "NCHW"),
            precision=jax.lax.Precision.HIGHEST)
        s = g / jnp.sqrt(v + eps)
        bb = b - m * s
        return jnp.maximum(y * s[None, :, None, None] + bb[None, :, None, None], 0.0)

    p = jax.lax.reduce_window(x, 0.0, jax.lax.add,
                              window_dimensions=(1, 1, 5, 5),
                              window_strides=(1, 1, 3, 3),
                              padding="VALID") / 25.0
    y = conv_bn_relu(p, w0, g0, b0, m0, v0)
    y = conv_bn_relu(y, w1, g1, b1, m1, v1)
    y = y.reshape(y.shape[0], -1)
    return jnp.dot(y, wfc.T, precision=jax.lax.Precision.HIGHEST) + bfc


if __name__ == "__main__":
    # Shapes consistent with InceptionAux: 17x17 input so avg_pool(5,3) -> 5x5
    # and conv1(5x5, valid) -> 1x1, as required by the flatten + fc(768).
    N, Cin, H, W = 2, 16, 17, 17
    NUM_CLASSES = 10
    C0, C1, K1 = 128, 768, 5

    key = jax.random.PRNGKey(0)
    ks = jax.random.split(key, 13)
    f32 = jnp.float32

    x = jax.random.normal(ks[0], (N, Cin, H, W), f32)
    params = {
        "conv0": (
            0.2 * jax.random.normal(ks[1], (C0, Cin, 1, 1), f32),
            1.0 + 0.1 * jax.random.normal(ks[2], (C0,), f32),
            0.1 * jax.random.normal(ks[3], (C0,), f32),
            0.05 * jax.random.normal(ks[4], (C0,), f32),
            jnp.abs(1.0 + 0.1 * jax.random.normal(ks[5], (C0,), f32)),
        ),
        "conv1": (
            0.02 * jax.random.normal(ks[6], (C1, C0, K1, K1), f32),
            1.0 + 0.1 * jax.random.normal(ks[7], (C1,), f32),
            0.1 * jax.random.normal(ks[8], (C1,), f32),
            0.05 * jax.random.normal(ks[9], (C1,), f32),
            jnp.abs(1.0 + 0.1 * jax.random.normal(ks[10], (C1,), f32)),
        ),
        "fc": (
            0.05 * jax.random.normal(ks[11], (NUM_CLASSES, C1), f32),
            0.01 * jax.random.normal(ks[12], (NUM_CLASSES,), f32),
        ),
    }

    prep = prepare_params(params, eps=1e-3)          # one-time weight prep
    out = inception_aux_forward(x, prep)
    out = jax.block_until_ready(out)

    ref = _reference(x, params, eps=1e-3)
    assert out.shape == (N, NUM_CLASSES)
    # Tolerance documents the bf16 conv1-weight streaming (f32 accumulation);
    # observed error is ~1e-3 on this distribution, 3e-2 leaves margin for MXU
    # pass-count differences vs. the XLA reference conv path.
    err = float(jnp.max(jnp.abs(out - ref)))
    assert jnp.allclose(out, ref, atol=3e-2, rtol=3e-2), err

    print("KERNEL_OK")
</pallas_src>

<mosaic_0001>
module attributes {stable_mosaic.version = 11 : i64} {
  func.func @_inception_aux_kernel(%arg0: i32, %arg1: memref<2x289x16xf32, #tpu.memory_space<vmem>>, %arg2: memref<25x289xf32, #tpu.memory_space<vmem>>, %arg3: memref<16x128xf32, #tpu.memory_space<vmem>>, %arg4: memref<1x128xf32, #tpu.memory_space<vmem>>, %arg5: memref<1x128xf32, #tpu.memory_space<vmem>>, %arg6: memref<3200x384xbf16, #tpu.memory_space<vmem>>, %arg7: memref<1x384xf32, #tpu.memory_space<vmem>>, %arg8: memref<1x384xf32, #tpu.memory_space<vmem>>, %arg9: memref<384x128xf32, #tpu.memory_space<vmem>>, %arg10: memref<1x2x128xf32, #tpu.memory_space<vmem>>) attributes {dimension_semantics = [#tpu.dimension_semantics<parallel>], iteration_bounds = array<i64: 2>, scalar_prefetch = 0 : i64, scratch_operands = 0 : i64, tpu.core_type = #tpu.core_type<tc>, window_params = [{pipeline_mode = #tpu.pipeline_mode<synchronous>, transform_indices = @transform_0, window_bounds = array<i64: 2, 289, 16>}, {pipeline_mode = #tpu.pipeline_mode<synchronous>, transform_indices = @transform_1, window_bounds = array<i64: 25, 289>}, {pipeline_mode = #tpu.pipeline_mode<synchronous>, transform_indices = @transform_2, window_bounds = array<i64: 16, 128>}, {pipeline_mode = #tpu.pipeline_mode<synchronous>, transform_indices = @transform_3, window_bounds = array<i64: 1, 128>}, {pipeline_mode = #tpu.pipeline_mode<synchronous>, transform_indices = @transform_4, window_bounds = array<i64: 1, 128>}, {transform_indices = @transform_5, window_bounds = array<i64: 3200, 384>}, {transform_indices = @transform_6, window_bounds = array<i64: 1, 384>}, {transform_indices = @transform_7, window_bounds = array<i64: 1, 384>}, {transform_indices = @transform_8, window_bounds = array<i64: 384, 128>}, {transform_indices = @transform_9, window_bounds = array<i64: 1, 2, 128>}]} {
    %c0 = arith.constant 0 : index
    %c0_0 = arith.constant 0 : index
    %c0_1 = arith.constant 0 : index
    %0 = vector.load %arg1[%c0, %c0_0, %c0_1] : memref<2x289x16xf32, #tpu.memory_space<vmem>>, vector<1x289x16xf32>
    %1 = vector.shape_cast %0 : vector<1x289x16xf32> to vector<289x16xf32>
    %c0_2 = arith.constant 0 : index
    %c0_3 = arith.constant 0 : index
    %2 = vector.load %arg3[%c0_2, %c0_3] : memref<16x128xf32, #tpu.memory_space<vmem>>, vector<16x128xf32>
    %cst = arith.constant dense<0.000000e+00> : vector<289x128xf32>
    %3 = tpu.matmul %1, %2, %cst {dimension_numbers = #tpu.dot_dimension_numbers<[1], [0], [0], [1], [0, 0, 1, 1], [], []>} : vector<289x16xf32>, vector<16x128xf32>, vector<289x128xf32> -> vector<289x128xf32>
    %c0_4 = arith.constant 0 : index
    %c0_5 = arith.constant 0 : index
    %4 = vector.load %arg2[%c0_4, %c0_5] : memref<25x289xf32, #tpu.memory_space<vmem>>, vector<25x289xf32>
    %cst_6 = arith.constant dense<0.000000e+00> : vector<25x128xf32>
    %5 = tpu.matmul %4, %3, %cst_6 {dimension_numbers = #tpu.dot_dimension_numbers<[1], [0], [0], [1], [0, 0, 1, 1], [], []>} : vector<25x289xf32>, vector<289x128xf32>, vector<25x128xf32> -> vector<25x128xf32>
    %c0_7 = arith.constant 0 : index
    %c0_8 = arith.constant 0 : index
    %6 = vector.load %arg4[%c0_7, %c0_8] : memref<1x128xf32, #tpu.memory_space<vmem>>, vector<1x128xf32>
    %7 = vector.broadcast %6 : vector<1x128xf32> to vector<25x128xf32>
    %8 = arith.mulf %5, %7 : vector<25x128xf32>
    %c0_9 = arith.constant 0 : index
    %c0_10 = arith.constant 0 : index
    %9 = vector.load %arg5[%c0_9, %c0_10] : memref<1x128xf32, #tpu.memory_space<vmem>>, vector<1x128xf32>
    %10 = vector.broadcast %9 : vector<1x128xf32> to vector<25x128xf32>
    %11 = arith.addf %8, %10 : vector<25x128xf32>
    %cst_11 = arith.constant 0.000000e+00 : f32
    %12 = vector.broadcast %cst_11 : f32 to vector<25x128xf32>
    %13 = arith.maximumf %11, %12 : vector<25x128xf32>
    %14 = vector.shape_cast %13 : vector<25x128xf32> to vector<1x3200xf32>
    %c1 = arith.constant 1 : index
    %c0_12 = arith.constant 0 : index
    %c0_13 = arith.constant 0 : index
    %15 = vector.load %arg1[%c1, %c0_12, %c0_13] : memref<2x289x16xf32, #tpu.memory_space<vmem>>, vector<1x289x16xf32>
    %16 = vector.shape_cast %15 : vector<1x289x16xf32> to vector<289x16xf32>
    %c0_14 = arith.constant 0 : index
    %c0_15 = arith.constant 0 : index
    %17 = vector.load %arg3[%c0_14, %c0_15] : memref<16x128xf32, #tpu.memory_space<vmem>>, vector<16x128xf32>
    %cst_16 = arith.constant dense<0.000000e+00> : vector<289x128xf32>
    %18 = tpu.matmul %16, %17, %cst_16 {dimension_numbers = #tpu.dot_dimension_numbers<[1], [0], [0], [1], [0, 0, 1, 1], [], []>} : vector<289x16xf32>, vector<16x128xf32>, vector<289x128xf32> -> vector<289x128xf32>
    %c0_17 = arith.constant 0 : index
    %c0_18 = arith.constant 0 : index
    %19 = vector.load %arg2[%c0_17, %c0_18] : memref<25x289xf32, #tpu.memory_space<vmem>>, vector<25x289xf32>
    %cst_19 = arith.constant dense<0.000000e+00> : vector<25x128xf32>
    %20 = tpu.matmul %19, %18, %cst_19 {dimension_numbers = #tpu.dot_dimension_numbers<[1], [0], [0], [1], [0, 0, 1, 1], [], []>} : vector<25x289xf32>, vector<289x128xf32>, vector<25x128xf32> -> vector<25x128xf32>
    %c0_20 = arith.constant 0 : index
    %c0_21 = arith.constant 0 : index
    %21 = vector.load %arg4[%c0_20, %c0_21] : memref<1x128xf32, #tpu.memory_space<vmem>>, vector<1x128xf32>
    %22 = vector.broadcast %21 : vector<1x128xf32> to vector<25x128xf32>
    %23 = arith.mulf %20, %22 : vector<25x128xf32>
    %c0_22 = arith.constant 0 : index
    %c0_23 = arith.constant 0 : index
    %24 = vector.load %arg5[%c0_22, %c0_23] : memref<1x128xf32, #tpu.memory_space<vmem>>, vector<1x128xf32>
    %25 = vector.broadcast %24 : vector<1x128xf32> to vector<25x128xf32>
    %26 = arith.addf %23, %25 : vector<25x128xf32>
    %cst_24 = arith.constant 0.000000e+00 : f32
    %27 = vector.broadcast %cst_24 : f32 to vector<25x128xf32>
    %28 = arith.maximumf %26, %27 : vector<25x128xf32>
    %29 = vector.shape_cast %28 : vector<25x128xf32> to vector<1x3200xf32>
    %30 = tpu.concatenate %14, %29 in 0 : vector<1x3200xf32>, vector<1x3200xf32> -> vector<2x3200xf32>
    %31 = arith.truncf %30 : vector<2x3200xf32> to vector<2x3200xbf16>
    %c0_25 = arith.constant 0 : index
    %c0_26 = arith.constant 0 : index
    %32 = vector.load %arg6[%c0_25, %c0_26] : memref<3200x384xbf16, #tpu.memory_space<vmem>>, vector<3200x384xbf16>
    %cst_27 = arith.constant dense<0.000000e+00> : vector<2x384xf32>
    %33 = tpu.matmul %31, %32, %cst_27 {dimension_numbers = #tpu.dot_dimension_numbers<[1], [0], [0], [1], [0, 0, 1, 1], [], []>} : vector<2x3200xbf16>, vector<3200x384xbf16>, vector<2x384xf32> -> vector<2x384xf32>
    %c0_28 = arith.constant 0 : index
    %c0_29 = arith.constant 0 : index
    %34 = vector.load %arg7[%c0_28, %c0_29] : memref<1x384xf32, #tpu.memory_space<vmem>>, vector<1x384xf32>
    %35 = vector.broadcast %34 : vector<1x384xf32> to vector<2x384xf32>
    %36 = arith.mulf %33, %35 : vector<2x384xf32>
    %c0_30 = arith.constant 0 : index
    %c0_31 = arith.constant 0 : index
    %37 = vector.load %arg8[%c0_30, %c0_31] : memref<1x384xf32, #tpu.memory_space<vmem>>, vector<1x384xf32>
    %38 = vector.broadcast %37 : vector<1x384xf32> to vector<2x384xf32>
    %39 = arith.addf %36, %38 : vector<2x384xf32>
    %cst_32 = arith.constant 0.000000e+00 : f32
    %40 = vector.broadcast %cst_32 : f32 to vector<2x384xf32>
    %41 = arith.maximumf %39, %40 : vector<2x384xf32>
    %c0_33 = arith.constant 0 : index
    %c0_34 = arith.constant 0 : index
    %42 = vector.load %arg9[%c0_33, %c0_34] : memref<384x128xf32, #tpu.memory_space<vmem>>, vector<384x128xf32>
    %cst_35 = arith.constant dense<0.000000e+00> : vector<2x128xf32>
    %43 = tpu.matmul %41, %42, %cst_35 {dimension_numbers = #tpu.dot_dimension_numbers<[1], [0], [0], [1], [0, 0, 1, 1], [], []>} : vector<2x384xf32>, vector<384x128xf32>, vector<2x128xf32> -> vector<2x128xf32>
    %c0_36 = arith.constant 0 : index
    %c0_37 = arith.constant 0 : index
    %c0_38 = arith.constant 0 : index
    %44 = vector.load %arg10[%c0_36, %c0_37, %c0_38] : memref<1x2x128xf32, #tpu.memory_space<vmem>>, vector<1x2x128xf32>
    %45 = vector.shape_cast %44 : vector<1x2x128xf32> to vector<2x128xf32>
    %46 = vector.shape_cast %43 : vector<2x128xf32> to vector<1x2x128xf32>
    tpu.vector_store %arg10[%c0_36, %c0_37, %c0_38], %46 {strides = array<i32>} : memref<1x2x128xf32, #tpu.memory_space<vmem>>, vector<1x2x128xf32>,
    return
  }
  func.func @transform_0(%arg0: i32) -> (i32, i32, i32) {
    %c0_i32 = arith.constant 0 : i32
    %c0_i32_0 = arith.constant 0 : i32
    %c0_i32_1 = arith.constant 0 : i32
    %c0_i32_2 = arith.constant 0 : i32
    return %c0_i32, %c0_i32_0, %c0_i32_1 : i32, i32, i32
  }
  func.func @transform_1(%arg0: i32) -> (i32, i32) {
    %c0_i32 = arith.constant 0 : i32
    %c0_i32_0 = arith.constant 0 : i32
    %c0_i32_1 = arith.constant 0 : i32
    return %c0_i32, %c0_i32_0 : i32, i32
  }
  func.func @transform_2(%arg0: i32) -> (i32, i32) {
    %c0_i32 = arith.constant 0 : i32
    %c0_i32_0 = arith.constant 0 : i32
    %c0_i32_1 = arith.constant 0 : i32
    return %c0_i32, %c0_i32_0 : i32, i32
  }
  func.func @transform_3(%arg0: i32) -> (i32, i32) {
    %c0_i32 = arith.constant 0 : i32
    %c0_i32_0 = arith.constant 0 : i32
    %c0_i32_1 = arith.constant 0 : i32
    return %c0_i32, %c0_i32_0 : i32, i32
  }
  func.func @transform_4(%arg0: i32) -> (i32, i32) {
    %c0_i32 = arith.constant 0 : i32
    %c0_i32_0 = arith.constant 0 : i32
    %c0_i32_1 = arith.constant 0 : i32
    return %c0_i32, %c0_i32_0 : i32, i32
  }
  func.func @transform_5(%arg0: i32) -> (i32, i32) {
    %c0_i32 = arith.constant 0 : i32
    %c0_i32_0 = arith.constant 0 : i32
    return %c0_i32, %arg0 : i32, i32
  }
  func.func @transform_6(%arg0: i32) -> (i32, i32) {
    %c0_i32 = arith.constant 0 : i32
    %c0_i32_0 = arith.constant 0 : i32
    return %c0_i32, %arg0 : i32, i32
  }
  func.func @transform_7(%arg0: i32) -> (i32, i32) {
    %c0_i32 = arith.constant 0 : i32
    %c0_i32_0 = arith.constant 0 : i32
    return %c0_i32, %arg0 : i32, i32
  }
  func.func @transform_8(%arg0: i32) -> (i32, i32) {
    %c0_i32 = arith.constant 0 : i32
    %c0_i32_0 = arith.constant 0 : i32
    return %arg0, %c0_i32 : i32, i32
  }
  func.func @transform_9(%arg0: i32) -> (i32, i32, i32) {
    %c0_i32 = arith.constant 0 : i32
    %c0_i32_0 = arith.constant 0 : i32
    %c0_i32_1 = arith.constant 0 : i32
    return %arg0, %c0_i32, %c0_i32_0 : i32, i32, i32
  }
}

</mosaic_0001>

<bundles_post_ra>
// kernel: tpu_custom_call.1
= control target key start
LH: loop header
LB: loop body
LE: loop exit
PB: predicated region body
PF: predicated region fallthrough
CT: control target
= control target key end

     0   :  { %s12787_s0 = inlined_call_operand.vmem [shape: f32[2,289,16], index: 0, kind: input, shape index: {}]   ;;  %s12788_s1 = inlined_call_operand.hbm [shape: f32[25,289], index: 1, kind: input, shape index: {}]   ;;  %s12789_s2 = inlined_call_operand.hbm [shape: f32[16,128], index: 2, kind: input, shape index: {}]   ;;  %s12790_s3 = inlined_call_operand.hbm [shape: f32[1,128], index: 3, kind: input, shape index: {}]   ;;  %s12791_s4 = inlined_call_operand.hbm [shape: f32[1,128], index: 4, kind: input, shape index: {}]   ;;  %s12792_s5 = inlined_call_operand.hbm [shape: bf16[3200,768], index: 5, kind: input, shape index: {}]   ;;  %s12793_s6 = inlined_call_operand.hbm [shape: f32[1,768], index: 6, kind: input, shape index: {}]   ;;  %s12794_s7 = inlined_call_operand.hbm [shape: f32[1,768], index: 7, kind: input, shape index: {}]   ;;  %s12795_s8 = inlined_call_operand.hbm [shape: f32[768,128], index: 8, kind: input, shape index: {}]   ;;  %s12796_s9 = inlined_call_operand.hbm [shape: f32[2,2,128], index: 9, kind: output, shape index: {}]  }
   0x1   :  { %12810 = sst [smem:[#allocation27_spill]] %s12787_s0 }
   0x2   :  { %12811 = sst [smem:[#allocation28_spill]] %s12788_s1 }
   0x3   :  { %12812 = sst [smem:[#allocation29_spill]] %s12792_s5 }
   0x4   :  { %12813 = sst [smem:[#allocation30_spill]] %s12796_s9 }
   0x5   :  { %14 = vsyncpa [#allocation3], 0 }
   0x6   :  { %15 = vsyncpa [#allocation6], 0 }
   0x7   :  { %16 = vsyncpa [#allocation9], 0 }
   0x8   :  { %17 = vsyncpa [#allocation4], 0 }
   0x9   :  { %19 = vsyncpa [#allocation4 + $0x1], 0  ;;  %s10412_s30 = smov 0   ;;  %s10414_s10 = smov 0  }
   0xa   :  { %s10416_s11 = smov 0   ;;  %s10418_s12 = smov 0  }
   0xb LB: > { %12814 = sst [smem:[#allocation20_spill]] %s10338_s30  ;;  %s10433_s13 = sadd.s32 4294967295, %s10350_s12   ;;  %s10350_s12 = sphi %s10418_s12, %s12846_s12   ;;  %s10346_s11 = sphi %s10416_s11, %s12848_s11   ;;  %s10342_s10 = sphi %s10414_s10, %s12850_s10   ;;  %s10338_s30 = sphi %s10412_s30, %s12849_s30  }
   0xc   : > { %12815 = sst [smem:[#allocation21_spill]] %s10346_s11  ;;  %s6773_s14 = sadd.s32 4294967294, %s10350_s12  }
   0xd   : > { %s10437_s15 = sadd.s32 1, %s10350_s12   ;;  %s137_s16 = sadd.s32 1, %s10346_s11 }
   0xe   : > { %12816 = sst [smem:[#allocation22_spill]] %s10437_s15  ;;  %s134_s17 = ssub.s32 %s10350_s12, %s10437_s15 }
   0xf   : > { %p144_p0 = scmp.ne.s32.totalorder %s10346_s11, %s10342_s10  ;;  %p135_p1 = scmp.eq.s32.totalorder %s134_s17, 0 }
  0x10   : > { %p145_p2 = scmp.eq.s32.totalorder %s10350_s12, 0  ;;  %p150_p3 = scmp.ne.s32.totalorder %s10342_s10, %s10338_s30 }
  0x11   : > { %p12803_p4 = scmp.eq.s32.totalorder %s10433_s13, 0  ;;  %p252_p7 = scmp.eq.s32.totalorder %s10433_s13, 1 }
  0x12   : > { %s10449_s18 = scalar_select %p135_p1, %s10346_s11, %s137_s16  }
  0x13   : > { %p10451_p5 = por %p145_p2, %p144_p0  ;;  %p10457_p6 = por %p12803_p4, %p150_p3 }
  0x14   : > { %12817 = sst [smem:[#allocation23_spill]] %s10449_s18  ;;  %p258_p8 = scmp.eq.s32.totalorder %s6773_s14, 1 }
  0x15   : > { %s12819_s20 = scalar_select %p10457_p6, 1, 0 }
  0x16   : > { %p6774_p9 = scmp.ge.s32.totalorder %s10350_s12, 1  ;;  %p265_p10 = scmp.lt.s32.totalorder %s10350_s12, 3 }
  0x17   : > { %12820 = sst [smem:[#allocation24_spill]] %s12819_s20  ;;  %p10464_p11 = por %p252_p7, %p144_p0 }
  0x18   : > { %p10468_p12 = por %p258_p8, %p150_p3  ;;  %p10472_p13 = pnand %p6774_p9, %p265_p10 }
  0x19   : > { %s12821_s21 = scalar_select %p10464_p11, 1, 0 }
  0x1a   : > { %s12823_s22 = scalar_select %p10468_p12, 1, 0 }
  0x1b   : > { %12822 = sst [smem:[#allocation25_spill]] %s12821_s21  ;;  %p9948_p0 = pneg %p10472_p13 }
  0x1c   : > { %12824 = sst [smem:[#allocation26_spill]] %s12823_s22  ;;  %s10352_s27 = smov [#allocation2]  }
  0x1d   : > { %s12826_s1 = sld [smem:[#allocation28_spill]]  ;;  %s281_s28 = sshll.u32 %s10352_s27, 4  ;;  %s282_s28 = int_to_ptr.vmem [resolvable:$true] %s281_s28 }
  0x1e   : > { %p10483_p1 = pnand %p9948_p0, %p12803_p4  ;;  %p9982_p3 = scmp.lt.s32.totalorder %s10350_s12, 2 }
  0x1f   : > { %s12801_s14 = smov 384   ;;  %s10354_s16 = smov 24  }
  0x20   : > { %p10495_p7 = pnand %p9982_p3, %p10451_p5  ;;  %s333_s24 = sand.u32 1, %s10350_s12  }
  0x21   : > { %s10501_s25 = sand.u32 1, %s10346_s11   ;;  %s12829_s5 = sld [smem:[#allocation29_spill]] }
  0x22   : > { %s9915_s27 = smul.u32 4800, %s10501_s25  ;;  %p10066_p8 = pneg %p10495_p7 }
  0x23   : > { %s279_s26 = sshll.u32 %s12826_s1, 4  ;;  %s9313_s1 = smul.u32 12, %s10350_s12  ;;  %s280_s26 = int_to_ptr.hbm [resolvable:$true] %s279_s26 }
  0x24   : > { %9951 = dma.hbm_to_vmem [thread:$0]  (!%p10483_p1), %s280_s26, 1536, %s282_s28, [#allocation3], %s12801_s14, %s12801_s14, %s10354_s16  }
  0x25   : > { %s337_s30 = scalar_lea.vmem [#allocation10], %s9915_s27  ;;  %s10509_s16 = scalar_lea.sflag [#allocation3], %s333_s24 }
  0x26   : > { %s345_s26 = sshll.u32 %s337_s30, 4  ;;  %s346_s26 = int_to_ptr.vmem [resolvable:$true] %s345_s26 }
  0x27   : > { %s342_s22 = scalar_lea.hbm %s12829_s5, %s9313_s1  ;;  %s10069_s30 = scalar_lea.hbm %s12829_s5, 9600 }
  0x28   : > { %s343_s19 = sshll.u32 %s342_s22, 4  ;;  %s344_s19 = int_to_ptr.hbm [resolvable:$true] %s343_s19 }
  0x29   : > { %s10062_s14 = sshra.s32 %s344_s19, 4  ;;  %s10063_s14 = int_to_ptr.hbm [resolvable:$true] %s10062_s14 }
  0x2a   : > { %s10064_s11 = scalar_lea.hbm %s10063_s14, 4800  ;;  %p10070_p0 = scmp.lt.s32.totalorder %s10063_s14, %s12829_s5 }
  0x2b   : > { %p10065_p5 = scmp.ne.s32.totalorder %s10063_s14, %s10064_s11  ;;  %p10071_p3 = scmp.lt.s32.totalorder %s10069_s30, %s10064_s11 }
  0x2d   : > { %p10067_p9 = pnand %p10066_p8, %p10065_p5  ;;  %p10072_p2 = por %p10071_p3, %p10070_p0 }
  0x2f   : > { %p10068_p10 = pneg %p10067_p9 }
  0x31   : > { %p10073_p4 = pnand %p10072_p2, %p10068_p10 }
  0x33   : > { %10076 = shalt.err (!%p10073_p4)
}
  0x34   : > { %s10355_s24 = smov 192   ;;  %s10356_s27 = smov 12  }
  0x35   : > { %s12830_s28 = smov 384   ;;  %s360_s15 = smul.u32 3, %s10350_s12 }
  0x36   : > { %9964 = dma.hbm_to_vmem [thread:$0]  (!%p10495_p7), %s344_s19, 76800, %s346_s26, %s10509_s16, %s12830_s28, %s10355_s24, %s10356_s27  }
  0x37   : > { %s12831_s1 = smul.u32 3, %s10501_s25  ;;  %s293_s30 = sshll.u32 %s12789_s2, 4  ;;  %s294_s30 = int_to_ptr.hbm [resolvable:$true] %s293_s30 }
  0x38   : > { %s363_s9 = scalar_lea.hbm %s12793_s6, %s360_s15  ;;  %s10099_s28 = scalar_lea.hbm %s12793_s6, 6 }
  0x39   : > { %s359_s21 = scalar_lea.vmem [#allocation11], %s12831_s1  ;;  %s365_s0 = sshll.u32 %s363_s9, 4  ;;  %s366_s0 = int_to_ptr.hbm [resolvable:$true] %s365_s0 }
  0x3a   : > { %s367_s18 = sshll.u32 %s359_s21, 4  ;;  %s10092_s20 = sshra.s32 %s366_s0, 4  ;;  %s368_s18 = int_to_ptr.vmem [resolvable:$true] %s367_s18  ;;  %s10093_s20 = int_to_ptr.hbm [resolvable:$true] %s10092_s20 }
  0x3b   : > { %s10094_s26 = scalar_lea.hbm %s10093_s20, 3  ;;  %p10100_p9 = scmp.lt.s32.totalorder %s10093_s20, %s12793_s6 }
  0x3c   : > { %p10095_p4 = scmp.ne.s32.totalorder %s10093_s20, %s10094_s26  ;;  %p10101_p10 = scmp.lt.s32.totalorder %s10099_s28, %s10094_s26 }
  0x3e   : > { %p10097_p2 = pnand %p10095_p4, %p10066_p8  ;;  %p10102_p0 = por %p10101_p10, %p10100_p9 }
  0x40   : > { %p10098_p5 = pneg %p10097_p2 }
  0x42   : > { %p10103_p3 = pnand %p10102_p0, %p10098_p5 }
  0x44   : > { %10106 = shalt.err (!%p10103_p3)
}
  0x45   : > { %9967 = dma.hbm_to_vmem [thread:$0]  (!%p10495_p7), %s366_s0, 48, %s368_s18, %s10509_s16  }
  0x46   : > { %s10357_s5 = smov [#allocation5]   ;;  %s10358_s1 = smov 128  }
  0x47   : > { %s295_s9 = sshll.u32 %s10357_s5, 4  ;;  %s10359_s14 = smov 8   ;;  %s296_s9 = int_to_ptr.vmem [resolvable:$true] %s295_s9 }
  0x48   : > { %9954 = dma.hbm_to_vmem [thread:$0]  (!%p10483_p1), %s294_s30, 256, %s296_s9, [#allocation6], %s10358_s1, %s10358_s1, %s10359_s14  }
  0x49   : > { %s382_s22 = scalar_lea.hbm %s12794_s7, %s360_s15  ;;  %s12832_s21 = smul.u32 3, %s10501_s25 }
  0x4a   : > { %s384_s26 = sshll.u32 %s382_s22, 4  ;;  %s10159_s27 = scalar_lea.hbm %s12794_s7, 6  ;;  %s385_s26 = int_to_ptr.hbm [resolvable:$true] %s384_s26 }
  0x4b   : > { %s378_s19 = scalar_lea.vmem [#allocation12], %s12832_s21  ;;  %s10152_s18 = sshra.s32 %s385_s26, 4  ;;  %s10153_s18 = int_to_ptr.hbm [resolvable:$true] %s10152_s18 }
  0x4c   : > { %s386_s0 = sshll.u32 %s378_s19, 4  ;;  %s10154_s28 = scalar_lea.hbm %s10153_s18, 3  ;;  %s387_s0 = int_to_ptr.vmem [resolvable:$true] %s386_s0 }
  0x4d   : > { %p10155_p4 = scmp.ne.s32.totalorder %s10153_s18, %s10154_s28  ;;  %p10160_p9 = scmp.lt.s32.totalorder %s10153_s18, %s12794_s7 }
  0x4e   : > { %p10161_p10 = scmp.lt.s32.totalorder %s10159_s27, %s10154_s28 }
  0x4f   : > { %p10157_p2 = pnand %p10155_p4, %p10066_p8 }
  0x50   : > { %p10162_p0 = por %p10161_p10, %p10160_p9 }
  0x51   : > { %p10158_p5 = pneg %p10157_p2 }
  0x53   : > { %p10163_p3 = pnand %p10162_p0, %p10158_p5 }
  0x55   : > { %10166 = shalt.err (!%p10163_p3)
}
  0x56   : > { %9970 = dma.hbm_to_vmem [thread:$0]  (!%p10495_p7), %s385_s26, 48, %s387_s0, %s10509_s16  }
  0x57   : > { %s308_s11 = sshll.u32 %s12790_s3, 4  ;;  %s10360_s22 = smov [#allocation7]   ;;  %s309_s11 = int_to_ptr.hbm [resolvable:$true] %s308_s11 }
  0x58   : > { %s310_s21 = sshll.u32 %s10360_s22, 4  ;;  %s320_s28 = sshll.u32 %s12791_s4, 4  ;;  %s311_s21 = int_to_ptr.vmem [resolvable:$true] %s310_s21  ;;  %s321_s28 = int_to_ptr.hbm [resolvable:$true] %s320_s28 }
  0x59   : > { %9957 = dma.hbm_to_vmem [thread:$0]  (!%p10483_p1), %s309_s11, 16, %s311_s21, [#allocation6]  }
  0x5a   : > { %s10361_s30 = smov [#allocation8]   ;;  %s9918_s27 = smul.u32 384, %s10501_s25 }
  0x5b   : > { %s322_s24 = sshll.u32 %s10361_s30, 4  ;;  %s9314_s26 = smul.u32 384, %s10350_s12  ;;  %s323_s24 = int_to_ptr.vmem [resolvable:$true] %s322_s24 }
  0x5c   : > { %9960 = dma.hbm_to_vmem [thread:$0]  (!%p10483_p1), %s321_s28, 16, %s323_s24, [#allocation9]  }
  0x5d   : > { %s402_s15 = scalar_lea.hbm %s12795_s8, %s9314_s26  ;;  %s397_s20 = scalar_lea.vmem [#allocation13], %s9918_s27 }
  0x5e   : > { %s403_s9 = sshll.u32 %s402_s15, 4  ;;  %s405_s22 = sshll.u32 %s397_s20, 4  ;;  %s404_s9 = int_to_ptr.hbm [resolvable:$true] %s403_s9  ;;  %s406_s22 = int_to_ptr.vmem [resolvable:$true] %s405_s22 }
  0x5f   : > { %s10242_s19 = sshra.s32 %s404_s9, 4  ;;  %s10249_s21 = scalar_lea.hbm %s12795_s8, 768  ;;  %s10243_s19 = int_to_ptr.hbm [resolvable:$true] %s10242_s19 }
  0x60   : > { %s10244_s11 = scalar_lea.hbm %s10243_s19, 384  ;;  %p10250_p1 = scmp.lt.s32.totalorder %s10243_s19, %s12795_s8 }
  0x61   : > { %p10245_p4 = scmp.ne.s32.totalorder %s10243_s19, %s10244_s11  ;;  %p10251_p9 = scmp.lt.s32.totalorder %s10249_s21, %s10244_s11 }
  0x63   : > { %p10247_p2 = pnand %p10245_p4, %p10066_p8  ;;  %p10252_p10 = por %p10251_p9, %p10250_p1 }
  0x65   : > { %p10248_p5 = pneg %p10247_p2 }
  0x67   : > { %p10253_p0 = pnand %p10252_p10, %p10248_p5 }
  0x69   : > { %10256 = shalt.err (!%p10253_p0)
}
  0x6a   : > { %9973 = dma.hbm_to_vmem [thread:$0]  (!%p10495_p7), %s404_s9, 6144, %s406_s22, %s10509_s16, %s10358_s1, %s10358_s1, %s10359_s14  }
  0x6b   : > { %417 = sbr.rel (%p10472_p13) target bundleno = 2078 (0x81e), region = 56  ;;  %p12833_p8 = scmp.eq.s32.totalorder (!%p10472_p13), %s10433_s13, 0 }
  0x70   : > { %10317 = dma.done.wait (%p12833_p8), [#allocation3], 1536   ;;  %p12834_p3 = pmov %p12833_p8 }
  0x72   : > { %10319 = vsyncadd (%p12834_p3), [#allocation3], 4294965760  ;;  %p12835_p4 = pmov %p12834_p3 }
  0x73   : > { %p12836_p2 = pmov %p12834_p3 }
  0x74   : > { %10321 = dma.done.wait (%p12835_p4), [#allocation6], 272  }
  0x75   : > { %10323 = vsyncadd (%p12836_p2), [#allocation6], 4294967024  ;;  %p12837_p5 = pmov %p12836_p2 }
  0x76   : > { %p12838_p7 = pmov %p12836_p2 }
  0x77   : > { %10325 = dma.done.wait (%p12837_p5), [#allocation9], 16  }
  0x78   : > { %10327 = vsyncadd (%p12838_p7), [#allocation9], 4294967280  ;;  %s439_s17 = sand.u32 1, %s10433_s13   ;;  %s10619_s16 = sand.u32 1, %s10342_s10  }
  0x79   : > { %s9919_s1 = smul.u32 4800, %s10619_s16  ;;  %s440_s14 = scalar_lea.sflag [#allocation3], %s439_s17 }
  0x7b   : > { %s10622_s30 = scalar_lea.vmem [#allocation10], %s9919_s1 }
  0x7c   : > { %10329 = dma.done.wait (%p10457_p6), %s440_s14, 83040  }
  0x7d   : > { %10331 = vsyncadd (%p10457_p6), %s440_s14, 4294884256  ;;  %v10628_v0 = vld [vmem:[#allocation5 + $0x8] sm:$0xff]  ;;  %v10630_v1 = vld [vmem:[#allocation5] sm:$0xff]  ;;  %s12840_s26 = sld [smem:[#allocation27_spill]]  ;;  %vm567_vm0 = vcmask 130048   ;;  %vm832_vm1 = vcmask 1040384  }
  0x7e   : > { %693 = vmatpush.msra.mxu0 %v10628_v0  ;;  %vm819_vm2 = vcmask 269312   ;;  %s9921_s23 = smul.u32 384, %s10619_s16  ;;  %s9310_s27 = sshll.u32 %s10433_s13, 1 }
  0x7f   : > { %s9920_s1 = smul.u32 3, %s10619_s16  ;;  %s12841_s15 = sld [smem:[#allocation30_spill]] }
  0x80   : > { %694 = vmatpush.msra.mxu0 %v10630_v1  ;;  %s12553_s17 = scalar_lea.vmem [#allocation13], %s9921_s23  ;;  %s6590_s25 = scalar_lea.sflag [#allocation4], %s10619_s16 }
  0x81   : > { %s453_s14 = scalar_lea.vmem [#allocation11], %s9920_s1  ;;  %s463_s24 = scalar_lea.vmem [#allocation12], %s9920_s1 }
  0x83   : > { %v528_v2 = vld [vmem:[%s12840_s26] sm:$0xff]  ;;  %v529_v3 = vld [vmem:[%s12840_s26 + $0x8] sm:$0xff]  ;;  %v530_v4 = vld [vmem:[%s12840_s26 + $0x10] sm:$0xff] }
  0x84   : > { %6788 = vmatmul.msk.f32.vlgmr.msra.gmra.mxu0 %vm567_vm0, %v528_v2  ;;  %v531_v5 = vld [vmem:[%s12840_s26 + $0x18] sm:$0xff]  ;;  %v532_v6 = vld [vmem:[%s12840_s26 + $0x20] sm:$0xff]  ;;  %v533_v7 = vld [vmem:[%s12840_s26 + $0x28] sm:$0xff] }
  0x85   : > { %v534_v8 = vld [vmem:[%s12840_s26 + $0x30] sm:$0xff]  ;;  %v535_v9 = vld [vmem:[%s12840_s26 + $0x38] sm:$0xff]  ;;  %v536_v10 = vld [vmem:[%s12840_s26 + $0x40] sm:$0xff]  ;;  %s6600_s9 = scalar_lea.hbm %s12841_s15, %s9310_s27  ;;  %s10292_s28 = scalar_lea.hbm %s12841_s15, 4 }
  0x86   : > { %v537_v11 = vld [vmem:[%s12840_s26 + $0x48] sm:$0xff]  ;;  %v538_v12 = vld [vmem:[%s12840_s26 + $0x50] sm:$0xff]  ;;  %v539_v13 = vld [vmem:[%s12840_s26 + $0x58] sm:$0xff]  ;;  %s6604_s11 = sshll.u32 %s6600_s9, 4  ;;  %s6605_s11 = int_to_ptr.hbm [resolvable:$true] %s6604_s11 }
  0x87   : > { %v540_v14 = vld [vmem:[%s12840_s26 + $0x60] sm:$0xff]  ;;  %v541_v15 = vld [vmem:[%s12840_s26 + $0x68] sm:$0xff]  ;;  %v542_v16 = vld [vmem:[%s12840_s26 + $0x70] sm:$0xff]  ;;  %s10286_s29 = sshra.s32 %s6605_s11, 4  ;;  %s10287_s29 = int_to_ptr.hbm [resolvable:$true] %s10286_s29 }
  0x88   : > { %v543_v17 = vld [vmem:[%s12840_s26 + $0x78] sm:$0xff]  ;;  %v544_v19 = vld [vmem:[%s12840_s26 + $0x80] sm:$0xff]  ;;  %v545_v21 = vld [vmem:[%s12840_s26 + $0x88] sm:$0xff]  ;;  %s10288_s13 = scalar_lea.hbm %s10287_s29, 2  ;;  %p10293_p9 = scmp.lt.s32.totalorder %s10287_s29, %s12841_s15 }
  0x89   : > { %v546_v23 = vld [vmem:[%s12840_s26 + $0x90] sm:$0xff]  ;;  %v547_v25 = vld [vmem:[%s12840_s26 + $0x98] sm:$0xff]  ;;  %v548_v27 = vld [vmem:[%s12840_s26 + $0xa0] sm:$0xff]  ;;  %p10289_p6 = scmp.ne.s32.totalorder %s10287_s29, %s10288_s13  ;;  %p10294_p10 = scmp.lt.s32.totalorder %s10292_s28, %s10288_s13 }
  0x8a   : > { %v549_v29 = vld [vmem:[%s12840_s26 + $0xa8] sm:$0xff]  ;;  %v550_v31 = vld [vmem:[%s12840_s26 + $0xb0] sm:$0xff]  ;;  %v551_v33 = vld [vmem:[%s12840_s26 + $0xb8] sm:$0xff] }
  0x8b   : > { %v552_v35 = vld [vmem:[%s12840_s26 + $0xc0] sm:$0xff]  ;;  %v553_v37 = vld [vmem:[%s12840_s26 + $0xc8] sm:$0xff]  ;;  %v554_v39 = vld [vmem:[%s12840_s26 + $0xd0] sm:$0xff]  ;;  %p10290_p13 = pnand %p10289_p6, %p10464_p11  ;;  %p10295_p0 = por %p10294_p10, %p10293_p9 }
  0x8c   : > { %6789 = vmatmul.msk.f32.gmra.mxu0 %vm567_vm0, %v529_v3  ;;  %v555_v41 = vld [vmem:[%s12840_s26 + $0xd8] sm:$0xff]  ;;  %v556_v43 = vld [vmem:[%s12840_s26 + $0xe0] sm:$0xff]  ;;  %v557_v45 = vld [vmem:[%s12840_s26 + $0xe8] sm:$0xff] }
  0x8d   : > { %v558_v47 = vld [vmem:[%s12840_s26 + $0xf0] sm:$0xff]  ;;  %v559_v49 = vld [vmem:[%s12840_s26 + $0xf8] sm:$0xff]  ;;  %v560_v51 = vld [vmem:[%s12840_s26 + $0x100] sm:$0xff]  ;;  %p10291_p1 = pneg %p10290_p13 }
  0x8e   : > { %v561_v53 = vld [vmem:[%s12840_s26 + $0x108] sm:$0xff]  ;;  %v562_v55 = vld [vmem:[%s12840_s26 + $0x110] sm:$0xff]  ;;  %v563_v57 = vld [vmem:[%s12840_s26 + $0x118] sm:$0xff] }
  0x8f   : > { %v564_v59 = vld [vmem:[%s12840_s26 + $0x120] sm:$0x1]  ;;  %p10296_p8 = pnand %p10295_p0, %p10291_p1 }
  0x94   : > { %6790 = vmatmul.msk.f32.gmra.mxu0 %vm567_vm0, %v530_v4 }
  0x9c   : > { %6791 = vmatmul.msk.f32.gmra.mxu0 %vm567_vm0, %v531_v5 }
  0xa4   : > { %6792 = vmatmul.msk.f32.gmra.mxu0 %vm567_vm0, %v532_v6 }
  0xac   : > { %6793 = vmatmul.msk.f32.gmra.mxu0 %vm567_vm0, %v533_v7 }
  0xb4   : > { %6794 = vmatmul.msk.f32.gmra.mxu0 %vm567_vm0, %v534_v8 }
  0xbc   : > { %6795 = vmatmul.msk.f32.gmra.mxu0 %vm567_vm0, %v535_v9 }
  0xc4   : > { %6796 = vmatmul.msk.f32.gmra.mxu0 %vm567_vm0, %v536_v10 }
  0xcc   : > { %6797 = vmatmul.msk.f32.gmra.mxu0 %vm567_vm0, %v537_v11  ;;  %v10791_v11 = vld [vmem:[#allocation2] sm:$0xff] }
  0xd4   : > { %6798 = vmatmul.msk.f32.gmra.mxu0 %vm567_vm0, %v538_v12 }
  0xdc   : > { %6799 = vmatmul.msk.f32.gmra.mxu0 %vm567_vm0, %v539_v13  ;;  %v10794_v13 = vld [vmem:[#allocation2 + $0x18] sm:$0xff] }
  0xe4   : > { %6800 = vmatmul.msk.f32.gmra.mxu0 %vm567_vm0, %v540_v14  ;;  %v10797_v14 = vld [vmem:[#allocation2 + $0x8] sm:$0xff] }
  0xec   : > { %6801 = vmatmul.msk.f32.gmra.mxu0 %vm567_vm0, %v541_v15 }
  0xf4   : > { %6802 = vmatmul.msk.f32.gmra.mxu0 %vm567_vm0, %v542_v16  ;;  %v10800_v16 = vld [vmem:[#allocation2 + $0x30] sm:$0xff] }
  0xfc   : > { %6803 = vmatmul.msk.f32.gmra.mxu0 %vm567_vm0, %v543_v17  ;;  %v10803_v17 = vld [vmem:[#allocation2 + $0x20] sm:$0xff] }
 0x101   : > { %v10698_v18 = vpop.f32.mrf.mxu0 }
 0x104   : > { %6804 = vmatmul.msk.f32.gmra.mxu0 %vm567_vm0, %v544_v19  ;;  %v10807_v19 = vld [vmem:[#allocation2 + $0x48] sm:$0x1] }
 0x109   : > { %v10704_v20 = vpop.f32.mrf.mxu0 }
 0x10c   : > { %6805 = vmatmul.msk.f32.gmra.mxu0 %vm567_vm0, %v545_v21  ;;  %v10812_v21 = vld [vmem:[#allocation2 + $0x10] sm:$0xff] }
 0x111   : > { %v10710_v22 = vpop.f32.mrf.mxu0 }
 0x114   : > { %6806 = vmatmul.msk.f32.gmra.mxu0 %vm567_vm0, %v546_v23  ;;  %v10821_v23 = vld [vmem:[#allocation2 + $0x28] sm:$0xff] }
 0x119   : > { %v705_v24 = vpop.f32.mrf.mxu0 }
 0x11c   : > { %6807 = vmatmul.msk.f32.gmra.mxu0 %vm567_vm0, %v547_v25  ;;  %v10830_v25 = vld [vmem:[#allocation2 + $0x58] sm:$0x1] }
 0x121   : > { %v708_v26 = vpop.f32.mrf.mxu0 }
 0x124   : > { %6808 = vmatmul.msk.f32.gmra.mxu0 %vm567_vm0, %v548_v27  ;;  %v6833_v27 = vld [vmem:[%s12840_s26 + $0x140] sm:$0xff] }
 0x129   : > { %v711_v28 = vpop.f32.mrf.mxu0 }
 0x12c   : > { %6809 = vmatmul.msk.f32.gmra.mxu0 %vm567_vm0, %v549_v29  ;;  %v6835_v29 = vld [vmem:[%s12840_s26 + $0x150] sm:$0xff] }
 0x131   : > { %v714_v30 = vpop.f32.mrf.mxu0 }
 0x134   : > { %6810 = vmatmul.msk.f32.gmra.mxu0 %vm567_vm0, %v550_v31  ;;  %v6837_v31 = vld [vmem:[%s12840_s26 + $0x160] sm:$0xff] }
 0x139   : > { %v717_v32 = vpop.f32.mrf.mxu0 }
 0x13c   : > { %6811 = vmatmul.msk.f32.gmra.mxu0 %vm567_vm0, %v551_v33  ;;  %v6839_v33 = vld [vmem:[%s12840_s26 + $0x170] sm:$0xff] }
 0x141   : > { %v720_v34 = vpop.f32.mrf.mxu0 }
 0x144   : > { %6812 = vmatmul.msk.f32.gmra.mxu0 %vm567_vm0, %v552_v35  ;;  %v6841_v35 = vld [vmem:[%s12840_s26 + $0x180] sm:$0xff] }
 0x149   : > { %v723_v36 = vpop.f32.mrf.mxu0 }
 0x14c   : > { %6813 = vmatmul.msk.f32.gmra.mxu0 %vm567_vm0, %v553_v37 }
 0x151   : > { %v726_v38 = vpop.f32.mrf.mxu0 }
 0x154   : > { %6814 = vmatmul.msk.f32.gmra.mxu0 %vm567_vm0, %v554_v39 }
 0x159   : > { %v729_v40 = vpop.f32.mrf.mxu0 }
 0x15c   : > { %6815 = vmatmul.msk.f32.gmra.mxu0 %vm567_vm0, %v555_v41 }
 0x161   : > { %v732_v42 = vpop.f32.mrf.mxu0 }
 0x164   : > { %6816 = vmatmul.msk.f32.gmra.mxu0 %vm567_vm0, %v556_v43 }
 0x169   : > { %v735_v44 = vpop.f32.mrf.mxu0 }
 0x16c   : > { %6817 = vmatmul.msk.f32.gmra.mxu0 %vm567_vm0, %v557_v45 }
 0x171   : > { %v738_v46 = vpop.f32.mrf.mxu0 }
 0x174   : > { %6818 = vmatmul.msk.f32.gmra.mxu0 %vm567_vm0, %v558_v47 }
 0x179   : > { %v741_v48 = vpop.f32.mrf.mxu0 }
 0x17a   : > { %836 = vmatpush.msra.mxu1 %v741_v48 }
 0x17c   : > { %6819 = vmatmul.msk.f32.gmra.mxu0 %vm567_vm0, %v559_v49  ;;  %837 = vmatpush.msra.mxu1 %v738_v46 }
 0x17e   : > { %838 = vmatpush.msra.mxu1 %v735_v44  ;;  %v6844_v44 = vld [vmem:[%s12840_s26 + $0x198] sm:$0xff] }
 0x180   : > { %839 = vmatpush.msra.mxu1 %v732_v42  ;;  %v6843_v42 = vld [vmem:[%s12840_s26 + $0x190] sm:$0xff] }
 0x181   : > { %v744_v50 = vpop.f32.mrf.mxu0 }
 0x182   : > { %840 = vmatpush.msra.mxu1 %v729_v40 }
 0x184   : > { %6820 = vmatmul.msk.f32.gmra.mxu0 %vm567_vm0, %v560_v51  ;;  %841 = vmatpush.msra.mxu1 %v726_v38  ;;  %v6842_v38 = vld [vmem:[%s12840_s26 + $0x188] sm:$0xff] }
 0x186   : > { %842 = vmatpush.msra.mxu1 %v723_v36 }
 0x188   : > { %843 = vmatpush.msra.mxu1 %v720_v34  ;;  %v6840_v34 = vld [vmem:[%s12840_s26 + $0x178] sm:$0xff] }
 0x189   : > { %v747_v52 = vpop.f32.mrf.mxu0 }
 0x18a   : > { %844 = vmatpush.msra.mxu1 %v717_v32  ;;  %v6838_v32 = vld [vmem:[%s12840_s26 + $0x168] sm:$0xff] }
 0x18c   : > { %6821 = vmatmul.msk.f32.gmra.mxu0 %vm567_vm0, %v561_v53  ;;  %845 = vmatpush.msra.mxu1 %v714_v30  ;;  %v6836_v30 = vld [vmem:[%s12840_s26 + $0x158] sm:$0xff] }
 0x18e   : > { %846 = vmatpush.msra.mxu1 %v711_v28  ;;  %v6834_v28 = vld [vmem:[%s12840_s26 + $0x148] sm:$0xff] }
 0x190   : > { %847 = vmatpush.msra.mxu1 %v708_v26  ;;  %v6832_v26 = vld [vmem:[%s12840_s26 + $0x138] sm:$0xff] }
 0x191   : > { %v750_v54 = vpop.f32.mrf.mxu0 }
 0x192   : > { %848 = vmatpush.msra.mxu1 %v705_v24  ;;  %v10826_v24 = vld [vmem:[#allocation2 + $0x40] sm:$0xff] }
 0x194   : > { %6822 = vmatmul.msk.f32.gmra.mxu0 %vm567_vm0, %v562_v55  ;;  %849 = vmatpush.msra.mxu1 %v10710_v22  ;;  %v10818_v22 = vld [vmem:[#allocation2 + $0x50] sm:$0x1] }
 0x196   : > { %850 = vmatpush.msra.mxu1 %v10704_v20  ;;  %v10810_v20 = vld [vmem:[#allocation2 + $0x38] sm:$0xff] }
 0x198   : > { %851 = vmatpush.msra.mxu1 %v10698_v18 }
 0x199   : > { %v753_v56 = vpop.f32.mrf.mxu0  ;;  %852 = vmatmul.f32.vlgmr.msra.gmra.mxu1 %v10791_v11 }
 0x19c   : > { %6823 = vmatmul.msk.f32.gmra.mxu0 %vm567_vm0, %v563_v57 }
 0x1a1   : > { %v756_v58 = vpop.f32.mrf.mxu0  ;;  %855 = vmatmul.f32.gmra.mxu1 %v10794_v13 }
 0x1a4   : > { %6824 = vmatmul.msk.f32.gmra.mxu0 %vm567_vm0, %v564_v59 }
 0x1a9   : > { %v759_v60 = vpop.f32.mrf.mxu0  ;;  %858 = vmatmul.f32.gmra.mxu1 %v10800_v16 }
 0x1b1   : > { %v762_v61 = vpop.f32.mrf.mxu0  ;;  %861 = vmatmul.f32.gmra.mxu1 %v10807_v19 }
 0x1b9   : > { %v765_v62 = vpop.f32.mrf.mxu0 }
 0x1c1   : > { %v768_v63 = vpop.f32.mrf.mxu0 }
 0x1c9   : > { %v771_v2 = vpop.f32.mrf.mxu0 }
 0x1d1   : > { %v774_v3 = vpop.f32.mrf.mxu0 }
 0x1d9   : > { %v777_v4 = vpop.f32.mrf.mxu0 }
 0x1e1   : > { %v780_v5 = vpop.f32.mrf.mxu0 }
 0x1e9   : > { %v783_v6 = vpop.f32.mrf.mxu0 }
 0x1f1   : > { %v786_v7 = vpop.f32.mrf.mxu0 }
 0x1f9   : > { %v789_v8 = vpop.f32.mrf.mxu0 }
 0x1fa   : > { %865 = vmatpush.msra.mxu2 %v789_v8  ;;  %v6855_v8 = vld [vmem:[%s12840_s26 + $0x1f0] sm:$0xff] }
 0x1fc   : > { %866 = vmatpush.msra.mxu2 %v786_v7 }
 0x1fe   : > { %867 = vmatpush.msra.mxu2 %v783_v6  ;;  %v6854_v6 = vld [vmem:[%s12840_s26 + $0x1e8] sm:$0xff] }
 0x200   : > { %868 = vmatpush.msra.mxu2 %v780_v5 }
 0x201   : > { %v792_v9 = vpop.f32.mrf.mxu0 }
 0x202   : > { %869 = vmatpush.msra.mxu2 %v777_v4  ;;  %v6853_v4 = vld [vmem:[%s12840_s26 + $0x1e0] sm:$0xff] }
 0x204   : > { %870 = vmatpush.msra.mxu2 %v774_v3 }
 0x206   : > { %871 = vmatpush.msra.mxu2 %v771_v2  ;;  %v6852_v2 = vld [vmem:[%s12840_s26 + $0x1d8] sm:$0xff] }
 0x208   : > { %872 = vmatpush.msra.mxu2 %v768_v63 }
 0x209   : > { %v795_v10 = vpop.f32.mrf.mxu0 }
 0x20a   : > { %873 = vmatpush.msra.mxu2 %v765_v62  ;;  %v6851_v62 = vld [vmem:[%s12840_s26 + $0x1d0] sm:$0xff] }
 0x20c   : > { %874 = vmatpush.msra.mxu2 %v762_v61 }
 0x20e   : > { %875 = vmatpush.msra.mxu2 %v759_v60  ;;  %v6850_v60 = vld [vmem:[%s12840_s26 + $0x1c8] sm:$0xff] }
 0x210   : > { %876 = vmatpush.msra.mxu2 %v756_v58  ;;  %v6849_v58 = vld [vmem:[%s12840_s26 + $0x1c0] sm:$0xff] }
 0x211   : > { %v798_v12 = vpop.f32.mrf.mxu0 }
 0x212   : > { %877 = vmatpush.msra.mxu2 %v753_v56  ;;  %v6848_v56 = vld [vmem:[%s12840_s26 + $0x1b8] sm:$0xff] }
 0x214   : > { %878 = vmatpush.msra.mxu2 %v750_v54  ;;  %v6847_v54 = vld [vmem:[%s12840_s26 + $0x1b0] sm:$0xff] }
 0x216   : > { %879 = vmatpush.msra.mxu2 %v747_v52  ;;  %v10882_v36 = vpop.f32.mrf.mxu1  ;;  %v6846_v52 = vld [vmem:[%s12840_s26 + $0x1a8] sm:$0xff] }
 0x218   : > { %880 = vmatpush.msra.mxu2 %v744_v50  ;;  %v6845_v50 = vld [vmem:[%s12840_s26 + $0x1a0] sm:$0xff] }
 0x219   : > { %v801_v15 = vpop.f32.mrf.mxu0  ;;  %881 = vmatmul.f32.vlgmr.msra.gmra.mxu2 %v10797_v14 }
 0x21e   : > { %v10890_v39 = vpop.f32.mrf.mxu1 }
 0x221   : > { %v804_v18 = vpop.f32.mrf.mxu0  ;;  %884 = vmatmul.f32.gmra.mxu2 %v10803_v17 }
 0x222   : > { %6825 = vmatpush.msk.msra.mxu3 %vm832_vm1, %v804_v18 }
 0x224   : > { %906 = vmatpush.msra.mxu3 %v801_v15  ;;  %v6857_v15 = vld [vmem:[%s12840_s26 + $0x200] sm:$0xff] }
 0x226   : > { %907 = vmatpush.msra.mxu3 %v798_v12  ;;  %v859_v45 = vpop.f32.mrf.mxu1 }
 0x228   : > { %908 = vmatpush.msra.mxu3 %v795_v10  ;;  %v6856_v10 = vld [vmem:[%s12840_s26 + $0x1f8] sm:$0xff] }
 0x229   : > { %887 = vmatmul.f32.gmra.mxu2 %v10810_v20 }
 0x22a   : > { %909 = vmatpush.msra.mxu3 %v792_v9 }
 0x22b   : > { %6826 = vmatmul.msk.f32.vlgmr.msra.gmra.mxu3 %vm819_vm2, %v10812_v21 }
 0x22c   : > { %1106 = vmatpush.msrb.mxu3 %v10628_v0  ;;  %v6830_v0 = vld [vmem:[%s12840_s26 + $0x128] sm:$0xff] }
 0x22e   : > { %1107 = vmatpush.msrb.mxu3 %v10630_v1  ;;  %v6831_v1 = vld [vmem:[%s12840_s26 + $0x130] sm:$0xff] }
 0x231   : > { %890 = vmatmul.f32.gmra.mxu2 %v10818_v22 }
 0x233   : > { %6827 = vmatmul.msk.f32.gmra.mxu3 %vm819_vm2, %v10821_v23 }
 0x23b   : > { %6828 = vmatmul.msk.f32.gmra.mxu3 %vm819_vm2, %v10826_v24 }
 0x243   : > { %6829 = vmatmul.msk.f32.gmra.mxu3 %vm819_vm2, %v10830_v25 }
 0x24b   : > { %6867 = vmatmul.msk.f32.vlgmr.msrb.gmra.mxu3 %vm567_vm0, %v6830_v0  ;;  %v6858_v0 = vld [vmem:[%s12840_s26 + $0x208] sm:$0xff] }
 0x253   : > { %6868 = vmatmul.msk.f32.gmra.mxu3 %vm567_vm0, %v6831_v1 }
 0x25b   : > { %6869 = vmatmul.msk.f32.gmra.mxu3 %vm567_vm0, %v6832_v26  ;;  %v6859_v26 = vld [vmem:[%s12840_s26 + $0x210] sm:$0xff] }
 0x263   : > { %6870 = vmatmul.msk.f32.gmra.mxu3 %vm567_vm0, %v6833_v27 }
 0x26b   : > { %6871 = vmatmul.msk.f32.gmra.mxu3 %vm567_vm0, %v6834_v28  ;;  %v6860_v28 = vld [vmem:[%s12840_s26 + $0x218] sm:$0xff] }
 0x273   : > { %6872 = vmatmul.msk.f32.gmra.mxu3 %vm567_vm0, %v6835_v29 }
 0x27b   : > { %6873 = vmatmul.msk.f32.gmra.mxu3 %vm567_vm0, %v6836_v30  ;;  %v6861_v30 = vld [vmem:[%s12840_s26 + $0x220] sm:$0xff] }
 0x283   : > { %6874 = vmatmul.msk.f32.gmra.mxu3 %vm567_vm0, %v6837_v31 }
 0x28b   : > { %6875 = vmatmul.msk.f32.gmra.mxu3 %vm567_vm0, %v6838_v32  ;;  %v6862_v32 = vld [vmem:[%s12840_s26 + $0x228] sm:$0xff] }
 0x293   : > { %6876 = vmatmul.msk.f32.gmra.mxu3 %vm567_vm0, %v6839_v33 }
 0x29b   : > { %6877 = vmatmul.msk.f32.gmra.mxu3 %vm567_vm0, %v6840_v34  ;;  %v6863_v34 = vld [vmem:[%s12840_s26 + $0x230] sm:$0xff] }
 0x29c   : > { %v10884_v37 = vpop.f32.mrf.mxu2 }
 0x2a3   : > { %6878 = vmatmul.msk.f32.gmra.mxu3 %vm567_vm0, %v6841_v35 }
 0x2a4   : > { %v10894_v41 = vpop.f32.mrf.mxu2 }
 0x2ab   : > { %6879 = vmatmul.msk.f32.gmra.mxu3 %vm567_vm0, %v6842_v38  ;;  %v6864_v38 = vld [vmem:[%s12840_s26 + $0x238] sm:$0xff] }
 0x2ac   : > { %v888_v46 = vpop.f32.mrf.mxu2 }
 0x2ad   : > { %v889_v47 = vadd.f32 %v888_v46, %v859_v45  ;;  %v6866_v46 = vld [vmem:[%s12840_s26 + $0x248] sm:$0x1] }
 0x2ae   : > { %v10892_v40 = vpop.f32.mrf.mxu3 }
 0x2b3   : > { %6880 = vmatmul.msk.f32.gmra.mxu3 %vm567_vm0, %v6843_v42 }
 0x2b6   : > { %v10900_v43 = vpop.f32.mrf.mxu3 }
 0x2bb   : > { %6881 = vmatmul.msk.f32.gmra.mxu3 %vm567_vm0, %v6844_v44  ;;  %v6865_v44 = vld [vmem:[%s12840_s26 + $0x240] sm:$0xff] }
 0x2be   : > { %v917_v48 = vpop.f32.mrf.mxu3 }
 0x2bf   : > { %v10906_v49 = vadd.f32 %v917_v48, %v889_v47 }
 0x2c3   : > { %6882 = vmatmul.msk.f32.gmra.mxu3 %vm567_vm0, %v6845_v50 }
 0x2c6   : > { %v10912_v51 = vpop.f32.mrf.mxu3 }
 0x2cb   : > { %6883 = vmatmul.msk.f32.gmra.mxu3 %vm567_vm0, %v6846_v52 }
 0x2ce   : > { %v10918_v53 = vpop.f32.mrf.mxu3 }
 0x2d3   : > { %6884 = vmatmul.msk.f32.gmra.mxu3 %vm567_vm0, %v6847_v54 }
 0x2d6   : > { %v10924_v55 = vpop.f32.mrf.mxu3 }
 0x2db   : > { %6885 = vmatmul.msk.f32.gmra.mxu3 %vm567_vm0, %v6848_v56 }
 0x2de   : > { %v1115_v57 = vpop.f32.mrf.mxu3 }
 0x2e3   : > { %6886 = vmatmul.msk.f32.gmra.mxu3 %vm567_vm0, %v6849_v58 }
 0x2e6   : > { %v1118_v59 = vpop.f32.mrf.mxu3 }
 0x2eb   : > { %6887 = vmatmul.msk.f32.gmra.mxu3 %vm567_vm0, %v6850_v60 }
 0x2ee   : > { %v1121_v61 = vpop.f32.mrf.mxu3 }
 0x2f3   : > { %6888 = vmatmul.msk.f32.gmra.mxu3 %vm567_vm0, %v6851_v62  ;;  %v6995_v62 = vld [vmem:[%s10622_s30 + $0xa8] sm:$0xf] }
 0x2f6   : > { %v1124_v63 = vpop.f32.mrf.mxu3 }
 0x2fb   : > { %6889 = vmatmul.msk.f32.gmra.mxu3 %vm567_vm0, %v6852_v2 }
 0x2fe   : > { %v1127_v3 = vpop.f32.mrf.mxu3 }
 0x303   : > { %6890 = vmatmul.msk.f32.gmra.mxu3 %vm567_vm0, %v6853_v4  ;;  %v9334_v4 = vld [vmem:[%s10622_s30 + $0x98] sm:$0xf0] }
 0x306   : > { %v1130_v5 = vpop.f32.mrf.mxu3 }
 0x30b   : > { %6891 = vmatmul.msk.f32.gmra.mxu3 %vm567_vm0, %v6854_v6 }
 0x30e   : > { %v1133_v7 = vpop.f32.mrf.mxu3 }
 0x313   : > { %6892 = vmatmul.msk.f32.gmra.mxu3 %vm567_vm0, %v6855_v8  ;;  %v8243_v8 = vld [vmem:[%s10622_s30 + $0xa68] sm:$0xf] }
 0x316   : > { %v1136_v9 = vpop.f32.mrf.mxu3 }
 0x31b   : > { %6893 = vmatmul.msk.f32.gmra.mxu3 %vm567_vm0, %v6856_v10 }
 0x31e   : > { %v1139_v12 = vpop.f32.mrf.mxu3 }
 0x323   : > { %6894 = vmatmul.msk.f32.gmra.mxu3 %vm567_vm0, %v6857_v15 }
 0x326   : > { %v1142_v18 = vpop.f32.mrf.mxu3 }
 0x32b   : > { %6895 = vmatmul.msk.f32.gmra.mxu3 %vm567_vm0, %v6858_v0  ;;  %v8231_v0 = vld [vmem:[%s10622_s30 + $0xa50] sm:$0xf] }
 0x32e   : > { %v1145_v1 = vpop.f32.mrf.mxu3 }
 0x333   : > { %6896 = vmatmul.msk.f32.gmra.mxu3 %vm567_vm0, %v6859_v26 }
 0x336   : > { %v1148_v27 = vpop.f32.mrf.mxu3 }
 0x33b   : > { %6897 = vmatmul.msk.f32.gmra.mxu3 %vm567_vm0, %v6860_v28  ;;  %v9328_v28 = vld [vmem:[%s10622_s30 + $0x68] sm:$0xf0] }
 0x33e   : > { %v1151_v29 = vpop.f32.mrf.mxu3 }
 0x343   : > { %6898 = vmatmul.msk.f32.gmra.mxu3 %vm567_vm0, %v6861_v30 }
 0x346   : > { %v1154_v31 = vpop.f32.mrf.mxu3 }
 0x347   : > { %1223 = vmatpush.msrb.mxu1 %v1154_v31  ;;  %v8219_v31 = vld [vmem:[%s10622_s30 + $0xa38] sm:$0xf] }
 0x349   : > { %1224 = vmatpush.msrb.mxu1 %v1151_v29  ;;  %v8627_v29 = vld [vmem:[%s10622_s30 + $0xd68] sm:$0xf] }
 0x34b   : > { %6899 = vmatmul.msk.f32.gmra.mxu3 %vm567_vm0, %v6862_v32  ;;  %1225 = vmatpush.msrb.mxu1 %v1148_v27  ;;  %v6959_v27 = vld [vmem:[%s10622_s30 + $0x60] sm:$0xf]  ;;  %v9643_v32 = vld [vmem:[%s10622_s30 + $0xa40] sm:$0xf0] }
 0x34d   : > { %1226 = vmatpush.msrb.mxu1 %v1145_v1  ;;  %v9646_v1 = vld [vmem:[%s10622_s30 + $0xa58] sm:$0xf0] }
 0x34e   : > { %v1157_v33 = vpop.f32.mrf.mxu3 }
 0x34f   : > { %1227 = vmatpush.msrb.mxu1 %v1142_v18  ;;  %v9358_v18 = vld [vmem:[%s10622_s30 + $0x158] sm:$0xf0] }
 0x351   : > { %1228 = vmatpush.msrb.mxu1 %v1139_v12  ;;  %v7079_v12 = vld [vmem:[%s10622_s30 + $0x150] sm:$0xf] }
 0x352   : > { %v7080_v30 = vor.u32 %v9358_v18, %v7079_v12  ;;  %v6911_v12 = vld [vmem:[%s10622_s30] sm:$0xf] }
 0x353   : > { %6900 = vmatmul.msk.f32.gmra.mxu3 %vm567_vm0, %v6863_v34  ;;  %1229 = vmatpush.msrb.mxu1 %v1136_v9  ;;  %v9649_v9 = vld [vmem:[%s10622_s30 + $0xa70] sm:$0xf0]  ;;  %v7067_v34 = vld [vmem:[%s10622_s30 + $0x138] sm:$0xf] }
 0x354   : > { %v8244_v15 = vor.u32 %v9649_v9, %v8243_v8  ;;  %v7031_v8 = vld [vmem:[%s10622_s30 + $0xf0] sm:$0xf]  ;;  %v9346_v9 = vld [vmem:[%s10622_s30 + $0xf8] sm:$0xf0] }
 0x355   : > { %1230 = vmatpush.msrb.mxu1 %v1133_v7  ;;  %v6971_v7 = vld [vmem:[%s10622_s30 + $0x78] sm:$0xf] }
 0x356   : > { %v1160_v35 = vpop.f32.mrf.mxu3  ;;  %5649 = vmatpush.bf16.msrb.mxu0 %v8244_v15  ;;  %v9316_v15 = vld [vmem:[%s10622_s30 + $0x8] sm:$0xf0] }
 0x357   : > { %1231 = vmatpush.msrb.mxu1 %v1130_v5  ;;  %v7091_v5 = vld [vmem:[%s10622_s30 + $0x168] sm:$0xf] }
 0x359   : > { %1232 = vmatpush.msrb.mxu1 %v1127_v3  ;;  %v6983_v3 = vld [vmem:[%s10622_s30 + $0x90] sm:$0xf] }
 0x35a   : > { %v6984_v6 = vor.u32 %v9334_v4, %v6983_v3  ;;  %v6923_v3 = vld [vmem:[%s10622_s30 + $0x18] sm:$0xf]  ;;  %v9319_v4 = vld [vmem:[%s10622_s30 + $0x20] sm:$0xf0] }
 0x35b   : > { %6901 = vmatmul.msk.f32.gmra.mxu3 %vm567_vm0, %v6864_v38  ;;  %1233 = vmatpush.msrb.mxu1 %v1124_v63  ;;  %v9337_v63 = vld [vmem:[%s10622_s30 + $0xb0] sm:$0xf0]  ;;  %v6960_v38 = vor.u32 %v9328_v28, %v6959_v27  ;;  %v7019_v27 = vld [vmem:[%s10622_s30 + $0xd8] sm:$0xf]  ;;  %v9343_v28 = vld [vmem:[%s10622_s30 + $0xe0] sm:$0xf0] }
 0x35c   : > { %v6996_v2 = vor.u32 %v9337_v63, %v6995_v62  ;;  %v9349_v62 = vld [vmem:[%s10622_s30 + $0x110] sm:$0xf0]  ;;  %v8591_v63 = vld [vmem:[%s10622_s30 + $0xd20] sm:$0xf] }
 0x35d   : > { %1234 = vmatpush.msrb.mxu1 %v1121_v61 }
 0x35e   : > { %v1163_v42 = vpop.f32.mrf.mxu3 }
 0x35f   : > { %1235 = vmatpush.msrb.mxu1 %v1118_v59 }
 0x361   : > { %1236 = vmatpush.msrb.mxu1 %v1115_v57 }
 0x363   : > { %6902 = vmatmul.msk.f32.gmra.mxu3 %vm567_vm0, %v6865_v44  ;;  %1237 = vmatpush.msrb.mxu1 %v10924_v55  ;;  %v9742_v44 = vld [vmem:[%s10622_s30 + $0xd58] sm:$0xf0] }
 0x365   : > { %1238 = vmatpush.msrb.mxu1 %v10918_v53 }
 0x366   : > { %v1166_v45 = vpop.f32.mrf.mxu3  ;;  %1239 = vmatmul.f32.vlgmr.msrb.gmra.mxu1 %v10791_v11 }
 0x36b   : > { %6903 = vmatmul.msk.f32.gmra.mxu3 %vm567_vm0, %v6866_v46  ;;  %v9325_v46 = vld [vmem:[%s10622_s30 + $0x50] sm:$0xf0] }
 0x36e   : > { %v1169_v47 = vpop.f32.mrf.mxu3  ;;  %1242 = vmatmul.f32.gmra.mxu1 %v10794_v13 }
 0x376   : > { %v1172_v48 = vpop.f32.mrf.mxu3  ;;  %1245 = vmatmul.f32.gmra.mxu1 %v10800_v16 }
 0x37e   : > { %v1175_v50 = vpop.f32.mrf.mxu3  ;;  %1248 = vmatmul.f32.gmra.mxu1 %v10807_v19 }
 0x386   : > { %v1178_v52 = vpop.f32.mrf.mxu3 }
 0x38e   : > { %v1181_v53 = vpop.f32.mrf.mxu3 }
 0x396   : > { %v1184_v54 = vpop.f32.mrf.mxu3 }
 0x39e   : > { %v1187_v55 = vpop.f32.mrf.mxu3 }
 0x3a6   : > { %v1190_v11 = vpop.f32.mrf.mxu3 }
 0x3ae   : > { %v1193_v56 = vpop.f32.mrf.mxu3 }
 0x3b6   : > { %v1196_v57 = vpop.f32.mrf.mxu3 }
 0x3be   : > { %v1199_v58 = vpop.f32.mrf.mxu3 }
 0x3c6   : > { %v1202_v59 = vpop.f32.mrf.mxu3 }
 0x3c7   : > { %1252 = vmatpush.msrb.mxu2 %v1202_v59  ;;  %v9322_v59 = vld [vmem:[%s10622_s30 + $0x38] sm:$0xf0] }
 0x3c9   : > { %1253 = vmatpush.msrb.mxu2 %v1199_v58  ;;  %v6935_v58 = vld [vmem:[%s10622_s30 + $0x30] sm:$0xf] }
 0x3cb   : > { %1254 = vmatpush.msrb.mxu2 %v1196_v57 }
 0x3cd   : > { %1255 = vmatpush.msrb.mxu2 %v1193_v56  ;;  %v9739_v56 = vld [vmem:[%s10622_s30 + $0xd40] sm:$0xf0] }
 0x3ce   : > { %v1205_v13 = vpop.f32.mrf.mxu3 }
 0x3cf   : > { %1256 = vmatpush.msrb.mxu2 %v1190_v11  ;;  %v8603_v11 = vld [vmem:[%s10622_s30 + $0xd38] sm:$0xf] }
 0x3d1   : > { %1257 = vmatpush.msrb.mxu2 %v1187_v55  ;;  %v9352_v55 = vld [vmem:[%s10622_s30 + $0x128] sm:$0xf0] }
 0x3d3   : > { %1258 = vmatpush.msrb.mxu2 %v1184_v54 }
 0x3d5   : > { %1259 = vmatpush.msrb.mxu2 %v1181_v53  ;;  %v9640_v53 = vld [vmem:[%s10622_s30 + $0xa28] sm:$0xf0] }
 0x3d6   : > { %v1208_v16 = vpop.f32.mrf.mxu3 }
 0x3d7   : > { %1260 = vmatpush.msrb.mxu2 %v1178_v52  ;;  %v8207_v52 = vld [vmem:[%s10622_s30 + $0xa20] sm:$0xf] }
 0x3d9   : > { %1261 = vmatpush.msrb.mxu2 %v1175_v50  ;;  %v7055_v50 = vld [vmem:[%s10622_s30 + $0x120] sm:$0xf] }
 0x3db   : > { %1262 = vmatpush.msrb.mxu2 %v1172_v48 }
 0x3dd   : > { %1263 = vmatpush.msrb.mxu2 %v1169_v47  ;;  %v8220_v47 = vor.u32 %v9643_v32, %v8219_v31  ;;  %v9340_v31 = vld [vmem:[%s10622_s30 + $0xc8] sm:$0xf0]  ;;  %v7283_v32 = vld [vmem:[%s10622_s30 + $0x2e8] sm:$0xf] }
 0x3de   : > { %v1211_v19 = vpop.f32.mrf.mxu3 }
 0x3df   : > { %1264 = vmatpush.msrb.mxu2 %v1166_v45  ;;  %v6947_v45 = vld [vmem:[%s10622_s30 + $0x48] sm:$0xf] }
 0x3e0   : > { %v6948_v57 = vor.u32 %v9325_v46, %v6947_v45  ;;  %v9733_v46 = vld [vmem:[%s10622_s30 + $0xd10] sm:$0xf0] }
 0x3e1   : > { %1265 = vmatpush.msrb.mxu2 %v1163_v42  ;;  %v8615_v42 = vld [vmem:[%s10622_s30 + $0xd50] sm:$0xf] }
 0x3e2   : > { %v8616_v54 = vor.u32 %v9742_v44, %v8615_v42  ;;  %v9631_v42 = vld [vmem:[%s10622_s30 + $0x9e0] sm:$0xf0]  ;;  %v8579_v44 = vld [vmem:[%s10622_s30 + $0xd08] sm:$0xf] }
 0x3e3   : > { %1266 = vmatpush.msrb.mxu2 %v1160_v35  ;;  %v9355_v35 = vld [vmem:[%s10622_s30 + $0x140] sm:$0xf0] }
 0x3e4   : > { %v7068_v48 = vor.u32 %v9355_v35, %v7067_v34 }
 0x3e5   : > { %1267 = vmatpush.msrb.mxu2 %v1157_v33  ;;  %v9745_v33 = vld [vmem:[%s10622_s30 + $0xd70] sm:$0xf0] }
 0x3e6   : > { %v1214_v60 = vpop.f32.mrf.mxu3  ;;  %1268 = vmatmul.f32.vlgmr.msrb.gmra.mxu2 %v10797_v14  ;;  %v9361_v14 = vld [vmem:[%s10622_s30 + $0x170] sm:$0xf0] }
 0x3e7   : > { %5480 = vmatpush.bf16.msra.mxu2 %v6996_v2  ;;  %v7092_v10 = vor.u32 %v9361_v14, %v7091_v5  ;;  %v6936_v2 = vor.u32 %v9322_v59, %v6935_v58  ;;  %v9730_v58 = vld [vmem:[%s10622_s30 + $0xcf8] sm:$0xf0]  ;;  %v7163_v59 = vld [vmem:[%s10622_s30 + $0x1f8] sm:$0xf] }
 0x3eb   : > { %5481 = vmatpush.bf16.msra.mxu2 %v6984_v6  ;;  %v8183_v6 = vld [vmem:[%s10622_s30 + $0x9f0] sm:$0xf] }
 0x3ee   : > { %v1217_v61 = vpop.f32.mrf.mxu3  ;;  %1271 = vmatmul.f32.gmra.mxu2 %v10803_v17  ;;  %v9331_v17 = vld [vmem:[%s10622_s30 + $0x80] sm:$0xf0] }
 0x3ef   : > { %6904 = vmatpush.msk.msra.mxu1 %vm832_vm1, %v1217_v61  ;;  %v6972_v26 = vor.u32 %v9331_v17, %v6971_v7  ;;  %v8604_v61 = vor.u32 %v9739_v56, %v8603_v11  ;;  %v9634_v7 = vld [vmem:[%s10622_s30 + $0x9f8] sm:$0xf0]  ;;  %v9628_v11 = vld [vmem:[%s10622_s30 + $0x9c8] sm:$0xf0]  ;;  %v8567_v56 = vld [vmem:[%s10622_s30 + $0xcf0] sm:$0xf] }
 0x3f0   : > { %v8184_v18 = vor.u32 %v9634_v7, %v8183_v6  ;;  %v9376_v6 = vld [vmem:[%s10622_s30 + $0x1e8] sm:$0xf0]  ;;  %v7247_v7 = vld [vmem:[%s10622_s30 + $0x2a0] sm:$0xf] }
 0x3f1   : > { %1293 = vmatpush.msra.mxu1 %v1214_v60  ;;  %5482 = vmatpush.bf16.msra.mxu2 %v6972_v26  ;;  %v9637_v60 = vld [vmem:[%s10622_s30 + $0xa10] sm:$0xf0] }
 0x3f2   : > { %v9385_v26 = vld [vmem:[%s10622_s30 + $0x230] sm:$0xf0] }
 0x3f3   : > { %1294 = vmatpush.msra.mxu1 %v1211_v19  ;;  %v8195_v19 = vld [vmem:[%s10622_s30 + $0xa08] sm:$0xf] }
 0x3f4   : > { %v8196_v5 = vor.u32 %v9637_v60, %v8195_v19  ;;  %v7259_v19 = vld [vmem:[%s10622_s30 + $0x2b8] sm:$0xf]  ;;  %v9403_v60 = vld [vmem:[%s10622_s30 + $0x2c0] sm:$0xf0] }
 0x3f5   : > { %1295 = vmatpush.msra.mxu1 %v1208_v16  ;;  %5483 = vmatpush.bf16.msra.mxu2 %v6960_v38  ;;  %v7043_v16 = vld [vmem:[%s10622_s30 + $0x108] sm:$0xf]  ;;  %v8171_v38 = vld [vmem:[%s10622_s30 + $0x9d8] sm:$0xf] }
 0x3f6   : > { %1274 = vmatmul.f32.gmra.mxu2 %v10810_v20  ;;  %v8232_v20 = vor.u32 %v9646_v1, %v8231_v0  ;;  %v7044_v14 = vor.u32 %v9349_v62, %v7043_v16  ;;  %v7032_v0 = vor.u32 %v9346_v9, %v7031_v8  ;;  %v7187_v1 = vld [vmem:[%s10622_s30 + $0x228] sm:$0xf]  ;;  %v8172_v45 = vor.u32 %v9631_v42, %v8171_v38  ;;  %v9400_v8 = vld [vmem:[%s10622_s30 + $0x2a8] sm:$0xf0]  ;;  %v8519_v9 = vld [vmem:[%s10622_s30 + $0xc90] sm:$0xf] }
 0x3f7   : > { %1296 = vmatpush.msra.mxu1 %v1205_v13  ;;  %v8208_v13 = vor.u32 %v9640_v53, %v8207_v52  ;;  %v7271_v52 = vld [vmem:[%s10622_s30 + $0x2d0] sm:$0xf]  ;;  %v9406_v53 = vld [vmem:[%s10622_s30 + $0x2d8] sm:$0xf0] }
 0x3f8   : > { %6905 = vmatmul.msk.f32.vlgmr.msra.gmra.mxu1 %vm819_vm2, %v10812_v21  ;;  %v8628_v21 = vor.u32 %v9745_v33, %v8627_v29  ;;  %5650 = vmatpush.bf16.msrb.mxu0 %v8232_v20  ;;  %v6912_v20 = vor.u32 %v9316_v15, %v6911_v12  ;;  %v7188_v29 = vor.u32 %v9385_v26, %v7187_v1  ;;  %v9409_v33 = vld [vmem:[%s10622_s30 + $0x2f0] sm:$0xf0]  ;;  %v7139_v26 = vld [vmem:[%s10622_s30 + $0x1c8] sm:$0xf]  ;;  %v7127_v42 = vld [vmem:[%s10622_s30 + $0x1b0] sm:$0xf] }
 0x3f9   : > { %5493 = vmatpush.bf16.msrb.mxu1 %v7092_v10  ;;  %5484 = vmatpush.bf16.msra.mxu2 %v6948_v57  ;;  %v6924_v10 = vor.u32 %v9319_v4, %v6923_v3  ;;  %v7284_v35 = vor.u32 %v9409_v33, %v7283_v32  ;;  %v8555_v3 = vld [vmem:[%s10622_s30 + $0xcd8] sm:$0xf]  ;;  %v9727_v4 = vld [vmem:[%s10622_s30 + $0xce0] sm:$0xf0]  ;;  %v7248_v12 = vor.u32 %v9400_v8, %v7247_v7  ;;  %v9011_v33 = vld [vmem:[%s10622_s30 + $0x1068] sm:$0xf] }
 0x3fa   : > { %5701 = vmatpush.bf16.msra.mxu3 %v8628_v21  ;;  %v11077_v21 = vpop.f32.mrf.mxu1 }
 0x3fc   : > { %5651 = vmatpush.bf16.msrb.mxu0 %v8220_v47  ;;  %v9382_v47 = vld [vmem:[%s10622_s30 + $0x218] sm:$0xf0] }
 0x3fd   : > { %5494 = vmatpush.bf16.msrb.mxu1 %v7080_v30  ;;  %5485 = vmatpush.bf16.msra.mxu2 %v6936_v2  ;;  %v7007_v30 = vld [vmem:[%s10622_s30 + $0xc0] sm:$0xf] }
 0x3fe   : > { %1277 = vmatmul.f32.gmra.mxu2 %v10818_v22  ;;  %v7056_v22 = vor.u32 %v9352_v55, %v7055_v50  ;;  %5702 = vmatpush.bf16.msra.mxu3 %v8616_v54  ;;  %v7008_v34 = vor.u32 %v9340_v31, %v7007_v30  ;;  %v7272_v54 = vor.u32 %v9406_v53, %v7271_v52  ;;  %v8159_v55 = vld [vmem:[%s10622_s30 + $0x9c0] sm:$0xf]  ;;  %v9715_v30 = vld [vmem:[%s10622_s30 + $0xc80] sm:$0xf0]  ;;  %v8999_v53 = vld [vmem:[%s10622_s30 + $0x1050] sm:$0xf] }
 0x3ff   : > { %v8160_v57 = vor.u32 %v9628_v11, %v8159_v55  ;;  %v7115_v11 = vld [vmem:[%s10622_s30 + $0x198] sm:$0xf] }
 0x400   : > { %6906 = vmatmul.msk.f32.gmra.mxu1 %vm819_vm2, %v10821_v23  ;;  %v9736_v23 = vld [vmem:[%s10622_s30 + $0xd28] sm:$0xf0]  ;;  %5652 = vmatpush.bf16.msrb.mxu0 %v8208_v13  ;;  %v9379_v13 = vld [vmem:[%s10622_s30 + $0x200] sm:$0xf0] }
 0x401   : > { %5495 = vmatpush.bf16.msrb.mxu1 %v7068_v48  ;;  %v8592_v17 = vor.u32 %v9736_v23, %v8591_v63  ;;  %5486 = vmatpush.bf16.msra.mxu2 %v6924_v10  ;;  %v8580_v48 = vor.u32 %v9733_v46, %v8579_v44  ;;  %v7164_v16 = vor.u32 %v9379_v13, %v7163_v59  ;;  %v9721_v23 = vld [vmem:[%s10622_s30 + $0xcb0] sm:$0xf0]  ;;  %v9718_v10 = vld [vmem:[%s10622_s30 + $0xc98] sm:$0xf0]  ;;  %v9391_v59 = vld [vmem:[%s10622_s30 + $0x260] sm:$0xf0] }
 0x402   : > { %5703 = vmatpush.bf16.msra.mxu3 %v8604_v61  ;;  %v8531_v61 = vld [vmem:[%s10622_s30 + $0xca8] sm:$0xf]  ;;  %v11096_v62 = vpop.f32.mrf.mxu1  ;;  %v7260_v63 = vor.u32 %v9403_v60, %v7259_v19  ;;  %v8520_v15 = vor.u32 %v9718_v10, %v8519_v9  ;;  %v9370_v44 = vld [vmem:[%s10622_s30 + $0x1b8] sm:$0xf0]  ;;  %v8987_v60 = vld [vmem:[%s10622_s30 + $0x1038] sm:$0xf] }
 0x403   : > { %v8532_v2 = vor.u32 %v9721_v23, %v8531_v61  ;;  %v7128_v46 = vor.u32 %v9370_v44, %v7127_v42  ;;  %v8483_v13 = vld [vmem:[%s10622_s30 + $0xc48] sm:$0xf]  ;;  %v9835_v61 = vld [vmem:[%s10622_s30 + $0x1040] sm:$0xf0]  ;;  %v7103_v23 = vld [vmem:[%s10622_s30 + $0x180] sm:$0xf] }
 0x404   : > { %5653 = vmatpush.bf16.msrb.mxu0 %v8196_v5  ;;  %v8556_v5 = vor.u32 %v9727_v4, %v8555_v3  ;;  %v7199_v3 = vld [vmem:[%s10622_s30 + $0x240] sm:$0xf]  ;;  %v9832_v10 = vld [vmem:[%s10622_s30 + $0x1028] sm:$0xf0]  ;;  %v11160_v42 = vld [vmem:[#allocation7] ss:$0 sm:$0xff] }
 0x405   : > { %5496 = vmatpush.bf16.msrb.mxu1 %v7056_v22  ;;  %5487 = vmatpush.bf16.msra.mxu2 %v6912_v20  ;;  %v8568_v22 = vor.u32 %v9730_v58, %v8567_v56  ;;  %v9367_v56 = vld [vmem:[%s10622_s30 + $0x1a0] sm:$0xf0]  ;;  %v8975_v9 = vld [vmem:[%s10622_s30 + $0x1020] sm:$0xf] }
 0x406   : > { %5704 = vmatpush.bf16.msra.mxu3 %v8592_v17  ;;  %v7116_v58 = vor.u32 %v9367_v56, %v7115_v11 }
 0x408   : > { %6907 = vmatmul.msk.f32.gmra.mxu1 %vm819_vm2, %v10826_v24  ;;  %5654 = vmatpush.bf16.msrb.mxu0 %v8184_v18  ;;  %v7020_v24 = vor.u32 %v9343_v28, %v7019_v27  ;;  %v8543_v18 = vld [vmem:[%s10622_s30 + $0xcc0] sm:$0xf]  ;;  %v9373_v27 = vld [vmem:[%s10622_s30 + $0x1d0] sm:$0xf0]  ;;  %v7235_v28 = vld [vmem:[%s10622_s30 + $0x288] sm:$0xf] }
 0x409   : > { %5497 = vmatpush.bf16.msrb.mxu1 %v7044_v14  ;;  %5506 = vmatpush.bf16.msrb.mxu2 %v7188_v29  ;;  %v7151_v14 = vld [vmem:[%s10622_s30 + $0x1e0] sm:$0xf]  ;;  %v7140_v20 = vor.u32 %v9373_v27, %v7139_v26  ;;  %v9397_v29 = vld [vmem:[%s10622_s30 + $0x290] sm:$0xf0] }
 0x40a   : > { %5705 = vmatpush.bf16.msra.mxu3 %v8580_v48  ;;  %v7152_v17 = vor.u32 %v9376_v6, %v7151_v14  ;;  %v7236_v31 = vor.u32 %v9397_v29, %v7235_v28  ;;  %v11117_v38 = vpop.f32.mrf.mxu1  ;;  %v9712_v48 = vld [vmem:[%s10622_s30 + $0xc68] sm:$0xf0]  ;;  %v8471_v14 = vld [vmem:[%s10622_s30 + $0xc30] sm:$0xf]  ;;  %v9706_v6 = vld [vmem:[%s10622_s30 + $0xc38] sm:$0xf0] }
 0x40b   : > { %v8472_v8 = vor.u32 %v9706_v6, %v8471_v14  ;;  %v9829_v27 = vld [vmem:[%s10622_s30 + $0x1010] sm:$0xf0]  ;;  %v9700_v29 = vld [vmem:[%s10622_s30 + $0xc08] sm:$0xf0] }
 0x40c   : > { %5655 = vmatpush.bf16.msrb.mxu0 %v8172_v45  ;;  %v7223_v45 = vld [vmem:[%s10622_s30 + $0x270] sm:$0xf] }
 0x40d   : > { %5498 = vmatpush.bf16.msrb.mxu1 %v7032_v0  ;;  %v9724_v0 = vld [vmem:[%s10622_s30 + $0xcc8] sm:$0xf0] }
 0x40e   : > { %5706 = vmatpush.bf16.msra.mxu3 %v8568_v22  ;;  %v8544_v1 = vor.u32 %v9724_v0, %v8543_v18  ;;  %v9709_v22 = vld [vmem:[%s10622_s30 + $0xc50] sm:$0xf0]  ;;  %v9703_v18 = vld [vmem:[%s10622_s30 + $0xc20] sm:$0xf0]  ;;  %v8963_v0 = vld [vmem:[%s10622_s30 + $0x1008] sm:$0xf] }
 0x40f   : > { %v8484_v19 = vor.u32 %v9709_v22, %v8483_v13  ;;  %v8964_v28 = vor.u32 %v9829_v27, %v8963_v0  ;;  %v7379_v13 = vld [vmem:[%s10622_s30 + $0x3a8] sm:$0xf]  ;;  %v9433_v22 = vld [vmem:[%s10622_s30 + $0x3b0] sm:$0xf0]  ;;  %v9454_v0 = vld [vmem:[%s10622_s30 + $0x458] sm:$0xf0] }
 0x410   : > { %6908 = vmatmul.msk.f32.gmra.mxu1 %vm819_vm2, %v10830_v25  ;;  %v7175_v25 = vld [vmem:[%s10622_s30 + $0x210] sm:$0xf]  ;;  %5656 = vmatpush.bf16.msrb.mxu0 %v8160_v57  ;;  %v7211_v57 = vld [vmem:[%s10622_s30 + $0x258] sm:$0xf] }
 0x411   : > { %5499 = vmatpush.bf16.msrb.mxu1 %v7020_v24  ;;  %v7176_v50 = vor.u32 %v9382_v47, %v7175_v25  ;;  %v8507_v24 = vld [vmem:[%s10622_s30 + $0xc78] sm:$0xf]  ;;  %v9394_v25 = vld [vmem:[%s10622_s30 + $0x278] sm:$0xf0]  ;;  %v8495_v47 = vld [vmem:[%s10622_s30 + $0xc60] sm:$0xf] }
 0x412   : > { %5707 = vmatpush.bf16.msra.mxu3 %v8556_v5  ;;  %v8508_v32 = vor.u32 %v9715_v30, %v8507_v24  ;;  %v8496_v52 = vor.u32 %v9712_v48, %v8495_v47  ;;  %v9388_v5 = vld [vmem:[%s10622_s30 + $0x248] sm:$0xf0]  ;;  %v11141_v7 = vpop.f32.mrf.mxu1  ;;  %v8951_v24 = vld [vmem:[%s10622_s30 + $0xff0] sm:$0xf]  ;;  %v883_v30 = vadd.f32 %v10884_v37, %v10882_v36  ;;  %v11165_v37 = vld [vmem:[#allocation8] ss:$0 sm:$0xff] }
 0x413   : > { %5507 = vmatpush.bf16.msrb.mxu2 %v7176_v50  ;;  %v7224_v50 = vor.u32 %v9394_v25, %v7223_v45  ;;  %v8939_v45 = vld [vmem:[%s10622_s30 + $0xfd8] sm:$0xf]  ;;  %v8927_v47 = vld [vmem:[%s10622_s30 + $0xfc0] sm:$0xf]  ;;  %v9820_v48 = vld [vmem:[%s10622_s30 + $0xfc8] sm:$0xf0] }
 0x414   : > { %5688 = vmatpush.bf16.msra.mxu0 %v8532_v2  ;;  %v9364_v2 = vld [vmem:[%s10622_s30 + $0x188] sm:$0xf0] }
 0x415   : > { %5500 = vmatpush.bf16.msrb.mxu1 %v7008_v34  ;;  %v9841_v34 = vld [vmem:[%s10622_s30 + $0x1070] sm:$0xf0]  ;;  %v7104_v4 = vor.u32 %v9364_v2, %v7103_v23 }
 0x416   : > { %5708 = vmatpush.bf16.msra.mxu3 %v8544_v1  ;;  %v11148_v1 = vpop.f32.mrf.mxu2 }
 0x417   : > { %5508 = vmatpush.bf16.msrb.mxu2 %v7164_v16  ;;  %v7212_v16 = vor.u32 %v9391_v59, %v7211_v57 }
 0x418   : > { %5689 = vmatpush.bf16.msra.mxu0 %v8520_v15  ;;  %v8459_v15 = vld [vmem:[%s10622_s30 + $0xc18] sm:$0xf] }
 0x419   : > { %5519 = vmatpush.bf16.msra.mxu1 %v7284_v35  ;;  %v9012_v35 = vor.u32 %v9841_v34, %v9011_v33  ;;  %v8460_v26 = vor.u32 %v9703_v18, %v8459_v15  ;;  %v9430_v15 = vld [vmem:[%s10622_s30 + $0x398] sm:$0xf0]  ;;  %v7463_v18 = vld [vmem:[%s10622_s30 + $0x450] sm:$0xf] }
 0x41a   : > { %v11157_v34 = vpop.f32.mrf.mxu1 }
 0x41b   : > { %5509 = vmatpush.bf16.msrb.mxu2 %v7152_v17  ;;  %5753 = vmatpush.bf16.msrb.mxu3 %v9012_v35  ;;  %v7200_v17 = vor.u32 %v9388_v5, %v7199_v3  ;;  %v912_v35 = vadd.f32 %v10892_v40, %v883_v30  ;;  %v7380_v3 = vor.u32 %v9433_v22, %v7379_v13 }
 0x41c   : > { %5690 = vmatpush.bf16.msra.mxu0 %v8508_v32  ;;  %v9826_v32 = vld [vmem:[%s10622_s30 + $0xff8] sm:$0xf0] }
 0x41d   : > { %5520 = vmatpush.bf16.msra.mxu1 %v7272_v54  ;;  %v9838_v54 = vld [vmem:[%s10622_s30 + $0x1058] sm:$0xf0]  ;;  %v8952_v33 = vor.u32 %v9826_v32, %v8951_v24  ;;  %v927_v36 = vmul.f32 %v11160_v42, %v912_v35  ;;  %v7355_v32 = vld [vmem:[%s10622_s30 + $0x378] sm:$0xf] }
 0x41e   : > { %v9000_v55 = vor.u32 %v9838_v54, %v8999_v53 }
 0x41f   : > { %5510 = vmatpush.bf16.msrb.mxu2 %v7140_v20  ;;  %v8447_v20 = vld [vmem:[%s10622_s30 + $0xc00] sm:$0xf]  ;;  %v935_v53 = vadd.f32 %v11165_v37, %v927_v36 }
 0x420   : > { %5691 = vmatpush.bf16.msra.mxu0 %v8496_v52  ;;  %5754 = vmatpush.bf16.msrb.mxu3 %v9000_v55  ;;  %v8928_v52 = vor.u32 %v9820_v48, %v8927_v47 }
 0x421   : > { %5521 = vmatpush.bf16.msra.mxu1 %v7260_v63  ;;  %v8988_v63 = vor.u32 %v9835_v61, %v8987_v60  ;;  %v7475_v60 = vld [vmem:[%s10622_s30 + $0x468] sm:$0xf]  ;;  %v9457_v61 = vld [vmem:[%s10622_s30 + $0x470] sm:$0xf0] }
 0x422   : > { %v7476_v6 = vor.u32 %v9457_v61, %v7475_v60 }
 0x423   : > { %5511 = vmatpush.bf16.msrb.mxu2 %v7128_v46  ;;  %v9823_v46 = vld [vmem:[%s10622_s30 + $0xfe0] sm:$0xf0] }
 0x424   : > { %5692 = vmatpush.bf16.msra.mxu0 %v8484_v19  ;;  %5755 = vmatpush.bf16.msrb.mxu3 %v8988_v63  ;;  %v8940_v25 = vor.u32 %v9823_v46, %v8939_v45  ;;  %v7451_v45 = vld [vmem:[%s10622_s30 + $0x438] sm:$0xf]  ;;  %v9451_v46 = vld [vmem:[%s10622_s30 + $0x440] sm:$0xf0] }
 0x425   : > { %5522 = vmatpush.bf16.msra.mxu1 %v7248_v12  ;;  %v8976_v12 = vor.u32 %v9832_v10, %v8975_v9 }
 0x427   : > { %5512 = vmatpush.bf16.msrb.mxu2 %v7116_v58  ;;  %v11175_v58 = vmax.f32 %v935_v53, 0.0 }
 0x428   : > { %5693 = vmatpush.bf16.msra.mxu0 %v8472_v8  ;;  %5756 = vmatpush.bf16.msrb.mxu3 %v8976_v12  ;;  %v929_v8 = vmul.f32 %v11160_v42, %v10906_v49 }
 0x429   : > { %5523 = vmatpush.bf16.msra.mxu1 %v7236_v31  ;;  %v8448_v31 = vor.u32 %v9700_v29, %v8447_v20  ;;  %v1327_v19 = vperm.slane %v11175_v58, 1  ;;  %v1328_v49 = vperm.slane %v11175_v58, 2  ;;  %v1330_v20 = vperm.slane %v11175_v58, 4 }
 0x42a   : > { %v937_v35 = vadd.f32 %v11165_v37, %v929_v8 }
 0x42b   : > { %5513 = vmatpush.bf16.msrb.mxu2 %v7104_v4 }
 0x42c   : > { %5694 = vmatpush.bf16.msra.mxu0 %v8460_v26  ;;  %5757 = vmatpush.bf16.msrb.mxu3 %v8964_v28  ;;  %v1329_v28 = vperm.slane %v11175_v58, 3  ;;  %v11234_v13 = vmax.f32 %v937_v35, 0.0 }
 0x42d   : > { %5524 = vmatpush.bf16.msra.mxu1 %v7224_v50  ;;  %v886_v50 = vadd.f32 %v10894_v41, %v10890_v39 }
 0x42f   : > { %v915_v55 = vadd.f32 %v10900_v43, %v886_v50  ;;  %v1326_v43 = vperm.slane %v11175_v58, 0  ;;  %v8915_v50 = vld [vmem:[%s10622_s30 + $0xfa8] sm:$0xf] }
 0x430   : > { %5695 = vmatpush.bf16.msra.mxu0 %v8448_v31  ;;  %5758 = vmatpush.bf16.msrb.mxu3 %v8952_v33  ;;  %v7464_v31 = vor.u32 %v9454_v0, %v7463_v18  ;;  %v9427_v33 = vld [vmem:[%s10622_s30 + $0x380] sm:$0xf0]  ;;  %v9421_v18 = vld [vmem:[%s10622_s30 + $0x350] sm:$0xf0]  ;;  %v7427_v0 = vld [vmem:[%s10622_s30 + $0x408] sm:$0xf] }
 0x431   : > { %5525 = vmatpush.bf16.msra.mxu1 %v7212_v16  ;;  %v928_v39 = vmul.f32 %v11160_v42, %v915_v55 }
 0x433   : > { %v936_v63 = vadd.f32 %v11165_v37, %v928_v39  ;;  %v7343_v39 = vld [vmem:[%s10622_s30 + $0x360] sm:$0xf] }
 0x434   : > { %5759 = vmatpush.bf16.msrb.mxu3 %v8940_v25  ;;  %v1331_v25 = vperm.slane %v11175_v58, 5 }
 0x435   : > { %5526 = vmatpush.bf16.msra.mxu1 %v7200_v17  ;;  %v7367_v17 = vld [vmem:[%s10622_s30 + $0x390] sm:$0xf]  ;;  %v11204_v26 = vmax.f32 %v936_v63, 0.0 }
 0x436   : > { %v7368_v30 = vor.u32 %v9430_v15, %v7367_v17  ;;  %v8903_v63 = vld [vmem:[%s10622_s30 + $0xf90] sm:$0xf] }
 0x437   : > { %v1339_v47 = vperm.slane %v11204_v26, 5  ;;  %v1334_v53 = vperm.slane %v11204_v26, 0  ;;  %v1336_v55 = vperm.slane %v11204_v26, 2  ;;  %v1340_v17 = vperm.slane %v11204_v26, 6 }
 0x438   : > { %5760 = vmatpush.bf16.msrb.mxu3 %v8928_v52  ;;  %v9817_v52 = vld [vmem:[%s10622_s30 + $0xfb0] sm:$0xf0] }
 0x469   : > { %v1269_v44 = vpop.f32.mrf.mxu2 }
 0x46a   : > { %v1270_v40 = vadd.f32 %v1269_v44, %v11096_v62 }
 0x471   : > { %v1272_v56 = vpop.f32.mrf.mxu2 }
 0x472   : > { %v1273_v62 = vadd.f32 %v1272_v56, %v11117_v38  ;;  %v7452_v56 = vor.u32 %v9451_v46, %v7451_v45  ;;  %v1343_v45 = vperm.slane %v11234_v13, 1 }
 0x475   : > { %v1298_v54 = vpop.f32.mrf.mxu1 }
 0x476   : > { %v1299_v11 = vadd.f32 %v1298_v54, %v1270_v40  ;;  %v7356_v40 = vor.u32 %v9427_v33, %v7355_v32  ;;  %v1335_v54 = vperm.slane %v11204_v26, 1 }
 0x478   : > { %v1310_v57 = vmul.f32 %v11160_v42, %v1299_v11 }
 0x479   : > { %v1275_v9 = vpop.f32.mrf.mxu2 }
 0x47a   : > { %v1314_v41 = vadd.f32 %v11165_v37, %v1310_v57  ;;  %v1276_v29 = vadd.f32 %v1275_v9, %v11141_v7  ;;  %v1333_v7 = vperm.slane %v11175_v58, 7 }
 0x47c   : > { %v11180_v59 = vmax.f32 %v1314_v41, 0.0  ;;  %v9424_v41 = vld [vmem:[%s10622_s30 + $0x368] sm:$0xf0] }
 0x47d   : > { %v1301_v16 = vpop.f32.mrf.mxu1  ;;  %v7344_v9 = vor.u32 %v9424_v41, %v7343_v39 }
 0x47e   : > { %v1302_v23 = vadd.f32 %v1301_v16, %v1273_v62  ;;  %v1380_v38 = vperm.slane %v11180_v59, 0  ;;  %v1381_v2 = vperm.slane %v11180_v59, 1  ;;  %v1387_v62 = vperm.slane %v11180_v59, 7 }
 0x47f   : > { %v8916_v16 = vor.u32 %v9817_v52, %v8915_v50  ;;  %v1342_v50 = vperm.slane %v11234_v13, 0 }
 0x480   : > { %v1311_v4 = vmul.f32 %v11160_v42, %v1302_v23  ;;  %v1430_v5 = vsel %vm832_vm1, %v1326_v43, %v1380_v38  ;;  %v1431_v14 = vsel %vm832_vm1, %v1327_v19, %v1381_v2  ;;  %v7439_v43 = vld [vmem:[%s10622_s30 + $0x420] sm:$0xf]  ;;  %v9448_v19 = vld [vmem:[%s10622_s30 + $0x428] sm:$0xf0]  ;;  %v9814_v23 = vld [vmem:[%s10622_s30 + $0xf98] sm:$0xf0] }
 0x481   : > { %v11197_v10 = vpack.c.bf16 %v1430_v5, %v1430_v5  ;;  %v11199_v12 = vpack.c.bf16 %v1431_v14, %v1431_v14  ;;  %v1382_v38 = vperm.slane %v11180_v59, 2  ;;  %v1383_v2 = vperm.slane %v11180_v59, 3 }
 0x482   : > { %v1315_v27 = vadd.f32 %v11165_v37, %v1311_v4  ;;  %v7331_v4 = vld [vmem:[%s10622_s30 + $0x348] sm:$0xf]  ;;  %v1337_v14 = vperm.slane %v11204_v26, 3  ;;  %v7440_v15 = vor.u32 %v9448_v19, %v7439_v43  ;;  %v8879_v43 = vld [vmem:[%s10622_s30 + $0xf60] sm:$0xf] }
 0x483   : > { %5488 = vmatmul.bf16.vlgmr.msra.gmra.mxu2 %v11197_v10  ;;  %5501 = vmatmul.bf16.vlgmr.msrb.gmra.mxu1 %v11199_v12  ;;  %v1432_v35 = vsel %vm832_vm1, %v1328_v49, %v1382_v38  ;;  %v9808_v19 = vld [vmem:[%s10622_s30 + $0xf68] sm:$0xf0]  ;;  %v1347_v38 = vperm.slane %v11234_v13, 5 }
 0x484   : > { %v11213_v24 = vmax.f32 %v1315_v27, 0.0  ;;  %5532 = vmatpush.bf16.msra.mxu2 %v7380_v3  ;;  %5545 = vmatpush.bf16.msrb.mxu1 %v7476_v6  ;;  %v11247_v3 = vsel %vm832_vm1, %v1333_v7, %v1387_v62  ;;  %v1338_v6 = vperm.slane %v11204_v26, 4  ;;  %v1341_v27 = vperm.slane %v11204_v26, 7  ;;  %v8891_v7 = vld [vmem:[%s10622_s30 + $0xf78] sm:$0xf] }
 0x485   : > { %v1304_v44 = vpop.f32.mrf.mxu1 }
 0x486   : > { %v1305_v36 = vadd.f32 %v1304_v44, %v1276_v29  ;;  %v1393_v48 = vperm.slane %v11213_v24, 5  ;;  %v1388_v60 = vperm.slane %v11213_v24, 0  ;;  %v8904_v29 = vor.u32 %v9814_v23, %v8903_v63  ;;  %v6985_v63 = vld [vmem:[%s10622_s30 + $0x9c] sm:$0xf0] }
 0x487   : > { %v1390_v32 = vperm.slane %v11213_v24, 2  ;;  %v1391_v33 = vperm.slane %v11213_v24, 3  ;;  %v1433_v44 = vsel %vm832_vm1, %v1329_v28, %v1383_v2  ;;  %v7307_v2 = vld [vmem:[%s10622_s30 + $0x318] sm:$0xf] }
 0x488   : > { %v1312_v11 = vmul.f32 %v11160_v42, %v1305_v36  ;;  %5533 = vmatpush.bf16.msra.mxu2 %v7368_v30  ;;  %5546 = vmatpush.bf16.msrb.mxu1 %v7464_v31  ;;  %v1443_v57 = vsel %vm832_vm1, %v1339_v47, %v1393_v48  ;;  %v11252_v5 = vsel %vm832_vm1, %v1334_v53, %v1388_v60  ;;  %v9445_v30 = vld [vmem:[%s10622_s30 + $0x410] sm:$0xf0]  ;;  %v1389_v31 = vperm.slane %v11213_v24, 1  ;;  %v9811_v36 = vld [vmem:[%s10622_s30 + $0xf80] sm:$0xf0] }
 0x489   : > { %v11236_v22 = vpack.c.bf16 %v1443_v57, %v1443_v57  ;;  %v9336_v47 = vld [vmem:[%s10622_s30 + $0xac] sm:$0xf]  ;;  %v6997_v48 = vld [vmem:[%s10622_s30 + $0xb4] sm:$0xf0]  ;;  %v11283_v49 = vsel %vm832_vm1, %v1336_v55, %v1390_v32  ;;  %v11286_v28 = vsel %vm832_vm1, %v1337_v14, %v1391_v33  ;;  %v7428_v53 = vor.u32 %v9445_v30, %v7427_v0  ;;  %v7415_v57 = vld [vmem:[%s10622_s30 + $0x3f0] sm:$0xf] }
 0x48a   : > { %v1316_v61 = vadd.f32 %v11165_v37, %v1312_v11  ;;  %v11280_v52 = vsel %vm832_vm1, %v1335_v54, %v1389_v31  ;;  %v9418_v54 = vld [vmem:[%s10622_s30 + $0x338] sm:$0xf0]  ;;  %v11292_v55 = vpack.c.bf16 %v1432_v35, %v1432_v35  ;;  %v11294_v39 = vpack.c.bf16 %v1433_v44, %v1433_v44  ;;  %v7403_v14 = vld [vmem:[%s10622_s30 + $0x3d8] sm:$0xf]  ;;  %v8867_v0 = vld [vmem:[%s10622_s30 + $0xf48] sm:$0xf] }
 0x48b   : > { %5657 = vmatmul.bf16.vlgmr.msrb.gmra.mxu0 %v11236_v22  ;;  %v8892_v62 = vor.u32 %v9811_v36, %v8891_v7  ;;  %v7000_v60 = vor.u32 %v9336_v47, %v6997_v48  ;;  %v8880_v30 = vor.u32 %v9808_v19, %v8879_v43  ;;  %v9330_v31 = vld [vmem:[%s10622_s30 + $0x7c] sm:$0xf]  ;;  %v6973_v32 = vld [vmem:[%s10622_s30 + $0x84] sm:$0xf0]  ;;  %v1392_v33 = vperm.slane %v11213_v24, 4 }
 0x48c   : > { %v11257_v8 = vmax.f32 %v1316_v61, 0.0  ;;  %5534 = vmatpush.bf16.msra.mxu2 %v7356_v40  ;;  %5547 = vmatpush.bf16.msrb.mxu1 %v7452_v56  ;;  %v7332_v40 = vor.u32 %v9421_v18, %v7331_v4  ;;  %v7319_v56 = vld [vmem:[%s10622_s30 + $0x330] sm:$0xf]  ;;  %v9333_v61 = vld [vmem:[%s10622_s30 + $0x94] sm:$0xf]  ;;  %v1344_v35 = vperm.slane %v11234_v13, 2 }
 0x48d   : > { %5740 = vmatpush.bf16.msrb.mxu0 %v8916_v16  ;;  %v9442_v16 = vld [vmem:[%s10622_s30 + $0x3f8] sm:$0xf0]  ;;  %v9415_v4 = vld [vmem:[%s10622_s30 + $0x320] sm:$0xf0]  ;;  %v6988_v44 = vor.u32 %v9333_v61, %v6985_v63  ;;  %v9412_v7 = vld [vmem:[%s10622_s30 + $0x308] sm:$0xf0]  ;;  %v6976_v63 = vor.u32 %v9330_v31, %v6973_v32 }
 0x48e   : > { %v1397_v46 = vperm.slane %v11257_v8, 1  ;;  %v1396_v23 = vperm.slane %v11257_v8, 0  ;;  %v9439_v18 = vld [vmem:[%s10622_s30 + $0x3e0] sm:$0xf0]  ;;  %v1394_v36 = vperm.slane %v11213_v24, 6  ;;  %v1345_v47 = vperm.slane %v11234_v13, 3 }
 0x48f   : > { %v7391_v48 = vld [vmem:[%s10622_s30 + $0x3c0] sm:$0xf]  ;;  %v7571_v19 = vld [vmem:[%s10622_s30 + $0x528] sm:$0xf]  ;;  %v1384_v61 = vperm.slane %v11180_v59, 4  ;;  %v1401_v31 = vperm.slane %v11257_v8, 5 }
 0x490   : > { %5535 = vmatpush.bf16.msra.mxu2 %v7344_v9  ;;  %5548 = vmatpush.bf16.msrb.mxu1 %v7440_v15  ;;  %v1447_v11 = vsel %vm832_vm1, %v1343_v45, %v1397_v46  ;;  %v7320_v9 = vor.u32 %v9418_v54, %v7319_v56  ;;  %v7416_v15 = vor.u32 %v9442_v16, %v7415_v57  ;;  %v7295_v46 = vld [vmem:[%s10622_s30 + $0x300] sm:$0xf]  ;;  %v9802_v54 = vld [vmem:[%s10622_s30 + $0xf38] sm:$0xf0]  ;;  %v9327_v57 = vld [vmem:[%s10622_s30 + $0x64] sm:$0xf] }
 0x491   : > { %5741 = vmatpush.bf16.msrb.mxu0 %v8904_v29  ;;  %v11296_v41 = vpack.c.bf16 %v1447_v11, %v1447_v11  ;;  %v9805_v29 = vld [vmem:[%s10622_s30 + $0xf50] sm:$0xf0]  ;;  %v1446_v45 = vsel %vm832_vm1, %v1342_v50, %v1396_v23  ;;  %v11329_v11 = vsel %vm832_vm1, %v1338_v6, %v1392_v33  ;;  %v7308_v56 = vor.u32 %v9415_v4, %v7307_v2 }
 0x492   : > { %v7404_v50 = vor.u32 %v9439_v18, %v7403_v14  ;;  %v11334_v16 = vpack.c.bf16 %v1446_v45, %v1446_v45  ;;  %v8868_v43 = vor.u32 %v9805_v29, %v8867_v0  ;;  %v11342_v6 = vsel %vm832_vm1, %v1340_v17, %v1394_v36  ;;  %v7667_v0 = vld [vmem:[%s10622_s30 + $0x5e8] sm:$0xf]  ;;  %v9505_v29 = vld [vmem:[%s10622_s30 + $0x5f0] sm:$0xf0]  ;;  %v9799_v45 = vld [vmem:[%s10622_s30 + $0xf20] sm:$0xf0] }
 0x493   : > { %5514 = vmatmul.bf16.vlgmr.msrb.gmra.mxu2 %v11292_v55  ;;  %5527 = vmatmul.bf16.vlgmr.msra.gmra.mxu1 %v11294_v39  ;;  %v1385_v23 = vperm.slane %v11180_v59, 5  ;;  %v1348_v2 = vperm.slane %v11234_v13, 6  ;;  %v1349_v4 = vperm.slane %v11234_v13, 7  ;;  %v7296_v14 = vor.u32 %v9412_v7, %v7295_v46 }
 0x494   : > { %5536 = vmatpush.bf16.msra.mxu2 %v7332_v40  ;;  %5549 = vmatpush.bf16.msrb.mxu1 %v7428_v53  ;;  %v9436_v40 = vld [vmem:[%s10622_s30 + $0x3c8] sm:$0xf0]  ;;  %v8855_v53 = vld [vmem:[%s10622_s30 + $0xf30] sm:$0xf]  ;;  %v1395_v32 = vperm.slane %v11213_v24, 7  ;;  %v1398_v33 = vperm.slane %v11257_v8, 2 }
 0x495   : > { %5709 = vmatmul.bf16.vlgmr.msra.gmra.mxu3 %v11296_v41  ;;  %5742 = vmatpush.bf16.msrb.mxu0 %v8892_v62  ;;  %v6961_v62 = vld [vmem:[%s10622_s30 + $0x6c] sm:$0xf0]  ;;  %v1399_v46 = vperm.slane %v11257_v8, 3  ;;  %v1402_v7 = vperm.slane %v11257_v8, 6  ;;  %v1403_v36 = vperm.slane %v11257_v8, 7  ;;  %v1435_v24 = vsel %vm832_vm1, %v1331_v25, %v1385_v23 }
 0x496   : > { %5805 = vmatpush.bf16.msra.mxu3 %v7000_v60  ;;  %v9481_v60 = vld [vmem:[%s10622_s30 + $0x530] sm:$0xf0]  ;;  %v6964_v18 = vor.u32 %v9327_v57, %v6961_v62  ;;  %v9502_v62 = vld [vmem:[%s10622_s30 + $0x5d8] sm:$0xf0] }
 0x497   : > { %v7572_v17 = vor.u32 %v9481_v60, %v7571_v19  ;;  %v11377_v57 = vsel %vm832_vm1, %v1345_v47, %v1399_v46  ;;  %v8831_v47 = vld [vmem:[%s10622_s30 + $0xf00] sm:$0xf]  ;;  %v9796_v19 = vld [vmem:[%s10622_s30 + $0xf08] sm:$0xf0]  ;;  %v11391_v60 = vsel %vm832_vm1, %v1348_v2, %v1402_v7  ;;  %v9321_v23 = vld [vmem:[%s10622_s30 + $0x34] sm:$0xf] }
 0x498   : > { %5537 = vmatpush.bf16.msra.mxu2 %v7320_v9  ;;  %5550 = vmatpush.bf16.msrb.mxu1 %v7416_v15  ;;  %v7392_v9 = vor.u32 %v9436_v40, %v7391_v48  ;;  %v8856_v15 = vor.u32 %v9802_v54, %v8855_v53  ;;  %v7668_v48 = vor.u32 %v9505_v29, %v7667_v0  ;;  %v9324_v40 = vld [vmem:[%s10622_s30 + $0x4c] sm:$0xf]  ;;  %v9478_v54 = vld [vmem:[%s10622_s30 + $0x518] sm:$0xf0]  ;;  %v7643_v0 = vld [vmem:[%s10622_s30 + $0x5b8] sm:$0xf] }
 0x499   : > { %5743 = vmatpush.bf16.msrb.mxu0 %v8880_v30  ;;  %v8843_v30 = vld [vmem:[%s10622_s30 + $0xf18] sm:$0xf]  ;;  %v11371_v53 = vsel %vm832_vm1, %v1344_v35, %v1398_v33  ;;  %v7655_v35 = vld [vmem:[%s10622_s30 + $0x5d0] sm:$0xf]  ;;  %v9499_v29 = vld [vmem:[%s10622_s30 + $0x5c0] sm:$0xf0] }
 0x49a   : > { %5806 = vmatpush.bf16.msra.mxu3 %v6988_v44  ;;  %v1434_v44 = vsel %vm832_vm1, %v1330_v20, %v1384_v61  ;;  %v11368_v20 = vsel %vm832_vm1, %v1341_v27, %v1395_v32  ;;  %v8844_v26 = vor.u32 %v9799_v45, %v8843_v30  ;;  %v1451_v27 = vsel %vm832_vm1, %v1347_v38, %v1401_v31  ;;  %v9913_v30 = vld [vmem:[%s10622_s30 + $0x12b0] sm:$0xf0]  ;;  %v6925_v45 = vld [vmem:[%s10622_s30 + $0x24] sm:$0xf0] }
 0x49b   : > { %5696 = vmatmul.bf16.vlgmr.msra.gmra.mxu0 %v11334_v16  ;;  %v11379_v25 = vpack.c.bf16 %v1434_v44, %v1434_v44  ;;  %v11394_v61 = vsel %vm832_vm1, %v1349_v4, %v1403_v36  ;;  %v7656_v2 = vor.u32 %v9502_v62, %v7655_v35  ;;  %v9475_v4 = vld [vmem:[%s10622_s30 + $0x500] sm:$0xf0]  ;;  %v8832_v31 = vor.u32 %v9796_v19, %v8831_v47  ;;  %v6913_v47 = vld [vmem:[%s10622_s30 + $0xc] sm:$0xf0] }
 0x49c   : > { %5538 = vmatpush.bf16.msra.mxu2 %v7308_v56  ;;  %5551 = vmatpush.bf16.msrb.mxu1 %v7404_v50  ;;  %v6949_v56 = vld [vmem:[%s10622_s30 + $0x54] sm:$0xf0]  ;;  %v7559_v50 = vld [vmem:[%s10622_s30 + $0x510] sm:$0xf]  ;;  %v1346_v32 = vperm.slane %v11234_v13, 4  ;;  %v7644_v46 = vor.u32 %v9499_v29, %v7643_v0 }
 0x49d   : > { %5744 = vmatpush.bf16.msrb.mxu0 %v8868_v43  ;;  %v11386_v43 = vpack.c.bf16 %v1435_v24, %v1435_v24  ;;  %v6952_v38 = vor.u32 %v9324_v40, %v6949_v56  ;;  %v9472_v24 = vld [vmem:[%s10622_s30 + $0x4e8] sm:$0xf0]  ;;  %v7631_v40 = vld [vmem:[%s10622_s30 + $0x5a0] sm:$0xf]  ;;  %v9287_v13 = vld [vmem:[%s10622_s30 + $0x1290] sm:$0xf] }
 0x49e   : > { %5807 = vmatpush.bf16.msra.mxu3 %v6976_v63  ;;  %v7560_v63 = vor.u32 %v9478_v54, %v7559_v50  ;;  %v9496_v56 = vld [vmem:[%s10622_s30 + $0x5a8] sm:$0xf0]  ;;  %v9910_v50 = vld [vmem:[%s10622_s30 + $0x1298] sm:$0xf0]  ;;  %v1278_v54 = vpop.f32.mrf.mxu2  ;;  %v9315_v62 = vld [vmem:[%s10622_s30 + $0x4] sm:$0xf] }
 0x49f   : > { %v7632_v19 = vor.u32 %v9496_v56, %v7631_v40  ;;  %v9907_v0 = vld [vmem:[%s10622_s30 + $0x1280] sm:$0xf0]  ;;  %v9432_v29 = vld [vmem:[%s10622_s30 + $0x3ac] sm:$0xf] }
 0x4a0   : > { %5539 = vmatpush.bf16.msra.mxu2 %v7296_v14  ;;  %5552 = vmatpush.bf16.msrb.mxu1 %v7392_v9  ;;  %v6937_v14 = vld [vmem:[%s10622_s30 + $0x3c] sm:$0xf0]  ;;  %v7547_v9 = vld [vmem:[%s10622_s30 + $0x4f8] sm:$0xf] }
 0x4a1   : > { %5745 = vmatpush.bf16.msrb.mxu0 %v8856_v15  ;;  %v11401_v15 = vpack.c.bf16 %v1451_v27, %v1451_v27  ;;  %v6940_v33 = vor.u32 %v9321_v23, %v6937_v14  ;;  %v7548_v44 = vor.u32 %v9475_v4, %v7547_v9  ;;  %v9469_v23 = vld [vmem:[%s10622_s30 + $0x4d0] sm:$0xf0]  ;;  %v7619_v14 = vld [vmem:[%s10622_s30 + $0x588] sm:$0xf]  ;;  %v1307_v9 = vpop.f32.mrf.mxu1  ;;  %v9275_v4 = vld [vmem:[%s10622_s30 + $0x1278] sm:$0xf] }
 0x4a2   : > { %5808 = vmatpush.bf16.msra.mxu3 %v6964_v18  ;;  %v1400_v18 = vperm.slane %v11257_v8, 4  ;;  %v9318_v8 = vld [vmem:[%s10622_s30 + $0x1c] sm:$0xf] }
 0x4a3   : > { %5540 = vmatmul.bf16.vlgmr.msra.gmra.mxu2 %v11379_v25  ;;  %5553 = vmatmul.bf16.vlgmr.msrb.gmra.mxu1 %v11386_v43  ;;  %v6928_v27 = vor.u32 %v9318_v8, %v6925_v45  ;;  %v9276_v8 = vor.u32 %v9907_v0, %v9275_v4  ;;  %v9466_v45 = vld [vmem:[%s10622_s30 + $0x4b8] sm:$0xf0]  ;;  %v1386_v4 = vperm.slane %v11180_v59, 6  ;;  %v9529_v59 = vld [vmem:[%s10622_s30 + $0x6b0] sm:$0xf0] }
 0x4a4   : > { %5558 = vmatpush.bf16.msrb.mxu2 %v7572_v17  ;;  %5571 = vmatpush.bf16.msra.mxu1 %v7668_v48  ;;  %v9299_v17 = vld [vmem:[%s10622_s30 + $0x12a8] sm:$0xf]  ;;  %v1450_v36 = vsel %vm832_vm1, %v1346_v32, %v1400_v18  ;;  %v7535_v48 = vld [vmem:[%s10622_s30 + $0x4e0] sm:$0xf]  ;;  %v1279_v18 = vadd.f32 %v1278_v54, %v11157_v34  ;;  %v7511_v34 = vld [vmem:[%s10622_s30 + $0x4b0] sm:$0xf] }
 0x4a5   : > { %5746 = vmatpush.bf16.msrb.mxu0 %v8844_v26  ;;  %5761 = vmatmul.bf16.vlgmr.msrb.gmra.mxu3 %v11401_v15  ;;  %v9300_v7 = vor.u32 %v9913_v30, %v9299_v17  ;;  %v11420_v26 = vpack.c.bf16 %v1450_v36, %v1450_v36  ;;  %v7536_v35 = vor.u32 %v9472_v24, %v7535_v48  ;;  %v7381_v17 = vld [vmem:[%s10622_s30 + $0x3b4] sm:$0xf0]  ;;  %v9490_v36 = vld [vmem:[%s10622_s30 + $0x578] sm:$0xf0]  ;;  %v9429_v48 = vld [vmem:[%s10622_s30 + $0x394] sm:$0xf] }
 0x4a6   : > { %5809 = vmatpush.bf16.msra.mxu3 %v6952_v38  ;;  %v9288_v38 = vor.u32 %v9910_v50, %v9287_v13  ;;  %v892_v30 = vadd.f32 %v11148_v1, %v11077_v21  ;;  %v9263_v21 = vld [vmem:[%s10622_s30 + $0x1260] sm:$0xf]  ;;  %v9904_v1 = vld [vmem:[%s10622_s30 + $0x1268] sm:$0xf0]  ;;  %v7512_v56 = vor.u32 %v9466_v45, %v7511_v34  ;;  %v7763_v34 = vld [vmem:[%s10622_s30 + $0x6a8] sm:$0xf] }
 0x4a7   : > { %v7369_v24 = vld [vmem:[%s10622_s30 + $0x39c] sm:$0xf0]  ;;  %v9264_v54 = vor.u32 %v9904_v1, %v9263_v21 }
 0x4a8   : > { %5559 = vmatpush.bf16.msrb.mxu2 %v7560_v63  ;;  %5572 = vmatpush.bf16.msra.mxu1 %v7656_v2  ;;  %v7523_v63 = vld [vmem:[%s10622_s30 + $0x4c8] sm:$0xf]  ;;  %v9493_v2 = vld [vmem:[%s10622_s30 + $0x590] sm:$0xf0]  ;;  %v921_v40 = vadd.f32 %v10912_v51, %v892_v30  ;;  %v9484_v30 = vld [vmem:[%s10622_s30 + $0x548] sm:$0xf0] }
 0x4a9   : > { %5747 = vmatpush.bf16.msrb.mxu0 %v8832_v31  ;;  %v6916_v31 = vor.u32 %v9315_v62, %v6913_v47  ;;  %v7524_v32 = vor.u32 %v9469_v23, %v7523_v63  ;;  %v7595_v62 = vld [vmem:[%s10622_s30 + $0x558] sm:$0xf]  ;;  %v7372_v47 = vor.u32 %v9429_v48, %v7369_v24  ;;  %v9251_v51 = vld [vmem:[%s10622_s30 + $0x1248] sm:$0xf]  ;;  %v9426_v63 = vld [vmem:[%s10622_s30 + $0x37c] sm:$0xf] }
 0x4aa   : > { %5810 = vmatpush.bf16.msra.mxu3 %v6940_v33  ;;  %v1308_v33 = vadd.f32 %v1307_v9, %v1279_v18  ;;  %v7357_v23 = vld [vmem:[%s10622_s30 + $0x384] sm:$0xf0] }
 0x4ac   : > { %5560 = vmatpush.bf16.msrb.mxu2 %v7548_v44  ;;  %5573 = vmatpush.bf16.msra.mxu1 %v7644_v46  ;;  %v7620_v44 = vor.u32 %v9493_v2, %v7619_v14  ;;  %v7607_v46 = vld [vmem:[%s10622_s30 + $0x570] sm:$0xf]  ;;  %v1313_v13 = vmul.f32 %v11160_v42, %v1308_v33  ;;  %v930_v14 = vmul.f32 %v11160_v42, %v921_v40  ;;  %v7487_v2 = vld [vmem:[%s10622_s30 + $0x480] sm:$0xf]  ;;  %v9898_v33 = vld [vmem:[%s10622_s30 + $0x1238] sm:$0xf0] }
 0x4ad   : > { %5792 = vmatpush.bf16.msra.mxu0 %v9300_v7  ;;  %v7384_v7 = vor.u32 %v9432_v29, %v7381_v17  ;;  %v7608_v50 = vor.u32 %v9490_v36, %v7607_v46  ;;  %v9460_v17 = vld [vmem:[%s10622_s30 + $0x488] sm:$0xf0]  ;;  %v7583_v42 = vld [vmem:[%s10622_s30 + $0x540] sm:$0xf]  ;;  %v7859_v46 = vld [vmem:[%s10622_s30 + $0x768] sm:$0xf] }
 0x4ae   : > { %5748 = vmatmul.bf16.vlgmr.msrb.gmra.mxu0 %v11420_v26  ;;  %5811 = vmatpush.bf16.msra.mxu3 %v6928_v27  ;;  %v7499_v27 = vld [vmem:[%s10622_s30 + $0x498] sm:$0xf]  ;;  %v1317_v0 = vadd.f32 %v11165_v37, %v1313_v13  ;;  %v7488_v45 = vor.u32 %v9460_v17, %v7487_v2  ;;  %v1332_v36 = vperm.slane %v11175_v58, 6  ;;  %v938_v21 = vadd.f32 %v11165_v37, %v930_v14  ;;  %v9420_v58 = vld [vmem:[%s10622_s30 + $0x34c] sm:$0xf] }
 0x4af   : > { %v7584_v48 = vor.u32 %v9484_v30, %v7583_v42  ;;  %v7751_v37 = vld [vmem:[%s10622_s30 + $0x690] sm:$0xf]  ;;  %v9215_v14 = vld [vmem:[%s10622_s30 + $0x1200] sm:$0xf]  ;;  %v7739_v42 = vld [vmem:[%s10622_s30 + $0x678] sm:$0xf] }
 0x4b0   : > { %5561 = vmatpush.bf16.msrb.mxu2 %v7536_v35  ;;  %5574 = vmatpush.bf16.msra.mxu1 %v7632_v19  ;;  %v9463_v35 = vld [vmem:[%s10622_s30 + $0x4a0] sm:$0xf0]  ;;  %v1321_v1 = vmax.f32 %v1317_v0, 0.0  ;;  %v1436_v13 = vsel %vm832_vm1, %v1332_v36, %v1386_v4  ;;  %v9892_v0 = vld [vmem:[%s10622_s30 + $0x1208] sm:$0xf0] }
 0x4b1   : > { %5793 = vmatpush.bf16.msra.mxu0 %v9288_v38  ;;  %v9487_v19 = vld [vmem:[%s10622_s30 + $0x560] sm:$0xf0]  ;;  %v9901_v38 = vld [vmem:[%s10622_s30 + $0x1250] sm:$0xf0]  ;;  %v7500_v9 = vor.u32 %v9463_v35, %v7499_v27  ;;  %v7333_v35 = vld [vmem:[%s10622_s30 + $0x354] sm:$0xf0] }
 0x4b2   : > { %5812 = vmatpush.bf16.msra.mxu3 %v6916_v31  ;;  %v7596_v18 = vor.u32 %v9487_v19, %v7595_v62  ;;  %v9252_v29 = vor.u32 %v9901_v38, %v9251_v51  ;;  %v7360_v31 = vor.u32 %v9426_v63, %v7357_v23  ;;  %v9526_v62 = vld [vmem:[%s10622_s30 + $0x698] sm:$0xf0]  ;;  %v942_v51 = vmax.f32 %v938_v21, 0.0  ;;  %v9523_v30 = vld [vmem:[%s10622_s30 + $0x680] sm:$0xf0] }
 0x4b3   : > { %v9550_v19 = vld [vmem:[%s10622_s30 + $0x758] sm:$0xf0]  ;;  %v1404_v38 = vperm.slane %v1321_v1, 0  ;;  %v11481_v63 = vpack.c.bf16 %v1436_v13, %v1436_v13  ;;  %v7336_v2 = vor.u32 %v9420_v58, %v7333_v35  ;;  %v7752_v4 = vor.u32 %v9526_v62, %v7751_v37  ;;  %v7727_v1 = vld [vmem:[%s10622_s30 + $0x660] sm:$0xf] }
 0x4b4   : > { %5562 = vmatpush.bf16.msrb.mxu2 %v7524_v32  ;;  %5575 = vmatpush.bf16.msra.mxu1 %v7620_v44  ;;  %v9239_v32 = vld [vmem:[%s10622_s30 + $0x1230] sm:$0xf]  ;;  %v9423_v44 = vld [vmem:[%s10622_s30 + $0x364] sm:$0xf]  ;;  %v7273_v13 = vld [vmem:[%s10622_s30 + $0x2dc] sm:$0xf0] }
 0x4b5   : > { %5794 = vmatpush.bf16.msra.mxu0 %v9276_v8  ;;  %5813 = vmatmul.bf16.vlgmr.msra.gmra.mxu3 %v11197_v10  ;;  %v7345_v8 = vld [vmem:[%s10622_s30 + $0x36c] sm:$0xf0]  ;;  %v9240_v24 = vor.u32 %v9898_v33, %v9239_v32  ;;  %v9547_v32 = vld [vmem:[%s10622_s30 + $0x740] sm:$0xf0]  ;;  %v7285_v33 = vld [vmem:[%s10622_s30 + $0x2f4] sm:$0xf0] }
 0x4b6   : > { %5857 = vmatpush.bf16.msrb.mxu3 %v7384_v7  ;;  %v9553_v7 = vld [vmem:[%s10622_s30 + $0x770] sm:$0xf0]  ;;  %v7348_v40 = vor.u32 %v9423_v44, %v7345_v8  ;;  %v1350_v44 = vperm.slane %v942_v51, 0  ;;  %v9216_v8 = vor.u32 %v9892_v0, %v9215_v14  ;;  %v7297_v35 = vld [vmem:[%s10622_s30 + $0x30c] sm:$0xf0] }
 0x4b7   : > { %v7860_v27 = vor.u32 %v9553_v7, %v7859_v46  ;;  %v7309_v46 = vld [vmem:[%s10622_s30 + $0x324] sm:$0xf0] }
 0x4b8   : > { %5563 = vmatpush.bf16.msrb.mxu2 %v7512_v56  ;;  %5576 = vmatpush.bf16.msra.mxu1 %v7608_v50  ;;  %v7764_v56 = vor.u32 %v9529_v59, %v7763_v34  ;;  %v9227_v50 = vld [vmem:[%s10622_s30 + $0x1218] sm:$0xf]  ;;  %v7740_v59 = vor.u32 %v9523_v30, %v7739_v42  ;;  %v1454_v7 = vsel %vm832_vm1, %v1350_v44, %v1404_v38  ;;  %v7811_v51 = vld [vmem:[%s10622_s30 + $0x708] sm:$0xf]  ;;  %v9541_v38 = vld [vmem:[%s10622_s30 + $0x710] sm:$0xf0] }
 0x4b9   : > { %5795 = vmatpush.bf16.msra.mxu0 %v9264_v54  ;;  %v9895_v54 = vld [vmem:[%s10622_s30 + $0x1220] sm:$0xf0]  ;;  %v7261_v14 = vld [vmem:[%s10622_s30 + $0x2c4] sm:$0xf0]  ;;  %v7703_v42 = vld [vmem:[%s10622_s30 + $0x630] sm:$0xf] }
 0x4ba   : > { %5858 = vmatpush.bf16.msrb.mxu3 %v7372_v47  ;;  %v7847_v47 = vld [vmem:[%s10622_s30 + $0x750] sm:$0xf]  ;;  %v9228_v23 = vor.u32 %v9895_v54, %v9227_v50  ;;  %v11508_v50 = vpack.c.bf16 %v1454_v7, %v1454_v7  ;;  %v9514_v30 = vld [vmem:[%s10622_s30 + $0x638] sm:$0xf0]  ;;  %v7691_v7 = vld [vmem:[%s10622_s30 + $0x618] sm:$0xf] }
 0x4bb   : > { %v7848_v17 = vor.u32 %v9550_v19, %v7847_v47  ;;  %v7715_v47 = vld [vmem:[%s10622_s30 + $0x648] sm:$0xf]  ;;  %v9517_v19 = vld [vmem:[%s10622_s30 + $0x650] sm:$0xf0]  ;;  %v7249_v44 = vld [vmem:[%s10622_s30 + $0x2ac] sm:$0xf0] }
 0x4bc   : > { %5564 = vmatpush.bf16.msrb.mxu2 %v7500_v9  ;;  %5577 = vmatpush.bf16.msra.mxu1 %v7596_v18  ;;  %v11486_v9 = vpack.c.bf16 %v11247_v3, %v11247_v3  ;;  %v9417_v18 = vld [vmem:[%s10622_s30 + $0x334] sm:$0xf]  ;;  %v9408_v3 = vld [vmem:[%s10622_s30 + $0x2ec] sm:$0xf] }
 0x4bd   : > { %5796 = vmatpush.bf16.msra.mxu0 %v9252_v29  ;;  %v7321_v29 = vld [vmem:[%s10622_s30 + $0x33c] sm:$0xf0]  ;;  %v7288_v21 = vor.u32 %v9408_v3, %v7285_v33  ;;  %v9538_v3 = vld [vmem:[%s10622_s30 + $0x6f8] sm:$0xf0]  ;;  %v9399_v33 = vld [vmem:[%s10622_s30 + $0x2a4] sm:$0xf] }
 0x4be   : > { %5859 = vmatpush.bf16.msrb.mxu3 %v7360_v31  ;;  %v7835_v31 = vld [vmem:[%s10622_s30 + $0x738] sm:$0xf]  ;;  %v7324_v34 = vor.u32 %v9417_v18, %v7321_v29  ;;  %v7716_v18 = vor.u32 %v9517_v19, %v7715_v47  ;;  %v7812_v29 = vor.u32 %v9541_v38, %v7811_v51  ;;  %v9532_v47 = vld [vmem:[%s10622_s30 + $0x6c8] sm:$0xf0]  ;;  %v9393_v51 = vld [vmem:[%s10622_s30 + $0x274] sm:$0xf] }
 0x4bf   : > { %v7836_v36 = vor.u32 %v9547_v32, %v7835_v31  ;;  %v7799_v31 = vld [vmem:[%s10622_s30 + $0x6f0] sm:$0xf]  ;;  %v7225_v38 = vld [vmem:[%s10622_s30 + $0x27c] sm:$0xf0] }
 0x4c0   : > { %5565 = vmatpush.bf16.msrb.mxu2 %v7488_v45  ;;  %5578 = vmatpush.bf16.msra.mxu1 %v7584_v48  ;;  %v9414_v45 = vld [vmem:[%s10622_s30 + $0x31c] sm:$0xf]  ;;  %v9520_v48 = vld [vmem:[%s10622_s30 + $0x668] sm:$0xf0] }
 0x4c1   : > { %5797 = vmatpush.bf16.msra.mxu0 %v9240_v24  ;;  %v7823_v24 = vld [vmem:[%s10622_s30 + $0x720] sm:$0xf]  ;;  %v7312_v54 = vor.u32 %v9414_v45, %v7309_v46  ;;  %v7728_v58 = vor.u32 %v9520_v48, %v7727_v1  ;;  %v7800_v45 = vor.u32 %v9538_v3, %v7799_v31  ;;  %v7252_v46 = vor.u32 %v9399_v33, %v7249_v44  ;;  %v9535_v48 = vld [vmem:[%s10622_s30 + $0x6e0] sm:$0xf0]  ;;  %v7213_v3 = vld [vmem:[%s10622_s30 + $0x264] sm:$0xf0] }
 0x4c2   : > { %5860 = vmatpush.bf16.msrb.mxu3 %v7348_v40  ;;  %v9544_v40 = vld [vmem:[%s10622_s30 + $0x728] sm:$0xf0] }
 0x4c3   : > { %5566 = vmatmul.bf16.vlgmr.msrb.gmra.mxu2 %v11481_v63  ;;  %5579 = vmatmul.bf16.vlgmr.msra.gmra.mxu1 %v11486_v9  ;;  %v7824_v37 = vor.u32 %v9544_v40, %v7823_v24  ;;  %v9396_v24 = vld [vmem:[%s10622_s30 + $0x28c] sm:$0xf]  ;;  %v7237_v40 = vld [vmem:[%s10622_s30 + $0x294] sm:$0xf0] }
 0x4c4   : > { %5584 = vmatpush.bf16.msra.mxu2 %v7764_v56  ;;  %5597 = vmatpush.bf16.msrb.mxu1 %v7860_v27  ;;  %v9405_v56 = vld [vmem:[%s10622_s30 + $0x2d4] sm:$0xf]  ;;  %v9411_v27 = vld [vmem:[%s10622_s30 + $0x304] sm:$0xf]  ;;  %v9516_v33 = vld [vmem:[%s10622_s30 + $0x64c] sm:$0xf] }
 0x4c5   : > { %5798 = vmatpush.bf16.msra.mxu0 %v9228_v23  ;;  %v7276_v62 = vor.u32 %v9405_v56, %v7273_v13  ;;  %v9402_v23 = vld [vmem:[%s10622_s30 + $0x2bc] sm:$0xf]  ;;  %v7300_v0 = vor.u32 %v9411_v27, %v7297_v35  ;;  %v7741_v13 = vld [vmem:[%s10622_s30 + $0x684] sm:$0xf0]  ;;  %v7240_v35 = vor.u32 %v9396_v24, %v7237_v40  ;;  %v7201_v40 = vld [vmem:[%s10622_s30 + $0x24c] sm:$0xf0] }
 0x4c6   : > { %5861 = vmatpush.bf16.msrb.mxu3 %v7336_v2  ;;  %v9528_v2 = vld [vmem:[%s10622_s30 + $0x6ac] sm:$0xf]  ;;  %v9522_v56 = vld [vmem:[%s10622_s30 + $0x67c] sm:$0xf] }
 0x4c7   : > { %v7744_v19 = vor.u32 %v9522_v56, %v7741_v13  ;;  %v9513_v56 = vld [vmem:[%s10622_s30 + $0x634] sm:$0xf]  ;;  %v7705_v13 = vld [vmem:[%s10622_s30 + $0x63c] sm:$0xf0] }
 0x4c8   : > { %5585 = vmatpush.bf16.msra.mxu2 %v7752_v4  ;;  %5598 = vmatpush.bf16.msrb.mxu1 %v7848_v17  ;;  %v7765_v4 = vld [vmem:[%s10622_s30 + $0x6b4] sm:$0xf0]  ;;  %v7264_v17 = vor.u32 %v9402_v23, %v7261_v14  ;;  %v9519_v23 = vld [vmem:[%s10622_s30 + $0x664] sm:$0xf]  ;;  %v7729_v14 = vld [vmem:[%s10622_s30 + $0x66c] sm:$0xf0] }
 0x4c9   : > { %5799 = vmatpush.bf16.msra.mxu0 %v9216_v8  ;;  %v7768_v32 = vor.u32 %v9528_v2, %v7765_v4  ;;  %v9525_v8 = vld [vmem:[%s10622_s30 + $0x694] sm:$0xf]  ;;  %v7955_v2 = vld [vmem:[%s10622_s30 + $0x828] sm:$0xf] }
 0x4ca   : > { %5862 = vmatpush.bf16.msrb.mxu3 %v7324_v34  ;;  %v7753_v34 = vld [vmem:[%s10622_s30 + $0x69c] sm:$0xf0]  ;;  %v9577_v4 = vld [vmem:[%s10622_s30 + $0x830] sm:$0xf0] }
 0x4cb   : > { %v7756_v1 = vor.u32 %v9525_v8, %v7753_v34  ;;  %v7956_v31 = vor.u32 %v9577_v4, %v7955_v2  ;;  %v7717_v8 = vld [vmem:[%s10622_s30 + $0x654] sm:$0xf0]  ;;  %v7943_v34 = vld [vmem:[%s10622_s30 + $0x810] sm:$0xf]  ;;  %v7919_v2 = vld [vmem:[%s10622_s30 + $0x7e0] sm:$0xf] }
 0x4cc   : > { %5586 = vmatpush.bf16.msra.mxu2 %v7740_v59  ;;  %5599 = vmatpush.bf16.msrb.mxu1 %v7836_v36  ;;  %v7704_v59 = vor.u32 %v9514_v30, %v7703_v42  ;;  %v9511_v36 = vld [vmem:[%s10622_s30 + $0x620] sm:$0xf0]  ;;  %v7228_v42 = vor.u32 %v9393_v51, %v7225_v38  ;;  %v7732_v30 = vor.u32 %v9519_v23, %v7729_v14  ;;  %v9510_v51 = vld [vmem:[%s10622_s30 + $0x61c] sm:$0xf]  ;;  %v7693_v38 = vld [vmem:[%s10622_s30 + $0x624] sm:$0xf0] }
 0x4cd   : > { %5844 = vmatpush.bf16.msrb.mxu0 %v7288_v21  ;;  %v7787_v21 = vld [vmem:[%s10622_s30 + $0x6d8] sm:$0xf]  ;;  %v9568_v4 = vld [vmem:[%s10622_s30 + $0x7e8] sm:$0xf0] }
 0x4ce   : > { %5800 = vmatmul.bf16.vlgmr.msra.gmra.mxu0 %v11508_v50  ;;  %5863 = vmatpush.bf16.msrb.mxu3 %v7312_v54  ;;  %v7692_v54 = vor.u32 %v9511_v36, %v7691_v7  ;;  %v7788_v27 = vor.u32 %v9535_v48, %v7787_v21  ;;  %v11560_v7 = vpack.c.bf16 %v11252_v5, %v11252_v5  ;;  %v9387_v21 = vld [vmem:[%s10622_s30 + $0x244] sm:$0xf] }
 0x4cf   : > { %v7720_v48 = vor.u32 %v9516_v33, %v7717_v8  ;;  %v9565_v8 = vld [vmem:[%s10622_s30 + $0x7d0] sm:$0xf0] }
 0x4d0   : > { %5587 = vmatpush.bf16.msra.mxu2 %v7728_v58  ;;  %5600 = vmatpush.bf16.msrb.mxu1 %v7824_v37  ;;  %v7679_v58 = vld [vmem:[%s10622_s30 + $0x600] sm:$0xf]  ;;  %v9508_v37 = vld [vmem:[%s10622_s30 + $0x608] sm:$0xf0] }
 0x4d1   : > { %5845 = vmatpush.bf16.msrb.mxu0 %v7276_v62  ;;  %v7775_v62 = vld [vmem:[%s10622_s30 + $0x6c0] sm:$0xf] }
 0x4d2   : > { %5864 = vmatpush.bf16.msrb.mxu3 %v7300_v0  ;;  %v7680_v0 = vor.u32 %v9508_v37, %v7679_v58  ;;  %v9571_v58 = vld [vmem:[%s10622_s30 + $0x800] sm:$0xf0]  ;;  %v7669_v37 = vld [vmem:[%s10622_s30 + $0x5f4] sm:$0xf0] }
 0x4d4   : > { %5588 = vmatpush.bf16.msra.mxu2 %v7716_v18  ;;  %5601 = vmatpush.bf16.msrb.mxu1 %v7812_v29  ;;  %v8051_v18 = vld [vmem:[%s10622_s30 + $0x8e8] sm:$0xf]  ;;  %v9601_v29 = vld [vmem:[%s10622_s30 + $0x8f0] sm:$0xf0] }
 0x4d5   : > { %5846 = vmatpush.bf16.msrb.mxu0 %v7264_v17  ;;  %5865 = vmatmul.bf16.vlgmr.msrb.gmra.mxu3 %v11379_v25  ;;  %v7776_v17 = vor.u32 %v9532_v47, %v7775_v62  ;;  %v8052_v44 = vor.u32 %v9601_v29, %v8051_v18  ;;  %v7204_v62 = vor.u32 %v9387_v21, %v7201_v40  ;;  %v9592_v18 = vld [vmem:[%s10622_s30 + $0x8a8] sm:$0xf0]  ;;  %v9501_v29 = vld [vmem:[%s10622_s30 + $0x5d4] sm:$0xf]  ;;  %v8149_v21 = vld [vmem:[%s10622_s30 + $0x9b4] sm:$0xf0] }
 0x4d6   : > { %5909 = vmatpush.bf16.msra.mxu3 %v7768_v32  ;;  %v9390_v32 = vld [vmem:[%s10622_s30 + $0x25c] sm:$0xf]  ;;  %v7708_v47 = vor.u32 %v9513_v56, %v7705_v13  ;;  %v7895_v13 = vld [vmem:[%s10622_s30 + $0x7b0] sm:$0xf] }
 0x4d7   : > { %v7216_v36 = vor.u32 %v9390_v32, %v7213_v3  ;;  %v7681_v32 = vld [vmem:[%s10622_s30 + $0x60c] sm:$0xf0] }
 0x4d8   : > { %5589 = vmatpush.bf16.msra.mxu2 %v7704_v59  ;;  %5602 = vmatpush.bf16.msrb.mxu1 %v7800_v45  ;;  %v9574_v59 = vld [vmem:[%s10622_s30 + $0x818] sm:$0xf0]  ;;  %v8039_v45 = vld [vmem:[%s10622_s30 + $0x8d0] sm:$0xf] }
 0x4d9   : > { %5847 = vmatpush.bf16.msrb.mxu0 %v7252_v46  ;;  %v9598_v46 = vld [vmem:[%s10622_s30 + $0x8d8] sm:$0xf0]  ;;  %v7944_v24 = vor.u32 %v9574_v59, %v7943_v34  ;;  %v8003_v34 = vld [vmem:[%s10622_s30 + $0x888] sm:$0xf]  ;;  %v9589_v59 = vld [vmem:[%s10622_s30 + $0x890] sm:$0xf0] }
 0x4da   : > { %5910 = vmatpush.bf16.msra.mxu3 %v7756_v1  ;;  %v11565_v1 = vpack.c.bf16 %v11280_v52, %v11280_v52  ;;  %v8040_v5 = vor.u32 %v9598_v46, %v8039_v45  ;;  %v9595_v52 = vld [vmem:[%s10622_s30 + $0x8c0] sm:$0xf0]  ;;  %v9498_v45 = vld [vmem:[%s10622_s30 + $0x5bc] sm:$0xf]  ;;  %v7645_v46 = vld [vmem:[%s10622_s30 + $0x5c4] sm:$0xf0]  ;;  %v8004_v40 = vor.u32 %v9589_v59, %v8003_v34 }
 0x4db   : > { %v7648_v56 = vor.u32 %v9498_v45, %v7645_v46  ;;  %v9489_v34 = vld [vmem:[%s10622_s30 + $0x574] sm:$0xf]  ;;  %v7609_v59 = vld [vmem:[%s10622_s30 + $0x57c] sm:$0xf0]  ;;  %v9615_v45 = vld [vmem:[%s10622_s30 + $0x964] sm:$0xf] }
 0x4dc   : > { %5590 = vmatpush.bf16.msra.mxu2 %v7692_v54  ;;  %5603 = vmatpush.bf16.msrb.mxu1 %v7788_v27  ;;  %v7931_v54 = vld [vmem:[%s10622_s30 + $0x7f8] sm:$0xf]  ;;  %v8113_v46 = vld [vmem:[%s10622_s30 + $0x96c] sm:$0xf0] }
 0x4dd   : > { %5848 = vmatpush.bf16.msrb.mxu0 %v7240_v35  ;;  %v8027_v27 = vld [vmem:[%s10622_s30 + $0x8b8] sm:$0xf]  ;;  %v9504_v35 = vld [vmem:[%s10622_s30 + $0x5ec] sm:$0xf] }
 0x4de   : > { %5911 = vmatpush.bf16.msra.mxu3 %v7744_v19  ;;  %v7932_v19 = vor.u32 %v9571_v58, %v7931_v54  ;;  %v8028_v23 = vor.u32 %v9595_v52, %v8027_v27  ;;  %v7672_v14 = vor.u32 %v9504_v35, %v7669_v37  ;;  %v7991_v54 = vld [vmem:[%s10622_s30 + $0x870] sm:$0xf]  ;;  %v9586_v27 = vld [vmem:[%s10622_s30 + $0x878] sm:$0xf0]  ;;  %v9495_v52 = vld [vmem:[%s10622_s30 + $0x5a4] sm:$0xf] }
 0x4df   : > { %v7633_v35 = vld [vmem:[%s10622_s30 + $0x5ac] sm:$0xf0]  ;;  %v9621_v37 = vld [vmem:[%s10622_s30 + $0x994] sm:$0xf] }
 0x4e0   : > { %5591 = vmatpush.bf16.msra.mxu2 %v7680_v0  ;;  %5604 = vmatpush.bf16.msrb.mxu1 %v7776_v17  ;;  %v8015_v0 = vld [vmem:[%s10622_s30 + $0x8a0] sm:$0xf] }
 0x4e1   : > { %5849 = vmatpush.bf16.msrb.mxu0 %v7228_v42  ;;  %v7657_v17 = vld [vmem:[%s10622_s30 + $0x5dc] sm:$0xf0]  ;;  %v7696_v42 = vor.u32 %v9510_v51, %v7693_v38  ;;  %v8016_v3 = vor.u32 %v9592_v18, %v8015_v0  ;;  %v7636_v51 = vor.u32 %v9495_v52, %v7633_v35  ;;  %v7883_v38 = vld [vmem:[%s10622_s30 + $0x798] sm:$0xf]  ;;  %v9492_v0 = vld [vmem:[%s10622_s30 + $0x58c] sm:$0xf] }
 0x4e2   : > { %5912 = vmatpush.bf16.msra.mxu3 %v7732_v30  ;;  %v7920_v30 = vor.u32 %v9568_v4, %v7919_v2  ;;  %v7660_v33 = vor.u32 %v9501_v29, %v7657_v17  ;;  %v9583_v4 = vld [vmem:[%s10622_s30 + $0x860] sm:$0xf0]  ;;  %v7621_v18 = vld [vmem:[%s10622_s30 + $0x594] sm:$0xf0]  ;;  %v9618_v29 = vld [vmem:[%s10622_s30 + $0x97c] sm:$0xf] }
 0x4e3   : > { %5592 = vmatmul.bf16.vlgmr.msra.gmra.mxu2 %v11560_v7  ;;  %5605 = vmatmul.bf16.vlgmr.msrb.gmra.mxu1 %v11565_v1  ;;  %v8125_v17 = vld [vmem:[%s10622_s30 + $0x984] sm:$0xf0]  ;;  %v9612_v52 = vld [vmem:[%s10622_s30 + $0x94c] sm:$0xf] }
 0x4e4   : > { %5610 = vmatpush.bf16.msrb.mxu2 %v7956_v31  ;;  %5623 = vmatpush.bf16.msra.mxu1 %v8052_v44  ;;  %v9507_v31 = vld [vmem:[%s10622_s30 + $0x604] sm:$0xf]  ;;  %v7907_v44 = vld [vmem:[%s10622_s30 + $0x7c8] sm:$0xf] }
 0x4e5   : > { %5850 = vmatpush.bf16.msrb.mxu0 %v7216_v36  ;;  %v9624_v36 = vld [vmem:[%s10622_s30 + $0x9ac] sm:$0xf] }
 0x4e6   : > { %5913 = vmatpush.bf16.msra.mxu3 %v7720_v48  ;;  %v7684_v48 = vor.u32 %v9507_v31, %v7681_v32  ;;  %v8152_v58 = vor.u32 %v9624_v36, %v8149_v21  ;;  %v7624_v32 = vor.u32 %v9492_v0, %v7621_v18  ;;  %v8147_v36 = vld [vmem:[%s10622_s30 + $0x9a8] sm:$0xf]  ;;  %v9625_v21 = vld [vmem:[%s10622_s30 + $0x9b0] sm:$0xf0]  ;;  %v7585_v18 = vld [vmem:[%s10622_s30 + $0x54c] sm:$0xf0] }
 0x4e8   : > { %5611 = vmatpush.bf16.msrb.mxu2 %v7944_v24  ;;  %5624 = vmatpush.bf16.msra.mxu1 %v8040_v5  ;;  %v7908_v24 = vor.u32 %v9565_v8, %v7907_v44  ;;  %v9562_v5 = vld [vmem:[%s10622_s30 + $0x7b8] sm:$0xf0]  ;;  %v9580_v44 = vld [vmem:[%s10622_s30 + $0x848] sm:$0xf0]  ;;  %v8128_v8 = vor.u32 %v9618_v29, %v8125_v17  ;;  %v9609_v29 = vld [vmem:[%s10622_s30 + $0x934] sm:$0xf] }
 0x4e9   : > { %5851 = vmatpush.bf16.msrb.mxu0 %v7204_v62  ;;  %v8137_v62 = vld [vmem:[%s10622_s30 + $0x99c] sm:$0xf0] }
 0x4ea   : > { %5914 = vmatpush.bf16.msra.mxu3 %v7708_v47  ;;  %v7896_v47 = vor.u32 %v9562_v5, %v7895_v13  ;;  %v8140_v2 = vor.u32 %v9621_v37, %v8137_v62  ;;  %v7612_v13 = vor.u32 %v9489_v34, %v7609_v59  ;;  %v8116_v5 = vor.u32 %v9615_v45, %v8113_v46  ;;  %v8101_v37 = vld [vmem:[%s10622_s30 + $0x954] sm:$0xf0]  ;;  %v8135_v62 = vld [vmem:[%s10622_s30 + $0x990] sm:$0xf]  ;;  %v8089_v17 = vld [vmem:[%s10622_s30 + $0x93c] sm:$0xf0] }
 0x4eb   : > { %v9606_v59 = vld [vmem:[%s10622_s30 + $0x91c] sm:$0xf]  ;;  %v8077_v45 = vld [vmem:[%s10622_s30 + $0x924] sm:$0xf0] }
 0x4ec   : > { %5612 = vmatpush.bf16.msrb.mxu2 %v7932_v19  ;;  %5625 = vmatpush.bf16.msra.mxu1 %v8028_v23  ;;  %v7992_v19 = vor.u32 %v9586_v27, %v7991_v54  ;;  %v9559_v23 = vld [vmem:[%s10622_s30 + $0x7a0] sm:$0xf0]  ;;  %v8148_v54 = vor.u32 %v9625_v21, %v8147_v36  ;;  %v7597_v27 = vld [vmem:[%s10622_s30 + $0x564] sm:$0xf0]  ;;  %v8111_v21 = vld [vmem:[%s10622_s30 + $0x960] sm:$0xf] }
 0x4ed   : > { %5896 = vmatpush.bf16.msra.mxu0 %v7672_v14  ;;  %v7979_v14 = vld [vmem:[%s10622_s30 + $0x858] sm:$0xf] }
 0x4ee   : > { %5852 = vmatmul.bf16.vlgmr.msrb.gmra.mxu0 %v11294_v39  ;;  %5915 = vmatpush.bf16.msra.mxu3 %v7696_v42  ;;  %v7884_v42 = vor.u32 %v9559_v23, %v7883_v38  ;;  %v7980_v31 = vor.u32 %v9583_v4, %v7979_v14  ;;  %v11636_v38 = vpack.c.bf16 %v11283_v49, %v11283_v49  ;;  %v9483_v14 = vld [vmem:[%s10622_s30 + $0x544] sm:$0xf] }
 0x4ef   : > { %v8104_v4 = vor.u32 %v9612_v52, %v8101_v37  ;;  %v8099_v37 = vld [vmem:[%s10622_s30 + $0x948] sm:$0xf] }
 0x4f0   : > { %5613 = vmatpush.bf16.msrb.mxu2 %v7920_v30  ;;  %5626 = vmatpush.bf16.msra.mxu1 %v8016_v3  ;;  %v7871_v30 = vld [vmem:[%s10622_s30 + $0x780] sm:$0xf]  ;;  %v9556_v3 = vld [vmem:[%s10622_s30 + $0x788] sm:$0xf0] }
 0x4f1   : > { %5897 = vmatpush.bf16.msra.mxu0 %v7660_v33  ;;  %v7967_v33 = vld [vmem:[%s10622_s30 + $0x840] sm:$0xf] }
 0x4f2   : > { %5916 = vmatpush.bf16.msra.mxu3 %v7684_v48  ;;  %v7872_v48 = vor.u32 %v9556_v3, %v7871_v30  ;;  %v9619_v30 = vld [vmem:[%s10622_s30 + $0x980] sm:$0xf0]  ;;  %v8053_v3 = vld [vmem:[%s10622_s30 + $0x8f4] sm:$0xf0] }
 0x4f4   : > { %5614 = vmatpush.bf16.msrb.mxu2 %v7908_v24  ;;  %5627 = vmatpush.bf16.msra.mxu1 %v8004_v40  ;;  %v8339_v24 = vld [vmem:[%s10622_s30 + $0xb28] sm:$0xf]  ;;  %v9673_v40 = vld [vmem:[%s10622_s30 + $0xb30] sm:$0xf0] }
 0x4f5   : > { %5898 = vmatpush.bf16.msra.mxu0 %v7648_v56  ;;  %5917 = vmatmul.bf16.vlgmr.msra.gmra.mxu3 %v11560_v7  ;;  %v7968_v56 = vor.u32 %v9580_v44, %v7967_v33  ;;  %v8340_v35 = vor.u32 %v9673_v40, %v8339_v24  ;;  %v7588_v33 = vor.u32 %v9483_v14, %v7585_v18  ;;  %v8303_v24 = vld [vmem:[%s10622_s30 + $0xae0] sm:$0xf]  ;;  %v9664_v40 = vld [vmem:[%s10622_s30 + $0xae8] sm:$0xf0]  ;;  %v8029_v14 = vld [vmem:[%s10622_s30 + $0x8c4] sm:$0xf0] }
 0x4f6   : > { %5961 = vmatpush.bf16.msrb.mxu3 %v8152_v58  ;;  %v9486_v58 = vld [vmem:[%s10622_s30 + $0x55c] sm:$0xf]  ;;  %v8092_v44 = vor.u32 %v9609_v29, %v8089_v17  ;;  %v8304_v52 = vor.u32 %v9664_v40, %v8303_v24  ;;  %v8533_v18 = vld [vmem:[%s10622_s30 + $0xcb4] sm:$0xf0]  ;;  %v9607_v40 = vld [vmem:[%s10622_s30 + $0x920] sm:$0xf0] }
 0x4f7   : > { %v7600_v23 = vor.u32 %v9486_v58, %v7597_v27  ;;  %v9603_v58 = vld [vmem:[%s10622_s30 + $0x904] sm:$0xf]  ;;  %v8065_v27 = vld [vmem:[%s10622_s30 + $0x90c] sm:$0xf0]  ;;  %v8075_v24 = vld [vmem:[%s10622_s30 + $0x918] sm:$0xf] }
 0x4f8   : > { %5615 = vmatpush.bf16.msrb.mxu2 %v7896_v47  ;;  %5628 = vmatpush.bf16.msra.mxu1 %v7992_v19  ;;  %v9622_v47 = vld [vmem:[%s10622_s30 + $0x998] sm:$0xf0]  ;;  %v8327_v19 = vld [vmem:[%s10622_s30 + $0xb10] sm:$0xf]  ;;  %v8068_v29 = vor.u32 %v9603_v58, %v8065_v27  ;;  %v9588_v58 = vld [vmem:[%s10622_s30 + $0x88c] sm:$0xf] }
 0x4f9   : > { %5899 = vmatpush.bf16.msra.mxu0 %v7636_v51  ;;  %v9670_v51 = vld [vmem:[%s10622_s30 + $0xb18] sm:$0xf0]  ;;  %v8136_v0 = vor.u32 %v9622_v47, %v8135_v62  ;;  %v9613_v62 = vld [vmem:[%s10622_s30 + $0x950] sm:$0xf0]  ;;  %v8291_v47 = vld [vmem:[%s10622_s30 + $0xac8] sm:$0xf] }
 0x4fa   : > { %5962 = vmatpush.bf16.msrb.mxu3 %v8140_v2  ;;  %v11641_v2 = vpack.c.bf16 %v11286_v28, %v11286_v28  ;;  %v8328_v49 = vor.u32 %v9670_v51, %v8327_v19  ;;  %v9600_v28 = vld [vmem:[%s10622_s30 + $0x8ec] sm:$0xf]  ;;  %v9661_v51 = vld [vmem:[%s10622_s30 + $0xad0] sm:$0xf0]  ;;  %v8100_v17 = vor.u32 %v9613_v62, %v8099_v37  ;;  %v8005_v27 = vld [vmem:[%s10622_s30 + $0x894] sm:$0xf0] }
 0x4fb   : > { %v8056_v36 = vor.u32 %v9600_v28, %v8053_v3  ;;  %v9610_v28 = vld [vmem:[%s10622_s30 + $0x938] sm:$0xf0]  ;;  %v8279_v3 = vld [vmem:[%s10622_s30 + $0xab0] sm:$0xf] }
 0x4fc   : > { %5616 = vmatpush.bf16.msrb.mxu2 %v7884_v42  ;;  %5629 = vmatpush.bf16.msra.mxu1 %v7980_v31  ;;  %v8123_v42 = vld [vmem:[%s10622_s30 + $0x978] sm:$0xf] }
 0x4fd   : > { %5900 = vmatpush.bf16.msra.mxu0 %v7624_v32  ;;  %v8315_v31 = vld [vmem:[%s10622_s30 + $0xaf8] sm:$0xf]  ;;  %v9667_v32 = vld [vmem:[%s10622_s30 + $0xb00] sm:$0xf0] }
 0x4fe   : > { %5963 = vmatpush.bf16.msrb.mxu3 %v8128_v8  ;;  %v8124_v8 = vor.u32 %v9619_v30, %v8123_v42  ;;  %v8316_v46 = vor.u32 %v9667_v32, %v8315_v31  ;;  %v8292_v30 = vor.u32 %v9661_v51, %v8291_v47  ;;  %v8087_v32 = vld [vmem:[%s10622_s30 + $0x930] sm:$0xf]  ;;  %v8063_v47 = vld [vmem:[%s10622_s30 + $0x900] sm:$0xf]  ;;  %v8008_v51 = vor.u32 %v9588_v58, %v8005_v27 }
 0x4ff   : > { %v8711_v27 = vld [vmem:[%s10622_s30 + $0xe10] sm:$0xf] }
 0x500   : > { %5617 = vmatpush.bf16.msrb.mxu2 %v7872_v48  ;;  %5630 = vmatpush.bf16.msra.mxu1 %v7968_v56  ;;  %v5502_v34 = vpop.f32.mrf.mxu1  ;;  %v9616_v48 = vld [vmem:[%s10622_s30 + $0x968] sm:$0xf0]  ;;  %v9597_v56 = vld [vmem:[%s10622_s30 + $0x8d4] sm:$0xf] }
 0x501   : > { %5901 = vmatpush.bf16.msra.mxu0 %v7612_v13  ;;  %v8041_v13 = vld [vmem:[%s10622_s30 + $0x8dc] sm:$0xf0] }
 0x502   : > { %5964 = vmatpush.bf16.msrb.mxu3 %v8116_v5  ;;  %v8080_v5 = vor.u32 %v9606_v59, %v8077_v45  ;;  %v9717_v59 = vld [vmem:[%s10622_s30 + $0xc94] sm:$0xf]  ;;  %v8521_v45 = vld [vmem:[%s10622_s30 + $0xc9c] sm:$0xf0] }
 0x503   : > { %5618 = vmatmul.bf16.vlgmr.msrb.gmra.mxu2 %v11636_v38  ;;  %5631 = vmatmul.bf16.vlgmr.msra.gmra.mxu1 %v11641_v2 }
 0x504   : > { %5636 = vmatpush.bf16.msra.mxu2 %v8148_v54  ;;  %5662 = vmatpush.bf16.msrb.mxu1 %v8340_v35  ;;  %v8112_v54 = vor.u32 %v9616_v48, %v8111_v21  ;;  %v8044_v35 = vor.u32 %v9597_v56, %v8041_v13  ;;  %v8267_v56 = vld [vmem:[%s10622_s30 + $0xa98] sm:$0xf]  ;;  %v8524_v13 = vor.u32 %v9717_v59, %v8521_v45 }
 0x505   : > { %5902 = vmatpush.bf16.msra.mxu0 %v7600_v23  ;;  %v9594_v23 = vld [vmem:[%s10622_s30 + $0x8bc] sm:$0xf] }
 0x506   : > { %5965 = vmatpush.bf16.msrb.mxu3 %v8104_v4  ;;  %v5489_v19 = vpop.f32.mrf.mxu2  ;;  %v8032_v31 = vor.u32 %v9594_v23, %v8029_v14  ;;  %v9604_v23 = vld [vmem:[%s10622_s30 + $0x908] sm:$0xf0]  ;;  %v8255_v14 = vld [vmem:[%s10622_s30 + $0xa80] sm:$0xf] }
 0x507   : > { %v11671_v4 = vadd.f32 %v5502_v34, %v5489_v19  ;;  %v8017_v34 = vld [vmem:[%s10622_s30 + $0x8ac] sm:$0xf0] }
 0x508   : > { %5637 = vmatpush.bf16.msra.mxu2 %v8136_v0  ;;  %5663 = vmatpush.bf16.msrb.mxu1 %v8328_v49  ;;  %v9720_v0 = vld [vmem:[%s10622_s30 + $0xcac] sm:$0xf]  ;;  %v5504_v49 = vpop.f32.mrf.mxu1  ;;  %v11675_v42 = vpop.f32.mrf.mxu0 }
 0x509   : > { %5903 = vmatpush.bf16.msra.mxu0 %v7588_v33  ;;  %v8536_v33 = vor.u32 %v9720_v0, %v8533_v18  ;;  %v9652_v0 = vld [vmem:[%s10622_s30 + $0xa88] sm:$0xf0]  ;;  %v9711_v49 = vld [vmem:[%s10622_s30 + $0xc64] sm:$0xf] }
 0x50a   : > { %5966 = vmatpush.bf16.msrb.mxu3 %v8092_v44  ;;  %v9658_v44 = vld [vmem:[%s10622_s30 + $0xab8] sm:$0xf0] }
 0x50b   : > { %v8280_v21 = vor.u32 %v9658_v44, %v8279_v3  ;;  %v8723_v3 = vld [vmem:[%s10622_s30 + $0xe28] sm:$0xf]  ;;  %v8256_v44 = vor.u32 %v9652_v0, %v8255_v14  ;;  %v9705_v14 = vld [vmem:[%s10622_s30 + $0xc34] sm:$0xf]  ;;  %v8473_v0 = vld [vmem:[%s10622_s30 + $0xc3c] sm:$0xf0] }
 0x50c   : > { %5638 = vmatpush.bf16.msra.mxu2 %v8124_v8  ;;  %5664 = vmatpush.bf16.msrb.mxu1 %v8316_v46  ;;  %v9591_v8 = vld [vmem:[%s10622_s30 + $0x8a4] sm:$0xf]  ;;  %v8088_v46 = vor.u32 %v9610_v28, %v8087_v32  ;;  %v9697_v32 = vld [vmem:[%s10622_s30 + $0xbf0] sm:$0xf0]  ;;  %v8064_v28 = vor.u32 %v9604_v23, %v8063_v47  ;;  %v11728_v47 = vpack.c.bf16 %v11342_v6, %v11342_v6  ;;  %v7969_v23 = vld [vmem:[%s10622_s30 + $0x84c] sm:$0xf0] }
 0x50d   : > { %5948 = vmatpush.bf16.msrb.mxu0 %v8056_v36  ;;  %v11687_v36 = vpack.c.bf16 %v11329_v11, %v11329_v11  ;;  %v8020_v48 = vor.u32 %v9591_v8, %v8017_v34  ;;  %v8509_v11 = vld [vmem:[%s10622_s30 + $0xc84] sm:$0xf0]  ;;  %v9696_v6 = vld [vmem:[%s10622_s30 + $0xbec] sm:$0xf] }
 0x50e   : > { %5904 = vmatmul.bf16.vlgmr.msra.gmra.mxu0 %v11486_v9  ;;  %5967 = vmatpush.bf16.msrb.mxu3 %v8080_v5  ;;  %v5491_v5 = vpop.f32.mrf.mxu2 }
 0x50f   : > { %v9694_v5 = vld [vmem:[%s10622_s30 + $0xbd8] sm:$0xf0] }
 0x510   : > { %5639 = vmatpush.bf16.msra.mxu2 %v8112_v54  ;;  %5665 = vmatpush.bf16.msrb.mxu1 %v8304_v52  ;;  %v9655_v54 = vld [vmem:[%s10622_s30 + $0xaa0] sm:$0xf0]  ;;  %v9714_v52 = vld [vmem:[%s10622_s30 + $0xc7c] sm:$0xf]  ;;  %v5528_v37 = vpop.f32.mrf.mxu1  ;;  %v5660_v62 = vpop.f32.mrf.mxu0 }
 0x511   : > { %5949 = vmatpush.bf16.msrb.mxu0 %v8044_v35  ;;  %v8076_v35 = vor.u32 %v9607_v40, %v8075_v24  ;;  %v8268_v19 = vor.u32 %v9655_v54, %v8267_v56  ;;  %v8512_v18 = vor.u32 %v9714_v52, %v8509_v11  ;;  %v8485_v56 = vld [vmem:[%s10622_s30 + $0xc54] sm:$0xf0]  ;;  %v9766_v52 = vld [vmem:[%s10622_s30 + $0xe18] sm:$0xf0] }
 0x512   : > { %5968 = vmatpush.bf16.msrb.mxu3 %v8068_v29  ;;  %v9585_v29 = vld [vmem:[%s10622_s30 + $0x874] sm:$0xf] }
 0x514   : > { %5640 = vmatpush.bf16.msra.mxu2 %v8100_v17  ;;  %5666 = vmatpush.bf16.msrb.mxu1 %v8292_v30  ;;  %v7993_v17 = vld [vmem:[%s10622_s30 + $0x87c] sm:$0xf0]  ;;  %v8497_v30 = vld [vmem:[%s10622_s30 + $0xc6c] sm:$0xf0] }
 0x515   : > { %5950 = vmatpush.bf16.msrb.mxu0 %v8032_v31  ;;  %5969 = vmatmul.bf16.vlgmr.msrb.gmra.mxu3 %v11687_v36  ;;  %v8435_v31 = vld [vmem:[%s10622_s30 + $0xbe8] sm:$0xf]  ;;  %v7996_v8 = vor.u32 %v9585_v29, %v7993_v17  ;;  %v8500_v34 = vor.u32 %v9711_v49, %v8497_v30  ;;  %v9691_v29 = vld [vmem:[%s10622_s30 + $0xbc0] sm:$0xf0]  ;;  %v8699_v17 = vld [vmem:[%s10622_s30 + $0xdf8] sm:$0xf] }
 0x516   : > { %6013 = vmatpush.bf16.msra.mxu3 %v8536_v33  ;;  %v9769_v33 = vld [vmem:[%s10622_s30 + $0xe30] sm:$0xf0]  ;;  %v8436_v59 = vor.u32 %v9697_v32, %v8435_v31  ;;  %v5515_v45 = vpop.f32.mrf.mxu2  ;;  %v9763_v49 = vld [vmem:[%s10622_s30 + $0xe00] sm:$0xf0]  ;;  %v8437_v30 = vld [vmem:[%s10622_s30 + $0xbf4] sm:$0xf0]  ;;  %v8476_v32 = vor.u32 %v9705_v14, %v8473_v0 }
 0x517   : > { %v8724_v24 = vor.u32 %v9769_v33, %v8723_v3  ;;  %v5516_v40 = vadd.f32 %v5515_v45, %v11671_v4  ;;  %v9579_v4 = vld [vmem:[%s10622_s30 + $0x844] sm:$0xf]  ;;  %v9702_v33 = vld [vmem:[%s10622_s30 + $0xc1c] sm:$0xf]  ;;  %v9688_v45 = vld [vmem:[%s10622_s30 + $0xba8] sm:$0xf0] }
 0x518   : > { %5641 = vmatpush.bf16.msra.mxu2 %v8088_v46  ;;  %5667 = vmatpush.bf16.msrb.mxu1 %v8280_v21  ;;  %v9582_v46 = vld [vmem:[%s10622_s30 + $0x85c] sm:$0xf]  ;;  %v7981_v21 = vld [vmem:[%s10622_s30 + $0x864] sm:$0xf0]  ;;  %v11717_v54 = vpop.f32.mrf.mxu3  ;;  %v5530_v58 = vpop.f32.mrf.mxu1  ;;  %v7972_v31 = vor.u32 %v9579_v4, %v7969_v23  ;;  %v9757_v14 = vld [vmem:[%s10622_s30 + $0xdd0] sm:$0xf0] }
 0x519   : > { %5951 = vmatpush.bf16.msrb.mxu0 %v8020_v48  ;;  %v9708_v48 = vld [vmem:[%s10622_s30 + $0xc4c] sm:$0xf]  ;;  %v7984_v11 = vor.u32 %v9582_v46, %v7981_v21  ;;  %v11724_v62 = vadd.f32 %v5528_v37, %v5516_v40  ;;  %v8712_v37 = vor.u32 %v9766_v52, %v8711_v27  ;;  %v8687_v46 = vld [vmem:[%s10622_s30 + $0xde0] sm:$0xf]  ;;  %v9693_v40 = vld [vmem:[%s10622_s30 + $0xbd4] sm:$0xf] }
 0x51a   : > { %6014 = vmatpush.bf16.msra.mxu3 %v8524_v13  ;;  %v8423_v13 = vld [vmem:[%s10622_s30 + $0xbd0] sm:$0xf]  ;;  %v9699_v27 = vld [vmem:[%s10622_s30 + $0xc04] sm:$0xf]  ;;  %v8675_v23 = vld [vmem:[%s10622_s30 + $0xdc8] sm:$0xf] }
 0x51b   : > { %v8449_v52 = vld [vmem:[%s10622_s30 + $0xc0c] sm:$0xf0]  ;;  %v9690_v0 = vld [vmem:[%s10622_s30 + $0xbbc] sm:$0xf] }
 0x51c   : > { %5642 = vmatpush.bf16.msra.mxu2 %v8076_v35  ;;  %5668 = vmatpush.bf16.msrb.mxu1 %v8268_v19  ;;  %v11721_v35 = vpop.f32.mrf.mxu0  ;;  %v8488_v19 = vor.u32 %v9708_v48, %v8485_v56  ;;  %v8425_v56 = vld [vmem:[%s10622_s30 + $0xbdc] sm:$0xf0] }
 0x51d   : > { %5952 = vmatpush.bf16.msrb.mxu0 %v8008_v51  ;;  %v8424_v51 = vor.u32 %v9694_v5, %v8423_v13  ;;  %v8428_v4 = vor.u32 %v9693_v40, %v8425_v56  ;;  %v8905_v40 = vld [vmem:[%s10622_s30 + $0xf9c] sm:$0xf0] }
 0x51e   : > { %6015 = vmatpush.bf16.msra.mxu3 %v8512_v18  ;;  %v8411_v18 = vld [vmem:[%s10622_s30 + $0xbb8] sm:$0xf]  ;;  %v5517_v3 = vpop.f32.mrf.mxu2 }
 0x51f   : > { %v9682_v3 = vld [vmem:[%s10622_s30 + $0xb78] sm:$0xf0] }
 0x520   : > { %5643 = vmatpush.bf16.msra.mxu2 %v8064_v28  ;;  %5669 = vmatpush.bf16.msrb.mxu1 %v8256_v44  ;;  %v8412_v28 = vor.u32 %v9691_v29, %v8411_v18  ;;  %v8461_v44 = vld [vmem:[%s10622_s30 + $0xc24] sm:$0xf0]  ;;  %v5712_v21 = vpop.f32.mrf.mxu3  ;;  %v5554_v48 = vpop.f32.mrf.mxu1  ;;  %v9816_v18 = vld [vmem:[%s10622_s30 + $0xfac] sm:$0xf]  ;;  %v8917_v29 = vld [vmem:[%s10622_s30 + $0xfb4] sm:$0xf0] }
 0x521   : > { %5953 = vmatpush.bf16.msrb.mxu0 %v7996_v8  ;;  %v8700_v8 = vor.u32 %v9763_v49, %v8699_v17  ;;  %v8464_v5 = vor.u32 %v9702_v33, %v8461_v44  ;;  %v8452_v17 = vor.u32 %v9699_v27, %v8449_v52  ;;  %v8663_v33 = vld [vmem:[%s10622_s30 + $0xdb0] sm:$0xf]  ;;  %v8920_v44 = vor.u32 %v9816_v18, %v8917_v29  ;;  %v9679_v27 = vld [vmem:[%s10622_s30 + $0xb60] sm:$0xf0]  ;;  %v8651_v52 = vld [vmem:[%s10622_s30 + $0xd98] sm:$0xf] }
 0x522   : > { %6016 = vmatpush.bf16.msra.mxu3 %v8500_v34  ;;  %v8440_v34 = vor.u32 %v9696_v6, %v8437_v30  ;;  %v8676_v30 = vor.u32 %v9757_v14, %v8675_v23  ;;  %v8893_v23 = vld [vmem:[%s10622_s30 + $0xf84] sm:$0xf0] }
 0x523   : > { %5644 = vmatmul.bf16.vlgmr.msra.gmra.mxu2 %v11687_v36  ;;  %5670 = vmatmul.bf16.vlgmr.msrb.gmra.mxu1 %v11728_v47 }
 0x524   : > { %5675 = vmatpush.bf16.msrb.mxu2 %v8436_v59  ;;  %5714 = vmatpush.bf16.msra.mxu1 %v8724_v24  ;;  %v8399_v59 = vld [vmem:[%s10622_s30 + $0xba0] sm:$0xf]  ;;  %v9760_v24 = vld [vmem:[%s10622_s30 + $0xde8] sm:$0xf0]  ;;  %v5699_v13 = vpop.f32.mrf.mxu0 }
 0x525   : > { %5954 = vmatpush.bf16.msrb.mxu0 %v7984_v11  ;;  %v8400_v58 = vor.u32 %v9688_v45, %v8399_v59  ;;  %v8688_v11 = vor.u32 %v9760_v24, %v8687_v46  ;;  %v9754_v59 = vld [vmem:[%s10622_s30 + $0xdb8] sm:$0xf0]  ;;  %v9687_v45 = vld [vmem:[%s10622_s30 + $0xba4] sm:$0xf]  ;;  %v8401_v46 = vld [vmem:[%s10622_s30 + $0xbac] sm:$0xf0] }
 0x526   : > { %6017 = vmatpush.bf16.msra.mxu3 %v8488_v19  ;;  %v8387_v19 = vld [vmem:[%s10622_s30 + $0xb88] sm:$0xf]  ;;  %v5541_v6 = vpop.f32.mrf.mxu2  ;;  %v9813_v24 = vld [vmem:[%s10622_s30 + $0xf94] sm:$0xf]  ;;  %v8664_v13 = vor.u32 %v9754_v59, %v8663_v33 }
 0x527   : > { %v9793_v59 = vld [vmem:[%s10622_s30 + $0xef0] sm:$0xf0] }
 0x528   : > { %5676 = vmatpush.bf16.msrb.mxu2 %v8424_v51  ;;  %5715 = vmatpush.bf16.msra.mxu1 %v8712_v37  ;;  %v9685_v51 = vld [vmem:[%s10622_s30 + $0xb90] sm:$0xf0]  ;;  %v8413_v37 = vld [vmem:[%s10622_s30 + $0xbc4] sm:$0xf0] }
 0x529   : > { %5955 = vmatpush.bf16.msrb.mxu0 %v7972_v31  ;;  %v8388_v49 = vor.u32 %v9685_v51, %v8387_v19  ;;  %v8416_v31 = vor.u32 %v9690_v0, %v8413_v37  ;;  %v8389_v19 = vld [vmem:[%s10622_s30 + $0xb94] sm:$0xf0]  ;;  %v9810_v51 = vld [vmem:[%s10622_s30 + $0xf7c] sm:$0xf]  ;;  %v8351_v37 = vld [vmem:[%s10622_s30 + $0xb40] sm:$0xf] }
 0x52a   : > { %6018 = vmatpush.bf16.msra.mxu3 %v8476_v32  ;;  %v5542_v32 = vadd.f32 %v5541_v6, %v11724_v62  ;;  %v9748_v6 = vld [vmem:[%s10622_s30 + $0xd88] sm:$0xf0] }
 0x52c   : > { %5677 = vmatpush.bf16.msrb.mxu2 %v8412_v28  ;;  %5716 = vmatpush.bf16.msra.mxu1 %v8700_v8  ;;  %v8375_v28 = vld [vmem:[%s10622_s30 + $0xb70] sm:$0xf]  ;;  %v11764_v8 = vpop.f32.mrf.mxu3  ;;  %v11769_v21 = vpop.f32.mrf.mxu0  ;;  %v11773_v62 = vadd.f32 %v5554_v48, %v5542_v32  ;;  %v9684_v48 = vld [vmem:[%s10622_s30 + $0xb8c] sm:$0xf]  ;;  %v9681_v32 = vld [vmem:[%s10622_s30 + $0xb74] sm:$0xf] }
 0x52d   : > { %6000 = vmatpush.bf16.msra.mxu0 %v8440_v34  ;;  %v5556_v34 = vpop.f32.mrf.mxu1  ;;  %v8376_v56 = vor.u32 %v9682_v3, %v8375_v28  ;;  %v8392_v29 = vor.u32 %v9684_v48, %v8389_v19  ;;  %v8377_v28 = vld [vmem:[%s10622_s30 + $0xb7c] sm:$0xf0]  ;;  %v9807_v3 = vld [vmem:[%s10622_s30 + $0xf64] sm:$0xf]  ;;  %v8807_v48 = vld [vmem:[%s10622_s30 + $0xed0] sm:$0xf] }
 0x52e   : > { %5956 = vmatmul.bf16.vlgmr.msrb.gmra.mxu0 %v11641_v2  ;;  %6019 = vmatpush.bf16.msra.mxu3 %v8464_v5  ;;  %v8404_v5 = vor.u32 %v9687_v45, %v8401_v46  ;;  %v5543_v0 = vpop.f32.mrf.mxu2  ;;  %v8819_v34 = vld [vmem:[%s10622_s30 + $0xee8] sm:$0xf]  ;;  %v9790_v19 = vld [vmem:[%s10622_s30 + $0xed8] sm:$0xf0] }
 0x52f   : > { %v9107_v46 = vld [vmem:[%s10622_s30 + $0x1128] sm:$0xf] }
 0x530   : > { %5678 = vmatpush.bf16.msrb.mxu2 %v8400_v58  ;;  %5717 = vmatpush.bf16.msra.mxu1 %v8688_v11  ;;  %v8363_v58 = vld [vmem:[%s10622_s30 + $0xb58] sm:$0xf]  ;;  %v8908_v11 = vor.u32 %v9813_v24, %v8905_v40  ;;  %v9865_v24 = vld [vmem:[%s10622_s30 + $0x1130] sm:$0xf0] }
 0x531   : > { %6001 = vmatpush.bf16.msra.mxu0 %v8428_v4  ;;  %v9751_v4 = vld [vmem:[%s10622_s30 + $0xda0] sm:$0xf0]  ;;  %v8364_v14 = vor.u32 %v9679_v27, %v8363_v58  ;;  %v9678_v58 = vld [vmem:[%s10622_s30 + $0xb5c] sm:$0xf]  ;;  %v8365_v27 = vld [vmem:[%s10622_s30 + $0xb64] sm:$0xf0] }
 0x532   : > { %6020 = vmatpush.bf16.msra.mxu3 %v8452_v17  ;;  %v8652_v18 = vor.u32 %v9751_v4, %v8651_v52  ;;  %v9676_v17 = vld [vmem:[%s10622_s30 + $0xb48] sm:$0xf0]  ;;  %v8869_v4 = vld [vmem:[%s10622_s30 + $0xf54] sm:$0xf0]  ;;  %v8368_v0 = vor.u32 %v9678_v58, %v8365_v27  ;;  %v9071_v58 = vld [vmem:[%s10622_s30 + $0x10e0] sm:$0xf] }
 0x533   : > { %v8352_v45 = vor.u32 %v9676_v17, %v8351_v37  ;;  %v9804_v52 = vld [vmem:[%s10622_s30 + $0xf4c] sm:$0xf]  ;;  %v9675_v37 = vld [vmem:[%s10622_s30 + $0xb44] sm:$0xf]  ;;  %v8808_v17 = vor.u32 %v9790_v19, %v8807_v48 }
 0x534   : > { %5679 = vmatpush.bf16.msrb.mxu2 %v8388_v49  ;;  %5718 = vmatpush.bf16.msra.mxu1 %v8676_v30  ;;  %v8639_v49 = vld [vmem:[%s10622_s30 + $0xd80] sm:$0xf]  ;;  %v8896_v30 = vor.u32 %v9810_v51, %v8893_v23  ;;  %v5751_v33 = vpop.f32.mrf.mxu0  ;;  %v9095_v51 = vld [vmem:[%s10622_s30 + $0x1110] sm:$0xf]  ;;  %v9862_v23 = vld [vmem:[%s10622_s30 + $0x1118] sm:$0xf0] }
 0x535   : > { %6002 = vmatpush.bf16.msra.mxu0 %v8416_v31  ;;  %6021 = vmatmul.bf16.vlgmr.msra.gmra.mxu3 %v11334_v16  ;;  %v5764_v31 = vpop.f32.mrf.mxu3  ;;  %v8640_v40 = vor.u32 %v9748_v6, %v8639_v49  ;;  %v8353_v6 = vld [vmem:[%s10622_s30 + $0xb4c] sm:$0xf0]  ;;  %v9792_v33 = vld [vmem:[%s10622_s30 + $0xeec] sm:$0xf] }
 0x536   : > { %6065 = vmatpush.bf16.msrb.mxu3 %v8920_v44  ;;  %v8881_v44 = vld [vmem:[%s10622_s30 + $0xf6c] sm:$0xf0]  ;;  %v9096_v31 = vor.u32 %v9862_v23, %v9095_v51  ;;  %v9856_v27 = vld [vmem:[%s10622_s30 + $0x10e8] sm:$0xf0]  ;;  %v9795_v23 = vld [vmem:[%s10622_s30 + $0xf04] sm:$0xf] }
 0x538   : > { %5680 = vmatpush.bf16.msrb.mxu2 %v8376_v56  ;;  %5719 = vmatpush.bf16.msra.mxu1 %v8664_v13  ;;  %v8380_v56 = vor.u32 %v9681_v32, %v8377_v28  ;;  %v8884_v13 = vor.u32 %v9807_v3, %v8881_v44  ;;  %v8795_v32 = vld [vmem:[%s10622_s30 + $0xeb8] sm:$0xf]  ;;  %v9787_v28 = vld [vmem:[%s10622_s30 + $0xec0] sm:$0xf0] }
 0x539   : > { %6003 = vmatpush.bf16.msra.mxu0 %v8404_v5  ;;  %v8820_v5 = vor.u32 %v9793_v59, %v8819_v34  ;;  %v9083_v3 = vld [vmem:[%s10622_s30 + $0x10f8] sm:$0xf]  ;;  %v8356_v34 = vor.u32 %v9675_v37, %v8353_v6  ;;  %v9072_v37 = vor.u32 %v9856_v27, %v9071_v58  ;;  %v9781_v6 = vld [vmem:[%s10622_s30 + $0xe90] sm:$0xf0]  ;;  %v8785_v58 = vld [vmem:[%s10622_s30 + $0xeac] sm:$0xf0] }
 0x53a   : > { %6066 = vmatpush.bf16.msrb.mxu3 %v8908_v11  ;;  %v9108_v11 = vor.u32 %v9865_v24, %v9107_v46  ;;  %v8821_v44 = vld [vmem:[%s10622_s30 + $0xef4] sm:$0xf0]  ;;  %v9798_v46 = vld [vmem:[%s10622_s30 + $0xf1c] sm:$0xf]  ;;  %v8845_v24 = vld [vmem:[%s10622_s30 + $0xf24] sm:$0xf0] }
 0x53b   : > { %v8848_v48 = vor.u32 %v9798_v46, %v8845_v24  ;;  %v8759_v46 = vld [vmem:[%s10622_s30 + $0xe70] sm:$0xf]  ;;  %v9778_v24 = vld [vmem:[%s10622_s30 + $0xe78] sm:$0xf0] }
 0x53c   : > { %5681 = vmatpush.bf16.msrb.mxu2 %v8364_v14  ;;  %5720 = vmatpush.bf16.msra.mxu1 %v8652_v18  ;;  %v11806_v14 = vpack.c.bf16 %v11368_v20, %v11368_v20  ;;  %v11811_v18 = vpack.c.bf16 %v11371_v53, %v11371_v53  ;;  %v9801_v20 = vld [vmem:[%s10622_s30 + $0xf34] sm:$0xf]  ;;  %v9859_v53 = vld [vmem:[%s10622_s30 + $0x1100] sm:$0xf0] }
 0x53d   : > { %6004 = vmatpush.bf16.msra.mxu0 %v8392_v29  ;;  %v8872_v29 = vor.u32 %v9804_v52, %v8869_v4  ;;  %v11813_v49 = vpop.f32.mrf.mxu3  ;;  %v9789_v52 = vld [vmem:[%s10622_s30 + $0xed4] sm:$0xf] }
 0x53e   : > { %6067 = vmatpush.bf16.msrb.mxu3 %v8896_v30  ;;  %v8857_v30 = vld [vmem:[%s10622_s30 + $0xf3c] sm:$0xf0] }
 0x53f   : > { %v8860_v59 = vor.u32 %v9801_v20, %v8857_v30  ;;  %v9059_v20 = vld [vmem:[%s10622_s30 + $0x10c8] sm:$0xf]  ;;  %v9853_v30 = vld [vmem:[%s10622_s30 + $0x10d0] sm:$0xf0] }
 0x540   : > { %5682 = vmatpush.bf16.msrb.mxu2 %v8352_v45  ;;  %5721 = vmatpush.bf16.msra.mxu1 %v8640_v40  ;;  %v8796_v45 = vor.u32 %v9787_v28, %v8795_v32  ;;  %v9084_v40 = vor.u32 %v9859_v53, %v9083_v3  ;;  %v5580_v4 = vpop.f32.mrf.mxu1  ;;  %v8797_v32 = vld [vmem:[%s10622_s30 + $0xec4] sm:$0xf0]  ;;  %v9912_v28 = vld [vmem:[%s10622_s30 + $0x12ac] sm:$0xf]  ;;  %v9301_v3 = vld [vmem:[%s10622_s30 + $0x12b4] sm:$0xf0] }
 0x541   : > { %6005 = vmatpush.bf16.msra.mxu0 %v8380_v56  ;;  %v8824_v56 = vor.u32 %v9792_v33, %v8821_v44 }
 0x542   : > { %6068 = vmatpush.bf16.msrb.mxu3 %v8884_v13  ;;  %v8783_v13 = vld [vmem:[%s10622_s30 + $0xea0] sm:$0xf] }
 0x543   : > { %5683 = vmatmul.bf16.vlgmr.msrb.gmra.mxu2 %v11806_v14  ;;  %5722 = vmatmul.bf16.vlgmr.msra.gmra.mxu1 %v11811_v18 }
 0x544   : > { %5727 = vmatpush.bf16.msra.mxu2 %v8820_v5  ;;  %5766 = vmatpush.bf16.msrb.mxu1 %v9108_v11  ;;  %v9784_v5 = vld [vmem:[%s10622_s30 + $0xea8] sm:$0xf0]  ;;  %v8809_v11 = vld [vmem:[%s10622_s30 + $0xedc] sm:$0xf0] }
 0x545   : > { %6006 = vmatpush.bf16.msra.mxu0 %v8368_v0  ;;  %v8784_v19 = vor.u32 %v9784_v5, %v8783_v13  ;;  %v5816_v51 = vpop.f32.mrf.mxu3  ;;  %v8833_v0 = vld [vmem:[%s10622_s30 + $0xf0c] sm:$0xf0]  ;;  %v9850_v13 = vld [vmem:[%s10622_s30 + $0x10b8] sm:$0xf0]  ;;  %v9783_v5 = vld [vmem:[%s10622_s30 + $0xea4] sm:$0xf] }
 0x546   : > { %6069 = vmatpush.bf16.msrb.mxu3 %v8872_v29  ;;  %v8812_v29 = vor.u32 %v9789_v52, %v8809_v11  ;;  %v8836_v53 = vor.u32 %v9795_v23, %v8833_v0  ;;  %v5567_v44 = vpop.f32.mrf.mxu2  ;;  %v9909_v11 = vld [vmem:[%s10622_s30 + $0x1294] sm:$0xf]  ;;  %v8788_v23 = vor.u32 %v9783_v5, %v8785_v58  ;;  %v8747_v0 = vld [vmem:[%s10622_s30 + $0xe58] sm:$0xf]  ;;  %v9203_v5 = vld [vmem:[%s10622_s30 + $0x11e8] sm:$0xf] }
 0x547   : > { %v9889_v58 = vld [vmem:[%s10622_s30 + $0x11f0] sm:$0xf0] }
 0x548   : > { %5728 = vmatpush.bf16.msra.mxu2 %v8808_v17  ;;  %5767 = vmatpush.bf16.msrb.mxu1 %v9096_v31  ;;  %v8771_v17 = vld [vmem:[%s10622_s30 + $0xe88] sm:$0xf]  ;;  %v9786_v31 = vld [vmem:[%s10622_s30 + $0xebc] sm:$0xf]  ;;  %v5582_v27 = vpop.f32.mrf.mxu1 }
 0x549   : > { %6007 = vmatpush.bf16.msra.mxu0 %v8356_v34  ;;  %v8772_v33 = vor.u32 %v9781_v6, %v8771_v17  ;;  %v9060_v34 = vor.u32 %v9853_v30, %v9059_v20  ;;  %v9847_v6 = vld [vmem:[%s10622_s30 + $0x10a0] sm:$0xf0]  ;;  %v8773_v20 = vld [vmem:[%s10622_s30 + $0xe94] sm:$0xf0]  ;;  %v9906_v30 = vld [vmem:[%s10622_s30 + $0x127c] sm:$0xf] }
 0x54a   : > { %6070 = vmatpush.bf16.msrb.mxu3 %v8860_v59  ;;  %v8800_v59 = vor.u32 %v9786_v31, %v8797_v32  ;;  %v9277_v31 = vld [vmem:[%s10622_s30 + $0x1284] sm:$0xf0] }
 0x54b   : > { %v11852_v52 = vpop.f32.mrf.mxu0 }
 0x54c   : > { %5729 = vmatpush.bf16.msra.mxu2 %v8796_v45  ;;  %5768 = vmatpush.bf16.msrb.mxu1 %v9084_v40  ;;  %v5568_v45 = vadd.f32 %v5567_v44, %v11773_v62  ;;  %v9047_v40 = vld [vmem:[%s10622_s30 + $0x10b0] sm:$0xf]  ;;  %v8760_v62 = vor.u32 %v9778_v24, %v8759_v46  ;;  %v9772_v44 = vld [vmem:[%s10622_s30 + $0xe48] sm:$0xf0]  ;;  %v9777_v46 = vld [vmem:[%s10622_s30 + $0xe74] sm:$0xf] }
 0x54d   : > { %6052 = vmatpush.bf16.msrb.mxu0 %v8824_v56  ;;  %v9304_v56 = vor.u32 %v9912_v28, %v9301_v3  ;;  %v9048_v51 = vor.u32 %v9850_v13, %v9047_v40  ;;  %v8735_v3 = vld [vmem:[%s10622_s30 + $0xe40] sm:$0xf]  ;;  %v9903_v40 = vld [vmem:[%s10622_s30 + $0x1264] sm:$0xf]  ;;  %v9265_v13 = vld [vmem:[%s10622_s30 + $0x126c] sm:$0xf0] }
 0x54e   : > { %6008 = vmatmul.bf16.vlgmr.msra.gmra.mxu0 %v11806_v14  ;;  %6071 = vmatpush.bf16.msrb.mxu3 %v8848_v48  ;;  %v9289_v48 = vld [vmem:[%s10622_s30 + $0x129c] sm:$0xf0]  ;;  %v5569_v28 = vpop.f32.mrf.mxu2  ;;  %v8736_v27 = vor.u32 %v9772_v44, %v8735_v3 }
 0x54f   : > { %v9292_v17 = vor.u32 %v9909_v11, %v9289_v48  ;;  %v8761_v24 = vld [vmem:[%s10622_s30 + $0xe7c] sm:$0xf0]  ;;  %v9360_v11 = vld [vmem:[%s10622_s30 + $0x16c] sm:$0xf]  ;;  %v7093_v48 = vld [vmem:[%s10622_s30 + $0x174] sm:$0xf0]  ;;  %v11889_v28 = vpack.c.bf16 %v11377_v57, %v11377_v57 }
 0x550   : > { %5730 = vmatpush.bf16.msra.mxu2 %v8784_v19  ;;  %5769 = vmatpush.bf16.msrb.mxu1 %v9072_v37  ;;  %v11856_v19 = vadd.f32 %v5580_v4, %v5568_v45  ;;  %v9775_v37 = vld [vmem:[%s10622_s30 + $0xe60] sm:$0xf0]  ;;  %v9780_v4 = vld [vmem:[%s10622_s30 + $0xe8c] sm:$0xf]  ;;  %v9280_v45 = vor.u32 %v9906_v30, %v9277_v31  ;;  %v9886_v30 = vld [vmem:[%s10622_s30 + $0x11d8] sm:$0xf0] }
 0x551   : > { %6053 = vmatpush.bf16.msrb.mxu0 %v8812_v29  ;;  %v9035_v29 = vld [vmem:[%s10622_s30 + $0x1098] sm:$0xf]  ;;  %v8748_v32 = vor.u32 %v9775_v37, %v8747_v0  ;;  %v9204_v0 = vor.u32 %v9889_v58, %v9203_v5  ;;  %v9774_v37 = vld [vmem:[%s10622_s30 + $0xe5c] sm:$0xf]  ;;  %v9357_v31 = vld [vmem:[%s10622_s30 + $0x154] sm:$0xf] }
 0x552   : > { %6072 = vmatpush.bf16.msrb.mxu3 %v8836_v53  ;;  %v9036_v53 = vor.u32 %v9847_v6, %v9035_v29  ;;  %v8749_v29 = vld [vmem:[%s10622_s30 + $0xe64] sm:$0xf0]  ;;  %v7096_v6 = vor.u32 %v9360_v11, %v7093_v48  ;;  %v9897_v57 = vld [vmem:[%s10622_s30 + $0x1234] sm:$0xf]  ;;  %v9888_v5 = vld [vmem:[%s10622_s30 + $0x11ec] sm:$0xf] }
 0x553   : > { %v8752_v3 = vor.u32 %v9774_v37, %v8749_v29  ;;  %v9205_v58 = vld [vmem:[%s10622_s30 + $0x11f4] sm:$0xf0]  ;;  %v9167_v37 = vld [vmem:[%s10622_s30 + $0x11a0] sm:$0xf]  ;;  %v9880_v29 = vld [vmem:[%s10622_s30 + $0x11a8] sm:$0xf0] }
 0x554   : > { %5731 = vmatpush.bf16.msra.mxu2 %v8772_v33  ;;  %5770 = vmatpush.bf16.msrb.mxu1 %v9060_v34  ;;  %v8776_v33 = vor.u32 %v9780_v4, %v8773_v20  ;;  %v9023_v34 = vld [vmem:[%s10622_s30 + $0x1080] sm:$0xf]  ;;  %v9253_v4 = vld [vmem:[%s10622_s30 + $0x1254] sm:$0xf0]  ;;  %v9191_v20 = vld [vmem:[%s10622_s30 + $0x11d0] sm:$0xf] }
 0x555   : > { %6054 = vmatpush.bf16.msrb.mxu0 %v8800_v59  ;;  %6073 = vmatmul.bf16.vlgmr.msrb.gmra.mxu3 %v11420_v26  ;;  %v9844_v59 = vld [vmem:[%s10622_s30 + $0x1088] sm:$0xf0] }
 0x556   : > { %6117 = vmatpush.bf16.msra.mxu3 %v9304_v56  ;;  %v5803_v56 = vpop.f32.mrf.mxu0 }
 0x557   : > { %v9883_v56 = vld [vmem:[%s10622_s30 + $0x11c0] sm:$0xf0] }
 0x558   : > { %5732 = vmatpush.bf16.msra.mxu2 %v8760_v62  ;;  %5771 = vmatpush.bf16.msrb.mxu1 %v9048_v51  ;;  %v9024_v62 = vor.u32 %v9844_v59, %v9023_v34  ;;  %v8764_v51 = vor.u32 %v9777_v46, %v8761_v24  ;;  %v9192_v34 = vor.u32 %v9886_v30, %v9191_v20  ;;  %v11896_v59 = vpop.f32.mrf.mxu3  ;;  %v9241_v46 = vld [vmem:[%s10622_s30 + $0x123c] sm:$0xf0] }
 0x559   : > { %6055 = vmatpush.bf16.msrb.mxu0 %v8788_v23  ;;  %v9268_v23 = vor.u32 %v9903_v40, %v9265_v13  ;;  %v9179_v40 = vld [vmem:[%s10622_s30 + $0x11b8] sm:$0xf]  ;;  %v9354_v13 = vld [vmem:[%s10622_s30 + $0x13c] sm:$0xf]  ;;  %v9244_v11 = vor.u32 %v9897_v57, %v9241_v46  ;;  %v9193_v20 = vld [vmem:[%s10622_s30 + $0x11dc] sm:$0xf0] }
 0x55a   : > { %6118 = vmatpush.bf16.msra.mxu3 %v9292_v17  ;;  %v9900_v17 = vld [vmem:[%s10622_s30 + $0x124c] sm:$0xf]  ;;  %v9180_v48 = vor.u32 %v9883_v56, %v9179_v40  ;;  %v9155_v57 = vld [vmem:[%s10622_s30 + $0x1188] sm:$0xf]  ;;  %v9877_v46 = vld [vmem:[%s10622_s30 + $0x1190] sm:$0xf0] }
 0x55b   : > { %v9256_v44 = vor.u32 %v9900_v17, %v9253_v4  ;;  %v9351_v17 = vld [vmem:[%s10622_s30 + $0x124] sm:$0xf]  ;;  %v9885_v4 = vld [vmem:[%s10622_s30 + $0x11d4] sm:$0xf]  ;;  %v7045_v40 = vld [vmem:[%s10622_s30 + $0x114] sm:$0xf0] }
 0x55c   : > { %5733 = vmatpush.bf16.msra.mxu2 %v8748_v32  ;;  %5772 = vmatpush.bf16.msrb.mxu1 %v9036_v53  ;;  %v7081_v32 = vld [vmem:[%s10622_s30 + $0x15c] sm:$0xf0]  ;;  %v9771_v53 = vld [vmem:[%s10622_s30 + $0xe44] sm:$0xf]  ;;  %v9882_v56 = vld [vmem:[%s10622_s30 + $0x11bc] sm:$0xf] }
 0x55d   : > { %6056 = vmatpush.bf16.msrb.mxu0 %v8776_v33  ;;  %v11894_v33 = vpack.c.bf16 %v11391_v60, %v11391_v60  ;;  %v7084_v24 = vor.u32 %v9357_v31, %v7081_v32  ;;  %v7069_v60 = vld [vmem:[%s10622_s30 + $0x144] sm:$0xf0]  ;;  %v9168_v32 = vor.u32 %v9880_v29, %v9167_v37  ;;  %v9345_v37 = vld [vmem:[%s10622_s30 + $0xf4] sm:$0xf] }
 0x55e   : > { %6119 = vmatpush.bf16.msra.mxu3 %v9280_v45  ;;  %v8737_v45 = vld [vmem:[%s10622_s30 + $0xe4c] sm:$0xf0] }
 0x560   : > { %5734 = vmatpush.bf16.msra.mxu2 %v8736_v27  ;;  %5773 = vmatpush.bf16.msrb.mxu1 %v9024_v62  ;;  %v8740_v27 = vor.u32 %v9771_v53, %v8737_v45  ;;  %v9894_v62 = vld [vmem:[%s10622_s30 + $0x121c] sm:$0xf]  ;;  %v5606_v30 = vpop.f32.mrf.mxu1  ;;  %v9891_v53 = vld [vmem:[%s10622_s30 + $0x1204] sm:$0xf]  ;;  %v9196_v45 = vor.u32 %v9885_v4, %v9193_v20  ;;  %v9169_v4 = vld [vmem:[%s10622_s30 + $0x11ac] sm:$0xf0] }
 0x561   : > { %6057 = vmatpush.bf16.msrb.mxu0 %v8764_v51  ;;  %v9229_v51 = vld [vmem:[%s10622_s30 + $0x1224] sm:$0xf0] }
 0x562   : > { %6120 = vmatpush.bf16.msra.mxu3 %v9268_v23  ;;  %v7072_v23 = vor.u32 %v9354_v13, %v7069_v60  ;;  %v9232_v31 = vor.u32 %v9894_v62, %v9229_v51  ;;  %v9181_v13 = vld [vmem:[%s10622_s30 + $0x11c4] sm:$0xf0]  ;;  %v7291_v60 = vld [vmem:[%s10622_s30 + $0x2f0] sm:$0xf] }
 0x563   : > { %5735 = vmatmul.bf16.vlgmr.msra.gmra.mxu2 %v11889_v28  ;;  %5774 = vmatmul.bf16.vlgmr.msrb.gmra.mxu1 %v11894_v33  ;;  %v9184_v62 = vor.u32 %v9882_v56, %v9181_v13  ;;  %v9157_v56 = vld [vmem:[%s10622_s30 + $0x1194] sm:$0xf0]  ;;  %v7267_v13 = vld [vmem:[%s10622_s30 + $0x2c0] sm:$0xf] }
 0x564   : > { %5779 = vmatpush.bf16.msrb.mxu2 %v9204_v0  ;;  %5818 = vmatpush.bf16.msra.mxu1 %v7096_v6  ;;  %v9208_v0 = vor.u32 %v9888_v5, %v9205_v58  ;;  %v7057_v6 = vld [vmem:[%s10622_s30 + $0x12c] sm:$0xf0]  ;;  %v9410_v5 = vld [vmem:[%s10622_s30 + $0x2f8] sm:$0xf0] }
 0x565   : > { %6058 = vmatpush.bf16.msrb.mxu0 %v8752_v3  ;;  %v5868_v3 = vpop.f32.mrf.mxu3  ;;  %v7292_v29 = vor.u32 %v9410_v5, %v7291_v60  ;;  %v9404_v60 = vld [vmem:[%s10622_s30 + $0x2c8] sm:$0xf0] }
 0x566   : > { %6121 = vmatpush.bf16.msra.mxu3 %v9256_v44  ;;  %v9217_v44 = vld [vmem:[%s10622_s30 + $0x120c] sm:$0xf0]  ;;  %v9407_v3 = vld [vmem:[%s10622_s30 + $0x2e0] sm:$0xf0] }
 0x567   : > { %v9220_v58 = vor.u32 %v9891_v53, %v9217_v44 }
 0x568   : > { %5780 = vmatpush.bf16.msrb.mxu2 %v9192_v34  ;;  %5819 = vmatpush.bf16.msra.mxu1 %v7084_v24  ;;  %v7060_v34 = vor.u32 %v9351_v17, %v7057_v6  ;;  %v9348_v24 = vld [vmem:[%s10622_s30 + $0x10c] sm:$0xf]  ;;  %v7033_v17 = vld [vmem:[%s10622_s30 + $0xfc] sm:$0xf0]  ;;  %v9879_v6 = vld [vmem:[%s10622_s30 + $0x11a4] sm:$0xf]  ;;  %v5608_v20 = vpop.f32.mrf.mxu1 }
 0x569   : > { %6059 = vmatpush.bf16.msrb.mxu0 %v8740_v27  ;;  %v9156_v27 = vor.u32 %v9877_v46, %v9155_v57  ;;  %v7036_v44 = vor.u32 %v9345_v37, %v7033_v17  ;;  %v9871_v57 = vld [vmem:[%s10622_s30 + $0x1160] sm:$0xf0]  ;;  %v9342_v46 = vld [vmem:[%s10622_s30 + $0xdc] sm:$0xf]  ;;  %v9873_v37 = vld [vmem:[%s10622_s30 + $0x1174] sm:$0xf] }
 0x56a   : > { %6122 = vmatpush.bf16.msra.mxu3 %v9244_v11  ;;  %v5593_v11 = vpop.f32.mrf.mxu2  ;;  %v7255_v17 = vld [vmem:[%s10622_s30 + $0x2a8] sm:$0xf]  ;;  %v9384_v20 = vld [vmem:[%s10622_s30 + $0x22c] sm:$0xf] }
 0x56b   : > { %v5594_v51 = vadd.f32 %v5593_v11, %v11856_v19 }
 0x56c   : > { %5781 = vmatpush.bf16.msrb.mxu2 %v9180_v48  ;;  %5820 = vmatpush.bf16.msra.mxu1 %v7072_v23  ;;  %v7048_v48 = vor.u32 %v9348_v24, %v7045_v40  ;;  %v9143_v23 = vld [vmem:[%s10622_s30 + $0x1170] sm:$0xf]  ;;  %v7021_v40 = vld [vmem:[%s10622_s30 + $0xe4] sm:$0xf0] }
 0x56d   : > { %6104 = vmatpush.bf16.msra.mxu0 %v9208_v0  ;;  %v9874_v0 = vld [vmem:[%s10622_s30 + $0x1178] sm:$0xf0]  ;;  %v11939_v53 = vadd.f32 %v5606_v30, %v5594_v51  ;;  %v9876_v30 = vld [vmem:[%s10622_s30 + $0x118c] sm:$0xf]  ;;  %v7024_v11 = vor.u32 %v9342_v46, %v7021_v40  ;;  %v9339_v51 = vld [vmem:[%s10622_s30 + $0xc4] sm:$0xf] }
 0x56e   : > { %6060 = vmatmul.bf16.vlgmr.msrb.gmra.mxu0 %v11889_v28  ;;  %6123 = vmatpush.bf16.msra.mxu3 %v9232_v31  ;;  %v11935_v31 = vpop.f32.mrf.mxu0  ;;  %v9144_v19 = vor.u32 %v9874_v0, %v9143_v23  ;;  %v7009_v23 = vld [vmem:[%s10622_s30 + $0xcc] sm:$0xf0]  ;;  %v7268_v0 = vor.u32 %v9404_v60, %v7267_v13  ;;  %v9133_v40 = vld [vmem:[%s10622_s30 + $0x1164] sm:$0xf0]  ;;  %v9398_v13 = vld [vmem:[%s10622_s30 + $0x298] sm:$0xf0] }
 0x56f   : > { %v9381_v60 = vld [vmem:[%s10622_s30 + $0x214] sm:$0xf] }
 0x570   : > { %5782 = vmatpush.bf16.msrb.mxu2 %v9168_v32  ;;  %5821 = vmatpush.bf16.msra.mxu1 %v7060_v34  ;;  %v7279_v32 = vld [vmem:[%s10622_s30 + $0x2d8] sm:$0xf]  ;;  %v9172_v34 = vor.u32 %v9879_v6, %v9169_v4  ;;  %v9401_v4 = vld [vmem:[%s10622_s30 + $0x2b0] sm:$0xf0] }
 0x571   : > { %6105 = vmatpush.bf16.msra.mxu0 %v9196_v45  ;;  %v9131_v45 = vld [vmem:[%s10622_s30 + $0x1158] sm:$0xf]  ;;  %v7280_v24 = vor.u32 %v9407_v3, %v7279_v32 }
 0x572   : > { %6124 = vmatpush.bf16.msra.mxu3 %v9220_v58  ;;  %v9132_v5 = vor.u32 %v9871_v57, %v9131_v45  ;;  %v5595_v58 = vpop.f32.mrf.mxu2  ;;  %v7189_v32 = vld [vmem:[%s10622_s30 + $0x234] sm:$0xf0]  ;;  %v7256_v57 = vor.u32 %v9401_v4, %v7255_v17  ;;  %v9395_v17 = vld [vmem:[%s10622_s30 + $0x280] sm:$0xf0]  ;;  %v7165_v4 = vld [vmem:[%s10622_s30 + $0x204] sm:$0xf0] }
 0x573   : > { %v7192_v46 = vor.u32 %v9384_v20, %v7189_v32  ;;  %v9453_v58 = vld [vmem:[%s10622_s30 + $0x454] sm:$0xf]  ;;  %v9450_v20 = vld [vmem:[%s10622_s30 + $0x43c] sm:$0xf]  ;;  %v7453_v32 = vld [vmem:[%s10622_s30 + $0x444] sm:$0xf0] }
 0x574   : > { %5783 = vmatpush.bf16.msrb.mxu2 %v9156_v27  ;;  %5822 = vmatpush.bf16.msra.mxu1 %v7048_v48  ;;  %v9119_v27 = vld [vmem:[%s10622_s30 + $0x1140] sm:$0xf]  ;;  %v9160_v48 = vor.u32 %v9876_v30, %v9157_v56  ;;  %v7243_v30 = vld [vmem:[%s10622_s30 + $0x290] sm:$0xf] }
 0x575   : > { %6106 = vmatpush.bf16.msra.mxu0 %v9184_v62  ;;  %6125 = vmatmul.bf16.vlgmr.msra.gmra.mxu3 %v11508_v50  ;;  %v9868_v62 = vld [vmem:[%s10622_s30 + $0x1148] sm:$0xf0] }
 0x576   : > { %6169 = vmatpush.bf16.msrb.mxu3 %v7292_v29  ;;  %v9145_v29 = vld [vmem:[%s10622_s30 + $0x117c] sm:$0xf0]  ;;  %v5855_v6 = vpop.f32.mrf.mxu0  ;;  %v9120_v3 = vor.u32 %v9868_v62, %v9119_v27  ;;  %v9867_v62 = vld [vmem:[%s10622_s30 + $0x1144] sm:$0xf] }
 0x577   : > { %v9148_v45 = vor.u32 %v9873_v37, %v9145_v29  ;;  %v7465_v27 = vld [vmem:[%s10622_s30 + $0x45c] sm:$0xf0]  ;;  %v9121_v37 = vld [vmem:[%s10622_s30 + $0x114c] sm:$0xf0]  ;;  %v7231_v29 = vld [vmem:[%s10622_s30 + $0x278] sm:$0xf] }
 0x578   : > { %5784 = vmatpush.bf16.msrb.mxu2 %v9144_v19  ;;  %5823 = vmatpush.bf16.msra.mxu1 %v7036_v44  ;;  %v9456_v19 = vld [vmem:[%s10622_s30 + $0x46c] sm:$0xf]  ;;  %v7477_v44 = vld [vmem:[%s10622_s30 + $0x474] sm:$0xf0]  ;;  %v9378_v6 = vld [vmem:[%s10622_s30 + $0x1fc] sm:$0xf] }
 0x579   : > { %6107 = vmatpush.bf16.msra.mxu0 %v9172_v34  ;;  %v7012_v34 = vor.u32 %v9339_v51, %v7009_v23  ;;  %v7480_v56 = vor.u32 %v9456_v19, %v7477_v44  ;;  %v7244_v51 = vor.u32 %v9398_v13, %v7243_v30  ;;  %v9386_v19 = vld [vmem:[%s10622_s30 + $0x238] sm:$0xf0]  ;;  %v9124_v44 = vor.u32 %v9867_v62, %v9121_v37  ;;  %v9375_v30 = vld [vmem:[%s10622_s30 + $0x1e4] sm:$0xf]  ;;  %v9389_v37 = vld [vmem:[%s10622_s30 + $0x250] sm:$0xf0] }
 0x57a   : > { %6170 = vmatpush.bf16.msrb.mxu3 %v7280_v24  ;;  %v9870_v24 = vld [vmem:[%s10622_s30 + $0x115c] sm:$0xf]  ;;  %v9447_v13 = vld [vmem:[%s10622_s30 + $0x424] sm:$0xf] }
 0x57c   : > { %5785 = vmatpush.bf16.msrb.mxu2 %v9132_v5  ;;  %5824 = vmatpush.bf16.msra.mxu1 %v7024_v11  ;;  %v7177_v5 = vld [vmem:[%s10622_s30 + $0x21c] sm:$0xf0]  ;;  %v11972_v11 = vpack.c.bf16 %v11394_v61, %v11394_v61  ;;  %v7468_v61 = vor.u32 %v9453_v58, %v7465_v27  ;;  %v9383_v58 = vld [vmem:[%s10622_s30 + $0x220] sm:$0xf0] }
 0x57d   : > { %6108 = vmatpush.bf16.msra.mxu0 %v9160_v48  ;;  %v9136_v48 = vor.u32 %v9870_v24, %v9133_v40  ;;  %v7180_v23 = vor.u32 %v9381_v60, %v7177_v5  ;;  %v7456_v24 = vor.u32 %v9450_v20, %v7453_v32  ;;  %v7441_v60 = vld [vmem:[%s10622_s30 + $0x42c] sm:$0xf0]  ;;  %v7183_v5 = vld [vmem:[%s10622_s30 + $0x218] sm:$0xf]  ;;  %v7171_v32 = vld [vmem:[%s10622_s30 + $0x200] sm:$0xf] }
 0x57e   : > { %6171 = vmatpush.bf16.msrb.mxu3 %v7268_v0  ;;  %v11975_v0 = vpop.f32.mrf.mxu3  ;;  %v7429_v20 = vld [vmem:[%s10622_s30 + $0x414] sm:$0xf0] }
 0x580   : > { %5786 = vmatpush.bf16.msrb.mxu2 %v9120_v3  ;;  %5825 = vmatpush.bf16.msra.mxu1 %v7012_v34  ;;  %v7195_v3 = vld [vmem:[%s10622_s30 + $0x230] sm:$0xf]  ;;  %v7232_v34 = vor.u32 %v9395_v17, %v7231_v29  ;;  %v5632_v27 = vpop.f32.mrf.mxu1  ;;  %v7444_v29 = vor.u32 %v9447_v13, %v7441_v60  ;;  %v7184_v17 = vor.u32 %v9383_v58, %v7183_v5  ;;  %v9441_v13 = vld [vmem:[%s10622_s30 + $0x3f4] sm:$0xf]  ;;  %v7417_v5 = vld [vmem:[%s10622_s30 + $0x3fc] sm:$0xf0] }
 0x581   : > { %6109 = vmatpush.bf16.msra.mxu0 %v9148_v45  ;;  %v7168_v45 = vor.u32 %v9378_v6, %v7165_v4  ;;  %v7196_v40 = vor.u32 %v9386_v19, %v7195_v3  ;;  %v7141_v6 = vld [vmem:[%s10622_s30 + $0x1d4] sm:$0xf0]  ;;  %v9444_v4 = vld [vmem:[%s10622_s30 + $0x40c] sm:$0xf]  ;;  %v7675_v19 = vld [vmem:[%s10622_s30 + $0x5f0] sm:$0xf] }
 0x582   : > { %6172 = vmatpush.bf16.msrb.mxu3 %v7256_v57  ;;  %v7219_v57 = vld [vmem:[%s10622_s30 + $0x260] sm:$0xf]  ;;  %v9380_v3 = vld [vmem:[%s10622_s30 + $0x208] sm:$0xf0]  ;;  %v7159_v58 = vld [vmem:[%s10622_s30 + $0x1e8] sm:$0xf] }
 0x583   : > { %5787 = vmatmul.bf16.vlgmr.msrb.gmra.mxu2 %v11972_v11  ;;  %5826 = vmatmul.bf16.vlgmr.msra.gmra.mxu1 %v11199_v12 }
 0x584   : > { %5831 = vmatpush.bf16.msra.mxu2 %v7192_v46  ;;  %5870 = vmatpush.bf16.msrb.mxu1 %v7480_v56  ;;  %v9392_v46 = vld [vmem:[%s10622_s30 + $0x268] sm:$0xf0]  ;;  %v7153_v56 = vld [vmem:[%s10622_s30 + $0x1ec] sm:$0xf0] }
 0x585   : > { %6110 = vmatpush.bf16.msra.mxu0 %v9136_v48  ;;  %v7220_v48 = vor.u32 %v9392_v46, %v7219_v57  ;;  %v7156_v62 = vor.u32 %v9375_v30, %v7153_v56  ;;  %v7432_v46 = vor.u32 %v9444_v4, %v7429_v20  ;;  %v9369_v30 = vld [vmem:[%s10622_s30 + $0x1b4] sm:$0xf]  ;;  %v7129_v56 = vld [vmem:[%s10622_s30 + $0x1bc] sm:$0xf0]  ;;  %v7117_v4 = vld [vmem:[%s10622_s30 + $0x1a4] sm:$0xf0] }
 0x586   : > { %6173 = vmatpush.bf16.msrb.mxu3 %v7244_v51  ;;  %v5920_v51 = vpop.f32.mrf.mxu3  ;;  %v5619_v57 = vpop.f32.mrf.mxu2  ;;  %v9438_v20 = vld [vmem:[%s10622_s30 + $0x3dc] sm:$0xf] }
 0x588   : > { %5832 = vmatpush.bf16.msra.mxu2 %v7180_v23  ;;  %5871 = vmatpush.bf16.msrb.mxu1 %v7468_v61  ;;  %v7207_v23 = vld [vmem:[%s10622_s30 + $0x248] sm:$0xf]  ;;  %v9372_v61 = vld [vmem:[%s10622_s30 + $0x1cc] sm:$0xf] }
 0x589   : > { %6111 = vmatpush.bf16.msra.mxu0 %v9124_v44  ;;  %v9506_v44 = vld [vmem:[%s10622_s30 + $0x5f8] sm:$0xf0] }
 0x58a   : > { %6174 = vmatpush.bf16.msrb.mxu3 %v7232_v34  ;;  %v7208_v34 = vor.u32 %v9389_v37, %v7207_v23  ;;  %v7676_v60 = vor.u32 %v9506_v44, %v7675_v19  ;;  %v7663_v23 = vld [vmem:[%s10622_s30 + $0x5d8] sm:$0xf]  ;;  %v9503_v37 = vld [vmem:[%s10622_s30 + $0x5e0] sm:$0xf0]  ;;  %v9374_v19 = vld [vmem:[%s10622_s30 + $0x1d8] sm:$0xf0] }
 0x58b   : > { %v12014_v51 = vpop.f32.mrf.mxu0  ;;  %v7651_v44 = vld [vmem:[%s10622_s30 + $0x5c0] sm:$0xf] }
 0x58c   : > { %5833 = vmatpush.bf16.msra.mxu2 %v7168_v45  ;;  %5872 = vmatpush.bf16.msrb.mxu1 %v7456_v24  ;;  %v7144_v45 = vor.u32 %v9372_v61, %v7141_v6  ;;  %v7172_v24 = vor.u32 %v9380_v3, %v7171_v32  ;;  %v9366_v6 = vld [vmem:[%s10622_s30 + $0x19c] sm:$0xf]  ;;  %v7664_v32 = vor.u32 %v9503_v37, %v7663_v23  ;;  %v7405_v3 = vld [vmem:[%s10622_s30 + $0x3e4] sm:$0xf0]  ;;  %v9480_v23 = vld [vmem:[%s10622_s30 + $0x52c] sm:$0xf] }
 0x58d   : > { %6156 = vmatpush.bf16.msrb.mxu0 %v7196_v40  ;;  %v5620_v40 = vadd.f32 %v5619_v57, %v11939_v53  ;;  %v7132_v53 = vor.u32 %v9369_v30, %v7129_v56  ;;  %v7105_v30 = vld [vmem:[%s10622_s30 + $0x18c] sm:$0xf0]  ;;  %v7573_v37 = vld [vmem:[%s10622_s30 + $0x534] sm:$0xf0] }
 0x58e   : > { %6112 = vmatmul.bf16.vlgmr.msra.gmra.mxu0 %v11972_v11  ;;  %6175 = vmatpush.bf16.msrb.mxu3 %v7220_v48  ;;  %v9377_v48 = vld [vmem:[%s10622_s30 + $0x1f0] sm:$0xf0]  ;;  %v5621_v57 = vpop.f32.mrf.mxu2  ;;  %v7393_v56 = vld [vmem:[%s10622_s30 + $0x3cc] sm:$0xf0] }
 0x58f   : > { %v7160_v61 = vor.u32 %v9377_v48, %v7159_v58  ;;  %v7639_v58 = vld [vmem:[%s10622_s30 + $0x5a8] sm:$0xf]  ;;  %v7561_v57 = vld [vmem:[%s10622_s30 + $0x51c] sm:$0xf0] }
 0x590   : > { %5834 = vmatpush.bf16.msra.mxu2 %v7156_v62  ;;  %5873 = vmatpush.bf16.msrb.mxu1 %v7444_v29  ;;  %v5634_v62 = vpop.f32.mrf.mxu1  ;;  %v12018_v29 = vadd.f32 %v5632_v27, %v5620_v40  ;;  %v7147_v27 = vld [vmem:[%s10622_s30 + $0x1d0] sm:$0xf] }
 0x591   : > { %6157 = vmatpush.bf16.msrb.mxu0 %v7184_v17  ;;  %v7420_v17 = vor.u32 %v9441_v13, %v7417_v5  ;;  %v7148_v40 = vor.u32 %v9374_v19, %v7147_v27  ;;  %v9371_v5 = vld [vmem:[%s10622_s30 + $0x1c0] sm:$0xf0]  ;;  %v9497_v62 = vld [vmem:[%s10622_s30 + $0x5b0] sm:$0xf0]  ;;  %v9368_v27 = vld [vmem:[%s10622_s30 + $0x1a8] sm:$0xf0] }
 0x592   : > { %6176 = vmatpush.bf16.msrb.mxu3 %v7208_v34  ;;  %v9500_v34 = vld [vmem:[%s10622_s30 + $0x5c8] sm:$0xf0]  ;;  %v7627_v19 = vld [vmem:[%s10622_s30 + $0x590] sm:$0xf] }
 0x593   : > { %v7652_v13 = vor.u32 %v9500_v34, %v7651_v44  ;;  %v5907_v48 = vpop.f32.mrf.mxu0  ;;  %v9494_v34 = vld [vmem:[%s10622_s30 + $0x598] sm:$0xf0] }
 0x594   : > { %5835 = vmatpush.bf16.msra.mxu2 %v7144_v45  ;;  %5874 = vmatpush.bf16.msrb.mxu1 %v7432_v46  ;;  %v7120_v45 = vor.u32 %v9366_v6, %v7117_v4  ;;  %v9363_v46 = vld [vmem:[%s10622_s30 + $0x184] sm:$0xf] }
 0x595   : > { %6158 = vmatpush.bf16.msrb.mxu0 %v7172_v24  ;;  %6177 = vmatmul.bf16.vlgmr.msrb.gmra.mxu3 %v11294_v39  ;;  %v7408_v24 = vor.u32 %v9438_v20, %v7405_v3  ;;  %v9435_v39 = vld [vmem:[%s10622_s30 + $0x3c4] sm:$0xf]  ;;  %v7640_v20 = vor.u32 %v9497_v62, %v7639_v58  ;;  %v7123_v3 = vld [vmem:[%s10622_s30 + $0x1a0] sm:$0xf]  ;;  %v9474_v62 = vld [vmem:[%s10622_s30 + $0x4fc] sm:$0xf] }
 0x596   : > { %6221 = vmatpush.bf16.msra.mxu3 %v7676_v60  ;;  %v7135_v60 = vld [vmem:[%s10622_s30 + $0x1b8] sm:$0xf]  ;;  %v7396_v6 = vor.u32 %v9435_v39, %v7393_v56  ;;  %v7628_v39 = vor.u32 %v9494_v34, %v7627_v19  ;;  %v9491_v58 = vld [vmem:[%s10622_s30 + $0x580] sm:$0xf0]  ;;  %v7537_v34 = vld [vmem:[%s10622_s30 + $0x4ec] sm:$0xf0] }
 0x597   : > { %v7136_v4 = vor.u32 %v9371_v5, %v7135_v60  ;;  %v9365_v60 = vld [vmem:[%s10622_s30 + $0x190] sm:$0xf0]  ;;  %v7615_v5 = vld [vmem:[%s10622_s30 + $0x578] sm:$0xf] }
 0x598   : > { %5836 = vmatpush.bf16.msra.mxu2 %v7132_v53  ;;  %5875 = vmatpush.bf16.msrb.mxu1 %v7420_v17  ;;  %v7108_v53 = vor.u32 %v9363_v46, %v7105_v30  ;;  %v9552_v17 = vld [vmem:[%s10622_s30 + $0x76c] sm:$0xf]  ;;  %v9549_v46 = vld [vmem:[%s10622_s30 + $0x754] sm:$0xf]  ;;  %v7111_v30 = vld [vmem:[%s10622_s30 + $0x188] sm:$0xf] }
 0x599   : > { %6159 = vmatpush.bf16.msrb.mxu0 %v7160_v61  ;;  %v7861_v61 = vld [vmem:[%s10622_s30 + $0x774] sm:$0xf0] }
 0x59a   : > { %6222 = vmatpush.bf16.msra.mxu3 %v7664_v32  ;;  %v7576_v32 = vor.u32 %v9480_v23, %v7573_v37  ;;  %v7864_v44 = vor.u32 %v9552_v17, %v7861_v61  ;;  %v7549_v23 = vld [vmem:[%s10622_s30 + $0x504] sm:$0xf0]  ;;  %v9546_v37 = vld [vmem:[%s10622_s30 + $0x73c] sm:$0xf]  ;;  %v7579_v17 = vld [vmem:[%s10622_s30 + $0x530] sm:$0xf] }
 0x59b   : > { %v9482_v61 = vld [vmem:[%s10622_s30 + $0x538] sm:$0xf0] }
 0x59c   : > { %5837 = vmatpush.bf16.msra.mxu2 %v7120_v45  ;;  %5876 = vmatpush.bf16.msrb.mxu1 %v7408_v24  ;;  %v9477_v45 = vld [vmem:[%s10622_s30 + $0x514] sm:$0xf]  ;;  %v7849_v24 = vld [vmem:[%s10622_s30 + $0x75c] sm:$0xf0]  ;;  %v7580_v19 = vor.u32 %v9482_v61, %v7579_v17  ;;  %v9476_v61 = vld [vmem:[%s10622_s30 + $0x508] sm:$0xf0] }
 0x59d   : > { %6160 = vmatpush.bf16.msrb.mxu0 %v7148_v40  ;;  %v7124_v40 = vor.u32 %v9368_v27, %v7123_v3  ;;  %v7564_v56 = vor.u32 %v9477_v45, %v7561_v57  ;;  %v7852_v48 = vor.u32 %v9549_v46, %v7849_v24  ;;  %v9488_v3 = vld [vmem:[%s10622_s30 + $0x568] sm:$0xf0]  ;;  %v9543_v45 = vld [vmem:[%s10622_s30 + $0x724] sm:$0xf]  ;;  %v7825_v57 = vld [vmem:[%s10622_s30 + $0x72c] sm:$0xf0] }
 0x59e   : > { %6223 = vmatpush.bf16.msra.mxu3 %v7652_v13  ;;  %v12050_v13 = vpop.f32.mrf.mxu3  ;;  %v7567_v46 = vld [vmem:[%s10622_s30 + $0x518] sm:$0xf]  ;;  %v9479_v24 = vld [vmem:[%s10622_s30 + $0x520] sm:$0xf0]  ;;  %v7555_v17 = vld [vmem:[%s10622_s30 + $0x500] sm:$0xf] }
 0x5a0   : > { %5838 = vmatpush.bf16.msra.mxu2 %v7108_v53  ;;  %5877 = vmatpush.bf16.msrb.mxu1 %v7396_v6  ;;  %v7837_v53 = vld [vmem:[%s10622_s30 + $0x744] sm:$0xf0]  ;;  %v7112_v6 = vor.u32 %v9365_v60, %v7111_v30 }
 0x5a1   : > { %6161 = vmatpush.bf16.msrb.mxu0 %v7136_v4  ;;  %v7616_v4 = vor.u32 %v9491_v58, %v7615_v5  ;;  %v7840_v27 = vor.u32 %v9546_v37, %v7837_v53  ;;  %v7591_v60 = vld [vmem:[%s10622_s30 + $0x548] sm:$0xf]  ;;  %v9485_v5 = vld [vmem:[%s10622_s30 + $0x550] sm:$0xf0]  ;;  %v7828_v58 = vor.u32 %v9543_v45, %v7825_v57  ;;  %v9540_v37 = vld [vmem:[%s10622_s30 + $0x70c] sm:$0xf] }
 0x5a2   : > { %6224 = vmatpush.bf16.msra.mxu3 %v7640_v20  ;;  %v7552_v20 = vor.u32 %v9474_v62, %v7549_v23  ;;  %v9468_v62 = vld [vmem:[%s10622_s30 + $0x4cc] sm:$0xf]  ;;  %v7525_v23 = vld [vmem:[%s10622_s30 + $0x4d4] sm:$0xf0]  ;;  %v9537_v45 = vld [vmem:[%s10622_s30 + $0x6f4] sm:$0xf] }
 0x5a3   : > { %5839 = vmatmul.bf16.vlgmr.msra.gmra.mxu2 %v11292_v55  ;;  %5878 = vmatmul.bf16.vlgmr.msrb.gmra.mxu1 %v11386_v43  ;;  %v7813_v53 = vld [vmem:[%s10622_s30 + $0x714] sm:$0xf0] }
 0x5a4   : > { %5883 = vmatpush.bf16.msrb.mxu2 %v7576_v32  ;;  %5922 = vmatpush.bf16.msra.mxu1 %v7864_v44  ;;  %v7603_v32 = vld [vmem:[%s10622_s30 + $0x560] sm:$0xf]  ;;  %v9471_v44 = vld [vmem:[%s10622_s30 + $0x4e4] sm:$0xf] }
 0x5a5   : > { %6162 = vmatpush.bf16.msrb.mxu0 %v7124_v40  ;;  %v5671_v40 = vpop.f32.mrf.mxu1  ;;  %v7604_v30 = vor.u32 %v9488_v3, %v7603_v32  ;;  %v7528_v32 = vor.u32 %v9468_v62, %v7525_v23  ;;  %v9462_v23 = vld [vmem:[%s10622_s30 + $0x49c] sm:$0xf] }
 0x5a6   : > { %6225 = vmatpush.bf16.msra.mxu3 %v7628_v39  ;;  %v7540_v39 = vor.u32 %v9471_v44, %v7537_v34  ;;  %v5645_v3 = vpop.f32.mrf.mxu2  ;;  %v9465_v44 = vld [vmem:[%s10622_s30 + $0x4b4] sm:$0xf]  ;;  %v7513_v34 = vld [vmem:[%s10622_s30 + $0x4bc] sm:$0xf0] }
 0x5a8   : > { %5884 = vmatpush.bf16.msrb.mxu2 %v7564_v56  ;;  %5923 = vmatpush.bf16.msra.mxu1 %v7852_v48  ;;  %v5972_v56 = vpop.f32.mrf.mxu3  ;;  %v7568_v48 = vor.u32 %v9479_v24, %v7567_v46  ;;  %v7801_v46 = vld [vmem:[%s10622_s30 + $0x6fc] sm:$0xf0]  ;;  %v7543_v24 = vld [vmem:[%s10622_s30 + $0x4e8] sm:$0xf] }
 0x5a9   : > { %6163 = vmatpush.bf16.msrb.mxu0 %v7112_v6  ;;  %v8059_v6 = vld [vmem:[%s10622_s30 + $0x8f0] sm:$0xf] }
 0x5aa   : > { %6226 = vmatpush.bf16.msra.mxu3 %v7616_v4  ;;  %v9602_v4 = vld [vmem:[%s10622_s30 + $0x8f8] sm:$0xf0] }
 0x5ab   : > { %v8060_v57 = vor.u32 %v9602_v4, %v8059_v6  ;;  %v7531_v6 = vld [vmem:[%s10622_s30 + $0x4d0] sm:$0xf]  ;;  %v9470_v4 = vld [vmem:[%s10622_s30 + $0x4d8] sm:$0xf0] }
 0x5ac   : > { %5885 = vmatpush.bf16.msrb.mxu2 %v7552_v20  ;;  %5924 = vmatpush.bf16.msra.mxu1 %v7840_v27  ;;  %v7592_v20 = vor.u32 %v9485_v5, %v7591_v60  ;;  %v7556_v27 = vor.u32 %v9476_v61, %v7555_v17  ;;  %v12090_v60 = vpop.f32.mrf.mxu0  ;;  %v8047_v5 = vld [vmem:[%s10622_s30 + $0x8d8] sm:$0xf]  ;;  %v7789_v61 = vld [vmem:[%s10622_s30 + $0x6e4] sm:$0xf0] }
 0x5ad   : > { %6208 = vmatpush.bf16.msra.mxu0 %v7580_v19  ;;  %v5646_v19 = vadd.f32 %v5645_v3, %v12018_v29  ;;  %v5673_v56 = vpop.f32.mrf.mxu1  ;;  %v7516_v29 = vor.u32 %v9465_v44, %v7513_v34  ;;  %v7489_v44 = vld [vmem:[%s10622_s30 + $0x48c] sm:$0xf0] }
 0x5ae   : > { %6164 = vmatmul.bf16.vlgmr.msrb.gmra.mxu0 %v11292_v55  ;;  %6227 = vmatpush.bf16.msra.mxu3 %v7604_v30  ;;  %v7816_v55 = vor.u32 %v9540_v37, %v7813_v53  ;;  %v9473_v30 = vld [vmem:[%s10622_s30 + $0x4f0] sm:$0xf0]  ;;  %v9534_v37 = vld [vmem:[%s10622_s30 + $0x6dc] sm:$0xf]  ;;  %v7777_v34 = vld [vmem:[%s10622_s30 + $0x6cc] sm:$0xf0] }
 0x5af   : > { %v7544_v62 = vor.u32 %v9473_v30, %v7543_v24  ;;  %v8023_v24 = vld [vmem:[%s10622_s30 + $0x8a8] sm:$0xf]  ;;  %v9576_v56 = vld [vmem:[%s10622_s30 + $0x82c] sm:$0xf] }
 0x5b0   : > { %5886 = vmatpush.bf16.msrb.mxu2 %v7540_v39  ;;  %5925 = vmatpush.bf16.msra.mxu1 %v7828_v58  ;;  %v5659_v39 = vadd.f32 %v11675_v42, %v5646_v19  ;;  %v9599_v58 = vld [vmem:[%s10622_s30 + $0x8e0] sm:$0xf0]  ;;  %v7501_v42 = vld [vmem:[%s10622_s30 + $0x4a4] sm:$0xf0]  ;;  %v7532_v19 = vor.u32 %v9470_v4, %v7531_v6  ;;  %v8011_v6 = vld [vmem:[%s10622_s30 + $0x890] sm:$0xf] }
 0x5b1   : > { %6209 = vmatpush.bf16.msra.mxu0 %v7568_v48  ;;  %v7804_v48 = vor.u32 %v9537_v45, %v7801_v46  ;;  %v8048_v17 = vor.u32 %v9599_v58, %v8047_v5  ;;  %v7504_v3 = vor.u32 %v9462_v23, %v7501_v42  ;;  %v9467_v46 = vld [vmem:[%s10622_s30 + $0x4c0] sm:$0xf0]  ;;  %v7957_v5 = vld [vmem:[%s10622_s30 + $0x834] sm:$0xf0] }
 0x5b2   : > { %6228 = vmatpush.bf16.msra.mxu3 %v7592_v20  ;;  %v12097_v53 = vadd.f32 %v5671_v40, %v5659_v39  ;;  %v8035_v20 = vld [vmem:[%s10622_s30 + $0x8c0] sm:$0xf]  ;;  %v5647_v40 = vpop.f32.mrf.mxu2  ;;  %v9593_v39 = vld [vmem:[%s10622_s30 + $0x8b0] sm:$0xf0] }
 0x5b3   : > { %v8024_v42 = vor.u32 %v9593_v39, %v8023_v24  ;;  %v9645_v40 = vld [vmem:[%s10622_s30 + $0xa54] sm:$0xf]  ;;  %v7933_v39 = vld [vmem:[%s10622_s30 + $0x804] sm:$0xf0] }
 0x5b4   : > { %5887 = vmatpush.bf16.msrb.mxu2 %v7528_v32  ;;  %5926 = vmatpush.bf16.msra.mxu1 %v7816_v55  ;;  %v9596_v32 = vld [vmem:[%s10622_s30 + $0x8c8] sm:$0xf0]  ;;  %v9459_v55 = vld [vmem:[%s10622_s30 + $0x484] sm:$0xf]  ;;  %v5959_v30 = vpop.f32.mrf.mxu0 }
 0x5b5   : > { %6210 = vmatpush.bf16.msra.mxu0 %v7556_v27  ;;  %6229 = vmatmul.bf16.vlgmr.msra.gmra.mxu3 %v11486_v9  ;;  %v7792_v27 = vor.u32 %v9534_v37, %v7789_v61  ;;  %v9531_v9 = vld [vmem:[%s10622_s30 + $0x6c4] sm:$0xf]  ;;  %v8036_v45 = vor.u32 %v9596_v32, %v8035_v20  ;;  %v7492_v58 = vor.u32 %v9459_v55, %v7489_v44  ;;  %v9464_v61 = vld [vmem:[%s10622_s30 + $0x4a8] sm:$0xf0]  ;;  %v9590_v20 = vld [vmem:[%s10622_s30 + $0x898] sm:$0xf0] }
 0x5b6   : > { %6273 = vmatpush.bf16.msrb.mxu3 %v8060_v57  ;;  %v7519_v57 = vld [vmem:[%s10622_s30 + $0x4b8] sm:$0xf]  ;;  %v7960_v37 = vor.u32 %v9576_v56, %v7957_v5  ;;  %v9573_v32 = vld [vmem:[%s10622_s30 + $0x814] sm:$0xf]  ;;  %v8233_v55 = vld [vmem:[%s10622_s30 + $0xa5c] sm:$0xf0]  ;;  %v8012_v44 = vor.u32 %v9590_v20, %v8011_v6 }
 0x5b7   : > { %v7520_v23 = vor.u32 %v9467_v46, %v7519_v57  ;;  %v7999_v57 = vld [vmem:[%s10622_s30 + $0x878] sm:$0xf]  ;;  %v9587_v46 = vld [vmem:[%s10622_s30 + $0x880] sm:$0xf0]  ;;  %v8236_v24 = vor.u32 %v9645_v40, %v8233_v55  ;;  %v9570_v30 = vld [vmem:[%s10622_s30 + $0x7fc] sm:$0xf] }
 0x5b8   : > { %5888 = vmatpush.bf16.msrb.mxu2 %v7516_v29  ;;  %5927 = vmatpush.bf16.msra.mxu1 %v7804_v48  ;;  %v9648_v29 = vld [vmem:[%s10622_s30 + $0xa6c] sm:$0xf]  ;;  %v8245_v48 = vld [vmem:[%s10622_s30 + $0xa74] sm:$0xf0]  ;;  %v9642_v56 = vld [vmem:[%s10622_s30 + $0xa3c] sm:$0xf] }
 0x5b9   : > { %6211 = vmatpush.bf16.msra.mxu0 %v7544_v62  ;;  %v7780_v62 = vor.u32 %v9531_v9, %v7777_v34  ;;  %v8248_v4 = vor.u32 %v9648_v29, %v8245_v48  ;;  %v12126_v34 = vpop.f32.mrf.mxu3  ;;  %v8221_v5 = vld [vmem:[%s10622_s30 + $0xa44] sm:$0xf0]  ;;  %v9578_v29 = vld [vmem:[%s10622_s30 + $0x838] sm:$0xf0]  ;;  %v9567_v6 = vld [vmem:[%s10622_s30 + $0x7e4] sm:$0xf] }
 0x5ba   : > { %6274 = vmatpush.bf16.msrb.mxu3 %v8048_v17  ;;  %v7507_v17 = vld [vmem:[%s10622_s30 + $0x4a0] sm:$0xf]  ;;  %v9639_v20 = vld [vmem:[%s10622_s30 + $0xa24] sm:$0xf] }
 0x5bb   : > { %v9575_v40 = vld [vmem:[%s10622_s30 + $0x820] sm:$0xf0] }
 0x5bc   : > { %5889 = vmatpush.bf16.msrb.mxu2 %v7504_v3  ;;  %5928 = vmatpush.bf16.msra.mxu1 %v7792_v27  ;;  %v7945_v3 = vld [vmem:[%s10622_s30 + $0x81c] sm:$0xf0]  ;;  %v7508_v27 = vor.u32 %v9464_v61, %v7507_v17  ;;  %v8224_v17 = vor.u32 %v9642_v56, %v8221_v5  ;;  %v8197_v56 = vld [vmem:[%s10622_s30 + $0xa14] sm:$0xf0] }
 0x5bd   : > { %6212 = vmatpush.bf16.msra.mxu0 %v7532_v19  ;;  %v7495_v19 = vld [vmem:[%s10622_s30 + $0x488] sm:$0xf]  ;;  %v7948_v9 = vor.u32 %v9573_v32, %v7945_v3  ;;  %v8209_v32 = vld [vmem:[%s10622_s30 + $0xa2c] sm:$0xf0]  ;;  %v7951_v3 = vld [vmem:[%s10622_s30 + $0x818] sm:$0xf] }
 0x5be   : > { %6275 = vmatpush.bf16.msrb.mxu3 %v8036_v45  ;;  %v9461_v45 = vld [vmem:[%s10622_s30 + $0x490] sm:$0xf0]  ;;  %v7939_v5 = vld [vmem:[%s10622_s30 + $0x800] sm:$0xf] }
 0x5bf   : > { %v7496_v48 = vor.u32 %v9461_v45, %v7495_v19  ;;  %v9581_v45 = vld [vmem:[%s10622_s30 + $0x850] sm:$0xf0] }
 0x5c0   : > { %5890 = vmatpush.bf16.msrb.mxu2 %v7492_v58  ;;  %5929 = vmatpush.bf16.msra.mxu1 %v7780_v62  ;;  %v7963_v58 = vld [vmem:[%s10622_s30 + $0x830] sm:$0xf]  ;;  %v8000_v62 = vor.u32 %v9587_v46, %v7999_v57  ;;  %v5723_v55 = vpop.f32.mrf.mxu1  ;;  %v8212_v57 = vor.u32 %v9639_v20, %v8209_v32  ;;  %v7952_v46 = vor.u32 %v9575_v40, %v7951_v3  ;;  %v8185_v32 = vld [vmem:[%s10622_s30 + $0x9fc] sm:$0xf0]  ;;  %v7927_v3 = vld [vmem:[%s10622_s30 + $0x7e8] sm:$0xf] }
 0x5c1   : > { %6213 = vmatpush.bf16.msra.mxu0 %v7520_v23  ;;  %v7936_v23 = vor.u32 %v9570_v30, %v7933_v39  ;;  %v7964_v61 = vor.u32 %v9578_v29, %v7963_v58  ;;  %v7909_v30 = vld [vmem:[%s10622_s30 + $0x7d4] sm:$0xf0]  ;;  %v9636_v39 = vld [vmem:[%s10622_s30 + $0xa0c] sm:$0xf]  ;;  %v8443_v29 = vld [vmem:[%s10622_s30 + $0xbf0] sm:$0xf] }
 0x5c2   : > { %6276 = vmatpush.bf16.msrb.mxu3 %v8024_v42  ;;  %v7987_v42 = vld [vmem:[%s10622_s30 + $0x860] sm:$0xf]  ;;  %v9572_v58 = vld [vmem:[%s10622_s30 + $0x808] sm:$0xf0]  ;;  %v9569_v40 = vld [vmem:[%s10622_s30 + $0x7f0] sm:$0xf0] }
 0x5c3   : > { %5891 = vmatmul.bf16.vlgmr.msrb.gmra.mxu2 %v11481_v63  ;;  %5930 = vmatmul.bf16.vlgmr.msra.gmra.mxu1 %v11565_v1 }
 0x5c4   : > { %5935 = vmatpush.bf16.msra.mxu2 %v7960_v37  ;;  %5974 = vmatpush.bf16.msrb.mxu1 %v8248_v4  ;;  %v9584_v37 = vld [vmem:[%s10622_s30 + $0x868] sm:$0xf0]  ;;  %v7921_v4 = vld [vmem:[%s10622_s30 + $0x7ec] sm:$0xf0] }
 0x5c5   : > { %6214 = vmatpush.bf16.msra.mxu0 %v7508_v27  ;;  %v7988_v27 = vor.u32 %v9584_v37, %v7987_v42  ;;  %v7924_v19 = vor.u32 %v9567_v6, %v7921_v4  ;;  %v7940_v37 = vor.u32 %v9572_v58, %v7939_v5  ;;  %v7897_v6 = vld [vmem:[%s10622_s30 + $0x7bc] sm:$0xf0]  ;;  %v9633_v4 = vld [vmem:[%s10622_s30 + $0x9f4] sm:$0xf]  ;;  %v8173_v5 = vld [vmem:[%s10622_s30 + $0x9e4] sm:$0xf0] }
 0x5c6   : > { %6277 = vmatpush.bf16.msrb.mxu3 %v8012_v44  ;;  %v6024_v44 = vpop.f32.mrf.mxu3  ;;  %v5684_v42 = vpop.f32.mrf.mxu2  ;;  %v7915_v58 = vld [vmem:[%s10622_s30 + $0x7d0] sm:$0xf] }
 0x5c8   : > { %5936 = vmatpush.bf16.msra.mxu2 %v7948_v9  ;;  %5975 = vmatpush.bf16.msrb.mxu1 %v8236_v24  ;;  %v7975_v9 = vld [vmem:[%s10622_s30 + $0x848] sm:$0xf]  ;;  %v9564_v24 = vld [vmem:[%s10622_s30 + $0x7cc] sm:$0xf] }
 0x5c9   : > { %6215 = vmatpush.bf16.msra.mxu0 %v7496_v48  ;;  %v9698_v48 = vld [vmem:[%s10622_s30 + $0xbf8] sm:$0xf0] }
 0x5ca   : > { %6278 = vmatpush.bf16.msrb.mxu3 %v8000_v62  ;;  %v7976_v62 = vor.u32 %v9581_v45, %v7975_v9  ;;  %v8444_v20 = vor.u32 %v9698_v48, %v8443_v29  ;;  %v8431_v9 = vld [vmem:[%s10622_s30 + $0xbd8] sm:$0xf]  ;;  %v9695_v45 = vld [vmem:[%s10622_s30 + $0xbe0] sm:$0xf0]  ;;  %v9566_v29 = vld [vmem:[%s10622_s30 + $0x7d8] sm:$0xf0] }
 0x5cb   : > { %v12166_v44 = vpop.f32.mrf.mxu0  ;;  %v8419_v48 = vld [vmem:[%s10622_s30 + $0xbc0] sm:$0xf] }
 0x5cc   : > { %5937 = vmatpush.bf16.msra.mxu2 %v7936_v23  ;;  %5976 = vmatpush.bf16.msrb.mxu1 %v8224_v17  ;;  %v7912_v23 = vor.u32 %v9564_v24, %v7909_v30  ;;  %v5685_v17 = vadd.f32 %v5684_v42, %v12097_v53  ;;  %v9558_v24 = vld [vmem:[%s10622_s30 + $0x79c] sm:$0xf] }
 0x5cd   : > { %6260 = vmatpush.bf16.msrb.mxu0 %v7964_v61  ;;  %v9561_v61 = vld [vmem:[%s10622_s30 + $0x7b4] sm:$0xf]  ;;  %v9630_v30 = vld [vmem:[%s10622_s30 + $0x9dc] sm:$0xf] }
 0x5ce   : > { %6216 = vmatmul.bf16.vlgmr.msra.gmra.mxu0 %v11481_v63  ;;  %6279 = vmatpush.bf16.msrb.mxu3 %v7988_v27  ;;  %v8200_v63 = vor.u32 %v9636_v39, %v8197_v56  ;;  %v5698_v27 = vadd.f32 %v11721_v35, %v5685_v17  ;;  %v7900_v53 = vor.u32 %v9561_v61, %v7897_v6  ;;  %v7885_v35 = vld [vmem:[%s10622_s30 + $0x7a4] sm:$0xf0]  ;;  %v9627_v61 = vld [vmem:[%s10622_s30 + $0x9c4] sm:$0xf]  ;;  %v8161_v6 = vld [vmem:[%s10622_s30 + $0x9cc] sm:$0xf0] }
 0x5cf   : > { %v8432_v56 = vor.u32 %v9695_v45, %v8431_v9  ;;  %v7888_v42 = vor.u32 %v9558_v24, %v7885_v35  ;;  %v7916_v17 = vor.u32 %v9566_v29, %v7915_v58  ;;  %v9744_v45 = vld [vmem:[%s10622_s30 + $0xd6c] sm:$0xf]  ;;  %v9686_v58 = vld [vmem:[%s10622_s30 + $0xb98] sm:$0xf0]  ;;  %v9669_v29 = vld [vmem:[%s10622_s30 + $0xb14] sm:$0xf] }
 0x5d0   : > { %5938 = vmatpush.bf16.msra.mxu2 %v7924_v19  ;;  %5977 = vmatpush.bf16.msrb.mxu1 %v8212_v57  ;;  %v5725_v19 = vpop.f32.mrf.mxu1  ;;  %v8188_v57 = vor.u32 %v9633_v4, %v8185_v32  ;;  %v5711_v39 = vadd.f32 %v11717_v54, %v5698_v27  ;;  %v5686_v54 = vpop.f32.mrf.mxu2  ;;  %v7903_v4 = vld [vmem:[%s10622_s30 + $0x7b8] sm:$0xf]  ;;  %v8407_v32 = vld [vmem:[%s10622_s30 + $0xba8] sm:$0xf]  ;;  %v9672_v27 = vld [vmem:[%s10622_s30 + $0xb2c] sm:$0xf] }
 0x5d1   : > { %6261 = vmatpush.bf16.msrb.mxu0 %v7952_v46  ;;  %v7928_v46 = vor.u32 %v9569_v40, %v7927_v3  ;;  %v9689_v40 = vld [vmem:[%s10622_s30 + $0xbb0] sm:$0xf0]  ;;  %v8341_v19 = vld [vmem:[%s10622_s30 + $0xb34] sm:$0xf0] }
 0x5d2   : > { %6280 = vmatpush.bf16.msrb.mxu3 %v7976_v62  ;;  %v9692_v62 = vld [vmem:[%s10622_s30 + $0xbc8] sm:$0xf0]  ;;  %v8408_v24 = vor.u32 %v9689_v40, %v8407_v32  ;;  %v8344_v35 = vor.u32 %v9672_v27, %v8341_v19  ;;  %v8317_v32 = vld [vmem:[%s10622_s30 + $0xb04] sm:$0xf0]  ;;  %v8347_v27 = vld [vmem:[%s10622_s30 + $0xb30] sm:$0xf] }
 0x5d3   : > { %v6011_v3 = vpop.f32.mrf.mxu0  ;;  %v8605_v40 = vld [vmem:[%s10622_s30 + $0xd44] sm:$0xf0]  ;;  %v9674_v19 = vld [vmem:[%s10622_s30 + $0xb38] sm:$0xf0] }
 0x5d4   : > { %5939 = vmatpush.bf16.msra.mxu2 %v7912_v23  ;;  %5978 = vmatpush.bf16.msrb.mxu1 %v8200_v63  ;;  %v12180_v23 = vadd.f32 %v5723_v55, %v5711_v39  ;;  %v9555_v63 = vld [vmem:[%s10622_s30 + $0x784] sm:$0xf]  ;;  %v8420_v55 = vor.u32 %v9692_v62, %v8419_v48  ;;  %v9560_v39 = vld [vmem:[%s10622_s30 + $0x7a8] sm:$0xf0]  ;;  %v8329_v48 = vld [vmem:[%s10622_s30 + $0xb1c] sm:$0xf0] }
 0x5d5   : > { %6262 = vmatpush.bf16.msrb.mxu0 %v7940_v37  ;;  %6281 = vmatmul.bf16.vlgmr.msrb.gmra.mxu3 %v11641_v2  ;;  %v8176_v37 = vor.u32 %v9630_v30, %v8173_v5  ;;  %v7873_v2 = vld [vmem:[%s10622_s30 + $0x78c] sm:$0xf0]  ;;  %v7891_v30 = vld [vmem:[%s10622_s30 + $0x7a0] sm:$0xf]  ;;  %v9741_v62 = vld [vmem:[%s10622_s30 + $0xd54] sm:$0xf] }
 0x5d6   : > { %6325 = vmatpush.bf16.msra.mxu3 %v8444_v20  ;;  %v9563_v20 = vld [vmem:[%s10622_s30 + $0x7c0] sm:$0xf0]  ;;  %v7876_v9 = vor.u32 %v9555_v63, %v7873_v2  ;;  %v7892_v54 = vor.u32 %v9560_v39, %v7891_v30  ;;  %v7879_v63 = vld [vmem:[%s10622_s30 + $0x788] sm:$0xf]  ;;  %v9738_v3 = vld [vmem:[%s10622_s30 + $0xd3c] sm:$0xf] }
 0x5d7   : > { %v9663_v30 = vld [vmem:[%s10622_s30 + $0xae4] sm:$0xf]  ;;  %v8305_v39 = vld [vmem:[%s10622_s30 + $0xaec] sm:$0xf0] }
 0x5d8   : > { %5940 = vmatpush.bf16.msra.mxu2 %v7900_v53  ;;  %5979 = vmatpush.bf16.msrb.mxu1 %v8188_v57  ;;  %v8629_v53 = vld [vmem:[%s10622_s30 + $0xd74] sm:$0xf0]  ;;  %v8164_v57 = vor.u32 %v9627_v61, %v8161_v6  ;;  %v12203_v2 = vpop.f32.mrf.mxu3  ;;  %v9557_v61 = vld [vmem:[%s10622_s30 + $0x790] sm:$0xf0] }
 0x5d9   : > { %6263 = vmatpush.bf16.msrb.mxu0 %v7928_v46  ;;  %v7904_v46 = vor.u32 %v9563_v20, %v7903_v4  ;;  %v8632_v5 = vor.u32 %v9744_v45, %v8629_v53  ;;  %v8383_v6 = vld [vmem:[%s10622_s30 + $0xb78] sm:$0xf]  ;;  %v9666_v20 = vld [vmem:[%s10622_s30 + $0xafc] sm:$0xf] }
 0x5da   : > { %6326 = vmatpush.bf16.msra.mxu3 %v8432_v56  ;;  %v8395_v56 = vld [vmem:[%s10622_s30 + $0xb90] sm:$0xf]  ;;  %v8320_v53 = vor.u32 %v9666_v20, %v8317_v32  ;;  %v8581_v20 = vld [vmem:[%s10622_s30 + $0xd14] sm:$0xf0]  ;;  %v8323_v32 = vld [vmem:[%s10622_s30 + $0xb00] sm:$0xf] }
 0x5dc   : > { %5941 = vmatpush.bf16.msra.mxu2 %v7888_v42  ;;  %5980 = vmatpush.bf16.msrb.mxu1 %v8176_v37  ;;  %v8617_v42 = vld [vmem:[%s10622_s30 + $0xd5c] sm:$0xf0]  ;;  %v8396_v37 = vor.u32 %v9686_v58, %v8395_v56  ;;  %v9735_v56 = vld [vmem:[%s10622_s30 + $0xd24] sm:$0xf]  ;;  %v8335_v58 = vld [vmem:[%s10622_s30 + $0xb18] sm:$0xf] }
 0x5dd   : > { %6264 = vmatpush.bf16.msrb.mxu0 %v7916_v17  ;;  %v8332_v17 = vor.u32 %v9669_v29, %v8329_v48  ;;  %v8620_v4 = vor.u32 %v9741_v62, %v8617_v42  ;;  %v9671_v29 = vld [vmem:[%s10622_s30 + $0xb20] sm:$0xf0]  ;;  %v8308_v42 = vor.u32 %v9663_v30, %v8305_v39  ;;  %v8569_v39 = vld [vmem:[%s10622_s30 + $0xcfc] sm:$0xf0] }
 0x5de   : > { %6327 = vmatpush.bf16.msra.mxu3 %v8420_v55  ;;  %v9683_v55 = vld [vmem:[%s10622_s30 + $0xb80] sm:$0xf0] }
 0x5df   : > { %v8384_v45 = vor.u32 %v9683_v55, %v8383_v6  ;;  %v9660_v6 = vld [vmem:[%s10622_s30 + $0xacc] sm:$0xf]  ;;  %v8293_v55 = vld [vmem:[%s10622_s30 + $0xad4] sm:$0xf0] }
 0x5e0   : > { %5942 = vmatpush.bf16.msra.mxu2 %v7876_v9  ;;  %5981 = vmatpush.bf16.msrb.mxu1 %v8164_v57  ;;  %v7880_v9 = vor.u32 %v9557_v61, %v7879_v63  ;;  %v8371_v57 = vld [vmem:[%s10622_s30 + $0xb60] sm:$0xf]  ;;  %v5775_v48 = vpop.f32.mrf.mxu1  ;;  %v8359_v63 = vld [vmem:[%s10622_s30 + $0xb48] sm:$0xf]  ;;  %v8336_v61 = vor.u32 %v9671_v29, %v8335_v58 }
 0x5e1   : > { %6265 = vmatpush.bf16.msrb.mxu0 %v7904_v46  ;;  %v9680_v46 = vld [vmem:[%s10622_s30 + $0xb68] sm:$0xf0] }
 0x5e2   : > { %6328 = vmatpush.bf16.msra.mxu3 %v8408_v24  ;;  %v8608_v24 = vor.u32 %v9738_v3, %v8605_v40  ;;  %v8372_v62 = vor.u32 %v9680_v46, %v8371_v57  ;;  %v9668_v3 = vld [vmem:[%s10622_s30 + $0xb08] sm:$0xf0]  ;;  %v8827_v40 = vld [vmem:[%s10622_s30 + $0xef0] sm:$0xf]  ;;  %v9657_v46 = vld [vmem:[%s10622_s30 + $0xab4] sm:$0xf] }
 0x5e3   : > { %5943 = vmatmul.bf16.vlgmr.msra.gmra.mxu2 %v11636_v38  ;;  %5982 = vmatmul.bf16.vlgmr.msrb.gmra.mxu1 %v11236_v22 }
 0x5e4   : > { %5987 = vmatpush.bf16.msrb.mxu2 %v8344_v35  ;;  %6026 = vmatpush.bf16.msra.mxu1 %v8632_v5  ;;  %v8348_v35 = vor.u32 %v9674_v19, %v8347_v27  ;;  %v8593_v5 = vld [vmem:[%s10622_s30 + $0xd2c] sm:$0xf0]  ;;  %v9794_v27 = vld [vmem:[%s10622_s30 + $0xef8] sm:$0xf0] }
 0x5e5   : > { %6266 = vmatpush.bf16.msrb.mxu0 %v7892_v54  ;;  %v6076_v54 = vpop.f32.mrf.mxu3  ;;  %v8828_v30 = vor.u32 %v9794_v27, %v8827_v40  ;;  %v9788_v40 = vld [vmem:[%s10622_s30 + $0xec8] sm:$0xf0] }
 0x5e6   : > { %6329 = vmatpush.bf16.msra.mxu3 %v8396_v37  ;;  %v9677_v37 = vld [vmem:[%s10622_s30 + $0xb50] sm:$0xf0]  ;;  %v9791_v54 = vld [vmem:[%s10622_s30 + $0xee0] sm:$0xf0] }
 0x5e7   : > { %v8360_v19 = vor.u32 %v9677_v37, %v8359_v63 }
 0x5e8   : > { %5988 = vmatpush.bf16.msrb.mxu2 %v8332_v17  ;;  %6027 = vmatpush.bf16.msra.mxu1 %v8620_v4  ;;  %v8596_v17 = vor.u32 %v9735_v56, %v8593_v5  ;;  %v9732_v4 = vld [vmem:[%s10622_s30 + $0xd0c] sm:$0xf]  ;;  %v8311_v56 = vld [vmem:[%s10622_s30 + $0xae8] sm:$0xf]  ;;  %v9665_v5 = vld [vmem:[%s10622_s30 + $0xaf0] sm:$0xf0]  ;;  %v5777_v29 = vpop.f32.mrf.mxu1 }
 0x5e9   : > { %6267 = vmatpush.bf16.msrb.mxu0 %v7880_v9  ;;  %v8296_v9 = vor.u32 %v9660_v6, %v8293_v55  ;;  %v8312_v37 = vor.u32 %v9665_v5, %v8311_v56  ;;  %v9768_v56 = vld [vmem:[%s10622_s30 + $0xe2c] sm:$0xf]  ;;  %v8725_v5 = vld [vmem:[%s10622_s30 + $0xe34] sm:$0xf0] }
 0x5ea   : > { %6330 = vmatpush.bf16.msra.mxu3 %v8384_v45  ;;  %v5736_v45 = vpop.f32.mrf.mxu2  ;;  %v9840_v29 = vld [vmem:[%s10622_s30 + $0x106c] sm:$0xf] }
 0x5eb   : > { %v5737_v57 = vadd.f32 %v5736_v45, %v12180_v23 }
 0x5ec   : > { %5989 = vmatpush.bf16.msrb.mxu2 %v8320_v53  ;;  %6028 = vmatpush.bf16.msra.mxu1 %v8608_v24  ;;  %v8324_v53 = vor.u32 %v9668_v3, %v8323_v32  ;;  %v8281_v24 = vld [vmem:[%s10622_s30 + $0xabc] sm:$0xf0]  ;;  %v9662_v32 = vld [vmem:[%s10622_s30 + $0xad8] sm:$0xf0] }
 0x5ed   : > { %6312 = vmatpush.bf16.msra.mxu0 %v8348_v35  ;;  %v9729_v35 = vld [vmem:[%s10622_s30 + $0xcf4] sm:$0xf]  ;;  %v5750_v58 = vadd.f32 %v11769_v21, %v5737_v57  ;;  %v8284_v23 = vor.u32 %v9657_v46, %v8281_v24  ;;  %v8269_v21 = vld [vmem:[%s10622_s30 + $0xaa4] sm:$0xf0]  ;;  %v8803_v3 = vld [vmem:[%s10622_s30 + $0xec0] sm:$0xf] }
 0x5ee   : > { %6268 = vmatmul.bf16.vlgmr.msrb.gmra.mxu0 %v11636_v38  ;;  %6331 = vmatpush.bf16.msra.mxu3 %v8372_v62  ;;  %v8584_v38 = vor.u32 %v9732_v4, %v8581_v20  ;;  %v12243_v62 = vpop.f32.mrf.mxu0  ;;  %v8572_v63 = vor.u32 %v9729_v35, %v8569_v39  ;;  %v8557_v4 = vld [vmem:[%s10622_s30 + $0xce4] sm:$0xf0]  ;;  %v8299_v20 = vld [vmem:[%s10622_s30 + $0xad0] sm:$0xf]  ;;  %v8287_v46 = vld [vmem:[%s10622_s30 + $0xab8] sm:$0xf] }
 0x5ef   : > { %v5763_v6 = vadd.f32 %v11764_v8, %v5750_v58  ;;  %v8545_v57 = vld [vmem:[%s10622_s30 + $0xccc] sm:$0xf0]  ;;  %v9659_v24 = vld [vmem:[%s10622_s30 + $0xac0] sm:$0xf0]  ;;  %v8791_v35 = vld [vmem:[%s10622_s30 + $0xea8] sm:$0xf] }
 0x5f0   : > { %5990 = vmatpush.bf16.msrb.mxu2 %v8308_v42  ;;  %6029 = vmatpush.bf16.msra.mxu1 %v8596_v17  ;;  %v8815_v42 = vld [vmem:[%s10622_s30 + $0xed8] sm:$0xf]  ;;  %v9654_v17 = vld [vmem:[%s10622_s30 + $0xa9c] sm:$0xf]  ;;  %v9785_v39 = vld [vmem:[%s10622_s30 + $0xeb0] sm:$0xf0] }
 0x5f1   : > { %6313 = vmatpush.bf16.msra.mxu0 %v8336_v61  ;;  %v9726_v61 = vld [vmem:[%s10622_s30 + $0xcdc] sm:$0xf]  ;;  %v8816_v55 = vor.u32 %v9791_v54, %v8815_v42  ;;  %v12257_v27 = vadd.f32 %v5775_v48, %v5763_v6  ;;  %v8804_v48 = vor.u32 %v9788_v40, %v8803_v3  ;;  %v9013_v42 = vld [vmem:[%s10622_s30 + $0x1074] sm:$0xf0]  ;;  %v9001_v3 = vld [vmem:[%s10622_s30 + $0x105c] sm:$0xf0] }
 0x5f2   : > { %6332 = vmatpush.bf16.msra.mxu3 %v8360_v19  ;;  %v8272_v19 = vor.u32 %v9654_v17, %v8269_v21  ;;  %v5738_v8 = vpop.f32.mrf.mxu2  ;;  %v8560_v45 = vor.u32 %v9726_v61, %v8557_v4  ;;  %v8275_v17 = vld [vmem:[%s10622_s30 + $0xaa0] sm:$0xf]  ;;  %v9656_v21 = vld [vmem:[%s10622_s30 + $0xaa8] sm:$0xf0]  ;;  %v8779_v61 = vld [vmem:[%s10622_s30 + $0xe90] sm:$0xf]  ;;  %v9016_v6 = vor.u32 %v9840_v29, %v9013_v42 }
 0x5f3   : > { %v9765_v4 = vld [vmem:[%s10622_s30 + $0xe14] sm:$0xf]  ;;  %v8276_v40 = vor.u32 %v9656_v21, %v8275_v17  ;;  %v8755_v29 = vld [vmem:[%s10622_s30 + $0xe60] sm:$0xf]  ;;  %v9776_v42 = vld [vmem:[%s10622_s30 + $0xe68] sm:$0xf0] }
 0x5f4   : > { %5991 = vmatpush.bf16.msrb.mxu2 %v8296_v9  ;;  %6030 = vmatpush.bf16.msra.mxu1 %v8584_v38  ;;  %v9651_v9 = vld [vmem:[%s10622_s30 + $0xa84] sm:$0xf]  ;;  %v8300_v38 = vor.u32 %v9662_v32, %v8299_v20  ;;  %v8713_v20 = vld [vmem:[%s10622_s30 + $0xe1c] sm:$0xf0]  ;;  %v9837_v32 = vld [vmem:[%s10622_s30 + $0x1054] sm:$0xf] }
 0x5f5   : > { %6314 = vmatpush.bf16.msra.mxu0 %v8324_v53  ;;  %6333 = vmatmul.bf16.vlgmr.msra.gmra.mxu3 %v11806_v14  ;;  %v8257_v14 = vld [vmem:[%s10622_s30 + $0xa8c] sm:$0xf0]  ;;  %v9723_v53 = vld [vmem:[%s10622_s30 + $0xcc4] sm:$0xf] }
 0x5f6   : > { %6377 = vmatpush.bf16.msrb.mxu3 %v8828_v30  ;;  %v6063_v30 = vpop.f32.mrf.mxu0  ;;  %v8260_v58 = vor.u32 %v9651_v9, %v8257_v14  ;;  %v8548_v54 = vor.u32 %v9723_v53, %v8545_v57  ;;  %v8716_v9 = vor.u32 %v9765_v4, %v8713_v20  ;;  %v8767_v14 = vld [vmem:[%s10622_s30 + $0xe78] sm:$0xf]  ;;  %v9779_v53 = vld [vmem:[%s10622_s30 + $0xe80] sm:$0xf0]  ;;  %v9004_v57 = vor.u32 %v9837_v32, %v9001_v3  ;;  %v8977_v21 = vld [vmem:[%s10622_s30 + $0x102c] sm:$0xf0] }
 0x5f7   : > { %v8731_v30 = vld [vmem:[%s10622_s30 + $0xe30] sm:$0xf]  ;;  %v9831_v17 = vld [vmem:[%s10622_s30 + $0x1024] sm:$0xf]  ;;  %v8756_v4 = vor.u32 %v9776_v42, %v8755_v29  ;;  %v8743_v3 = vld [vmem:[%s10622_s30 + $0xe48] sm:$0xf] }
 0x5f8   : > { %5992 = vmatpush.bf16.msrb.mxu2 %v8284_v23  ;;  %6031 = vmatpush.bf16.msra.mxu1 %v8572_v63  ;;  %v8288_v23 = vor.u32 %v9659_v24, %v8287_v46  ;;  %v8792_v63 = vor.u32 %v9785_v39, %v8791_v35  ;;  %v8701_v46 = vld [vmem:[%s10622_s30 + $0xe04] sm:$0xf0]  ;;  %v9834_v24 = vld [vmem:[%s10622_s30 + $0x103c] sm:$0xf]  ;;  %v8665_v29 = vld [vmem:[%s10622_s30 + $0xdbc] sm:$0xf0] }
 0x5f9   : > { %6315 = vmatpush.bf16.msra.mxu0 %v8312_v37  ;;  %v8728_v37 = vor.u32 %v9768_v56, %v8725_v5  ;;  %v8989_v35 = vld [vmem:[%s10622_s30 + $0x1044] sm:$0xf0]  ;;  %v9770_v39 = vld [vmem:[%s10622_s30 + $0xe38] sm:$0xf0]  ;;  %v8768_v5 = vor.u32 %v9779_v53, %v8767_v14  ;;  %v9828_v14 = vld [vmem:[%s10622_s30 + $0x100c] sm:$0xf] }
 0x5fa   : > { %6378 = vmatpush.bf16.msrb.mxu3 %v8816_v55  ;;  %v9782_v55 = vld [vmem:[%s10622_s30 + $0xe98] sm:$0xf0]  ;;  %v8965_v53 = vld [vmem:[%s10622_s30 + $0x1014] sm:$0xf0]  ;;  %v9825_v42 = vld [vmem:[%s10622_s30 + $0xff4] sm:$0xf] }
 0x5fb   : > { %v8780_v8 = vor.u32 %v9782_v55, %v8779_v61  ;;  %v8719_v61 = vld [vmem:[%s10622_s30 + $0xe18] sm:$0xf] }
 0x5fc   : > { %5993 = vmatpush.bf16.msrb.mxu2 %v8272_v19  ;;  %6032 = vmatpush.bf16.msra.mxu1 %v8560_v45  ;;  %v8263_v19 = vld [vmem:[%s10622_s30 + $0xa88] sm:$0xf]  ;;  %v12280_v45 = vpop.f32.mrf.mxu3 }
 0x5fd   : > { %6316 = vmatpush.bf16.msra.mxu0 %v8300_v38  ;;  %v9653_v38 = vld [vmem:[%s10622_s30 + $0xa90] sm:$0xf0] }
 0x5fe   : > { %6379 = vmatpush.bf16.msrb.mxu3 %v8804_v48  ;;  %v9762_v48 = vld [vmem:[%s10622_s30 + $0xdfc] sm:$0xf]  ;;  %v8264_v56 = vor.u32 %v9653_v38, %v8263_v19  ;;  %v8980_v19 = vor.u32 %v9831_v17, %v8977_v21  ;;  %v8677_v38 = vld [vmem:[%s10622_s30 + $0xdd4] sm:$0xf0] }
 0x600   : > { %5994 = vmatpush.bf16.msrb.mxu2 %v8260_v58  ;;  %6033 = vmatpush.bf16.msra.mxu1 %v8548_v54  ;;  %v8704_v58 = vor.u32 %v9762_v48, %v8701_v46  ;;  %v8992_v54 = vor.u32 %v9834_v24, %v8989_v35  ;;  %v12301_v55 = vpop.f32.mrf.mxu1  ;;  %v9764_v48 = vld [vmem:[%s10622_s30 + $0xe08] sm:$0xf0]  ;;  %v9211_v46 = vld [vmem:[%s10622_s30 + $0x11f0] sm:$0xf]  ;;  %v9890_v24 = vld [vmem:[%s10622_s30 + $0x11f8] sm:$0xf0] }
 0x601   : > { %6317 = vmatpush.bf16.msra.mxu0 %v8288_v23  ;;  %v8732_v23 = vor.u32 %v9770_v39, %v8731_v30 }
 0x602   : > { %6380 = vmatpush.bf16.msrb.mxu3 %v8792_v63  ;;  %v9759_v63 = vld [vmem:[%s10622_s30 + $0xde4] sm:$0xf] }
 0x603   : > { %5995 = vmatmul.bf16.vlgmr.msrb.gmra.mxu2 %v11728_v47  ;;  %6034 = vmatmul.bf16.vlgmr.msra.gmra.mxu1 %v11296_v41 }
 0x604   : > { %6039 = vmatpush.bf16.msra.mxu2 %v8728_v37  ;;  %6078 = vmatpush.bf16.msrb.mxu1 %v9016_v6  ;;  %v8689_v37 = vld [vmem:[%s10622_s30 + $0xdec] sm:$0xf0]  ;;  %v9767_v6 = vld [vmem:[%s10622_s30 + $0xe20] sm:$0xf0]  ;;  %v6128_v32 = vpop.f32.mrf.mxu3 }
 0x605   : > { %6318 = vmatpush.bf16.msra.mxu0 %v8276_v40  ;;  %v8692_v20 = vor.u32 %v9759_v63, %v8689_v37  ;;  %v9773_v40 = vld [vmem:[%s10622_s30 + $0xe50] sm:$0xf0]  ;;  %v8695_v63 = vld [vmem:[%s10622_s30 + $0xde8] sm:$0xf]  ;;  %v9750_v32 = vld [vmem:[%s10622_s30 + $0xd9c] sm:$0xf] }
 0x606   : > { %6381 = vmatpush.bf16.msrb.mxu3 %v8780_v8  ;;  %v8720_v8 = vor.u32 %v9767_v6, %v8719_v61  ;;  %v8744_v35 = vor.u32 %v9773_v40, %v8743_v3  ;;  %v5788_v39 = vpop.f32.mrf.mxu2  ;;  %v9761_v37 = vld [vmem:[%s10622_s30 + $0xdf0] sm:$0xf0]  ;;  %v9199_v61 = vld [vmem:[%s10622_s30 + $0x11d8] sm:$0xf]  ;;  %v9887_v6 = vld [vmem:[%s10622_s30 + $0x11e0] sm:$0xf0] }
 0x607   : > { %v8653_v3 = vld [vmem:[%s10622_s30 + $0xda4] sm:$0xf0]  ;;  %v9822_v40 = vld [vmem:[%s10622_s30 + $0xfdc] sm:$0xf] }
 0x608   : > { %6040 = vmatpush.bf16.msra.mxu2 %v8716_v9  ;;  %6079 = vmatpush.bf16.msrb.mxu1 %v9004_v57  ;;  %v9756_v9 = vld [vmem:[%s10622_s30 + $0xdcc] sm:$0xf]  ;;  %v8707_v57 = vld [vmem:[%s10622_s30 + $0xe00] sm:$0xf]  ;;  %v5829_v17 = vpop.f32.mrf.mxu1 }
 0x609   : > { %6319 = vmatpush.bf16.msra.mxu0 %v8264_v56  ;;  %v8680_v30 = vor.u32 %v9756_v9, %v8677_v38  ;;  %v8708_v56 = vor.u32 %v9764_v48, %v8707_v57  ;;  %v8683_v9 = vld [vmem:[%s10622_s30 + $0xdd0] sm:$0xf]  ;;  %v9758_v38 = vld [vmem:[%s10622_s30 + $0xdd8] sm:$0xf0]  ;;  %v8656_v57 = vor.u32 %v9750_v32, %v8653_v3  ;;  %v8659_v32 = vld [vmem:[%s10622_s30 + $0xda0] sm:$0xf] }
 0x60a   : > { %6382 = vmatpush.bf16.msrb.mxu3 %v8768_v5  ;;  %v12315_v5 = vadd.f32 %v5788_v39, %v12257_v27  ;;  %v8929_v39 = vld [vmem:[%s10622_s30 + $0xfcc] sm:$0xf0]  ;;  %v9752_v3 = vld [vmem:[%s10622_s30 + $0xda8] sm:$0xf0] }
 0x60b   : > { %v12323_v21 = vpop.f32.mrf.mxu0  ;;  %v7003_v17 = vld [vmem:[%s10622_s30 + $0xb0] sm:$0xf] }
 0x60c   : > { %6041 = vmatpush.bf16.msra.mxu2 %v8704_v58  ;;  %6080 = vmatpush.bf16.msrb.mxu1 %v8992_v54  ;;  %v9753_v58 = vld [vmem:[%s10622_s30 + $0xdb4] sm:$0xf]  ;;  %v9212_v54 = vor.u32 %v9890_v24, %v9211_v46  ;;  %v9747_v46 = vld [vmem:[%s10622_s30 + $0xd84] sm:$0xf] }
 0x60d   : > { %6364 = vmatpush.bf16.msrb.mxu0 %v8732_v23  ;;  %v8953_v23 = vld [vmem:[%s10622_s30 + $0xffc] sm:$0xf0]  ;;  %v8668_v27 = vor.u32 %v9753_v58, %v8665_v29  ;;  %v9755_v58 = vld [vmem:[%s10622_s30 + $0xdc0] sm:$0xf0]  ;;  %v9175_v29 = vld [vmem:[%s10622_s30 + $0x11a8] sm:$0xf] }
 0x60e   : > { %6320 = vmatmul.bf16.vlgmr.msra.gmra.mxu0 %v11728_v47  ;;  %6383 = vmatpush.bf16.msrb.mxu3 %v8756_v4  ;;  %v8968_v47 = vor.u32 %v9828_v14, %v8965_v53  ;;  %v8956_v4 = vor.u32 %v9825_v42, %v8953_v23  ;;  %v9187_v14 = vld [vmem:[%s10622_s30 + $0x11c0] sm:$0xf]  ;;  %v9884_v53 = vld [vmem:[%s10622_s30 + $0x11c8] sm:$0xf0]  ;;  %v5790_v48 = vpop.f32.mrf.mxu2 }
 0x60f   : > { %v9864_v23 = vld [vmem:[%s10622_s30 + $0x112c] sm:$0xf]  ;;  %v8647_v48 = vld [vmem:[%s10622_s30 + $0xd88] sm:$0xf] }
 0x610   : > { %6042 = vmatpush.bf16.msra.mxu2 %v8692_v20  ;;  %6081 = vmatpush.bf16.msrb.mxu1 %v8980_v19  ;;  %v8696_v20 = vor.u32 %v9761_v37, %v8695_v63  ;;  %v9200_v19 = vor.u32 %v9887_v6, %v9199_v61  ;;  %v9109_v63 = vld [vmem:[%s10622_s30 + $0x1134] sm:$0xf0]  ;;  %v9338_v61 = vld [vmem:[%s10622_s30 + $0xb8] sm:$0xf0] }
 0x611   : > { %6365 = vmatpush.bf16.msrb.mxu0 %v8720_v8  ;;  %v8941_v8 = vld [vmem:[%s10622_s30 + $0xfe4] sm:$0xf0] }
 0x612   : > { %6384 = vmatpush.bf16.msrb.mxu3 %v8744_v35  ;;  %v8944_v24 = vor.u32 %v9822_v40, %v8941_v8  ;;  %v8684_v35 = vor.u32 %v9758_v38, %v8683_v9  ;;  %v9163_v40 = vld [vmem:[%s10622_s30 + $0x1190] sm:$0xf]  ;;  %v9878_v8 = vld [vmem:[%s10622_s30 + $0x1198] sm:$0xf0]  ;;  %v9861_v9 = vld [vmem:[%s10622_s30 + $0x1114] sm:$0xf] }
 0x613   : > { %v6115_v42 = vpop.f32.mrf.mxu0  ;;  %v9097_v38 = vld [vmem:[%s10622_s30 + $0x111c] sm:$0xf0] }
 0x614   : > { %6043 = vmatpush.bf16.msra.mxu2 %v8680_v30  ;;  %6082 = vmatpush.bf16.msrb.mxu1 %v8968_v47  ;;  %v8641_v30 = vld [vmem:[%s10622_s30 + $0xd8c] sm:$0xf0]  ;;  %v9188_v47 = vor.u32 %v9884_v53, %v9187_v14  ;;  %v6991_v14 = vld [vmem:[%s10622_s30 + $0x98] sm:$0xf]  ;;  %v9335_v53 = vld [vmem:[%s10622_s30 + $0xa0] sm:$0xf0] }
 0x615   : > { %6366 = vmatpush.bf16.msrb.mxu0 %v8708_v56  ;;  %6385 = vmatmul.bf16.vlgmr.msrb.gmra.mxu3 %v11889_v28  ;;  %v9819_v28 = vld [vmem:[%s10622_s30 + $0xfc4] sm:$0xf]  ;;  %v8671_v56 = vld [vmem:[%s10622_s30 + $0xdb8] sm:$0xf]  ;;  %v8644_v37 = vor.u32 %v9747_v46, %v8641_v30  ;;  %v9164_v46 = vor.u32 %v9878_v8, %v9163_v40  ;;  %v9749_v30 = vld [vmem:[%s10622_s30 + $0xd90] sm:$0xf0] }
 0x616   : > { %6429 = vmatpush.bf16.msra.mxu3 %v9212_v54  ;;  %v9881_v54 = vld [vmem:[%s10622_s30 + $0x11b0] sm:$0xf0]  ;;  %v8932_v6 = vor.u32 %v9819_v28, %v8929_v39  ;;  %v9151_v28 = vld [vmem:[%s10622_s30 + $0x1178] sm:$0xf]  ;;  %v9875_v39 = vld [vmem:[%s10622_s30 + $0x1180] sm:$0xf0] }
 0x617   : > { %v9332_v42 = vld [vmem:[%s10622_s30 + $0x88] sm:$0xf0]  ;;  %v9329_v40 = vld [vmem:[%s10622_s30 + $0x70] sm:$0xf0]  ;;  %v9863_v8 = vld [vmem:[%s10622_s30 + $0x1120] sm:$0xf0] }
 0x618   : > { %6044 = vmatpush.bf16.msra.mxu2 %v8668_v27  ;;  %6083 = vmatpush.bf16.msrb.mxu1 %v8956_v4  ;;  %v8672_v27 = vor.u32 %v9755_v58, %v8671_v56  ;;  %v9176_v4 = vor.u32 %v9881_v54, %v9175_v29  ;;  %v9858_v56 = vld [vmem:[%s10622_s30 + $0x10fc] sm:$0xf]  ;;  %v9085_v58 = vld [vmem:[%s10622_s30 + $0x1104] sm:$0xf0]  ;;  %v6979_v29 = vld [vmem:[%s10622_s30 + $0x80] sm:$0xf] }
 0x619   : > { %6367 = vmatpush.bf16.msrb.mxu0 %v8696_v20  ;;  %v9112_v20 = vor.u32 %v9864_v23, %v9109_v63  ;;  %v9115_v54 = vld [vmem:[%s10622_s30 + $0x1130] sm:$0xf]  ;;  %v9866_v23 = vld [vmem:[%s10622_s30 + $0x1138] sm:$0xf0]  ;;  %v8648_v63 = vor.u32 %v9749_v30, %v8647_v48  ;;  %v9869_v48 = vld [vmem:[%s10622_s30 + $0x1150] sm:$0xf0] }
 0x61a   : > { %6430 = vmatpush.bf16.msra.mxu3 %v9200_v19  ;;  %v7004_v19 = vor.u32 %v9338_v61, %v7003_v17  ;;  %v9088_v17 = vor.u32 %v9858_v56, %v9085_v58  ;;  %v9139_v61 = vld [vmem:[%s10622_s30 + $0x1160] sm:$0xf]  ;;  %v9852_v30 = vld [vmem:[%s10622_s30 + $0x10cc] sm:$0xf] }
 0x61b   : > { %v9091_v56 = vld [vmem:[%s10622_s30 + $0x1100] sm:$0xf]  ;;  %v9860_v58 = vld [vmem:[%s10622_s30 + $0x1108] sm:$0xf0] }
 0x61c   : > { %6045 = vmatpush.bf16.msra.mxu2 %v8656_v57  ;;  %6084 = vmatpush.bf16.msrb.mxu1 %v8944_v24  ;;  %v8660_v57 = vor.u32 %v9752_v3, %v8659_v32  ;;  %v9100_v24 = vor.u32 %v9861_v9, %v9097_v38  ;;  %v9073_v32 = vld [vmem:[%s10622_s30 + $0x10ec] sm:$0xf0]  ;;  %v6967_v3 = vld [vmem:[%s10622_s30 + $0x68] sm:$0xf] }
 0x61d   : > { %6368 = vmatpush.bf16.msrb.mxu0 %v8684_v35  ;;  %v12357_v35 = vpop.f32.mrf.mxu3 }
 0x61e   : > { %6431 = vmatpush.bf16.msra.mxu3 %v9188_v47  ;;  %v6992_v47 = vor.u32 %v9335_v53, %v6991_v14 }
 0x620   : > { %6046 = vmatpush.bf16.msra.mxu2 %v8644_v37  ;;  %6085 = vmatpush.bf16.msrb.mxu1 %v8932_v6  ;;  %v9152_v37 = vor.u32 %v9875_v39, %v9151_v28  ;;  %v9872_v6 = vld [vmem:[%s10622_s30 + $0x1168] sm:$0xf0]  ;;  %v5879_v9 = vpop.f32.mrf.mxu1  ;;  %v9061_v28 = vld [vmem:[%s10622_s30 + $0x10d4] sm:$0xf0]  ;;  %v6955_v39 = vld [vmem:[%s10622_s30 + $0x50] sm:$0xf] }
 0x621   : > { %6369 = vmatpush.bf16.msrb.mxu0 %v8672_v27  ;;  %v6980_v27 = vor.u32 %v9332_v42, %v6979_v29  ;;  %v9140_v38 = vor.u32 %v9872_v6, %v9139_v61  ;;  %v5828_v29 = vadd.f32 %v12301_v55, %v11813_v49  ;;  %v9049_v61 = vld [vmem:[%s10622_s30 + $0x10bc] sm:$0xf0]  ;;  %v6943_v6 = vld [vmem:[%s10622_s30 + $0x38] sm:$0xf]  ;;  %v9857_v49 = vld [vmem:[%s10622_s30 + $0x10f0] sm:$0xf0] }
 0x622   : > { %6432 = vmatpush.bf16.msra.mxu3 %v9176_v4  ;;  %v9116_v4 = vor.u32 %v9866_v23, %v9115_v54  ;;  %v9064_v54 = vor.u32 %v9852_v30, %v9061_v28  ;;  %v9843_v28 = vld [vmem:[%s10622_s30 + $0x1084] sm:$0xf] }
 0x623   : > { %6047 = vmatmul.bf16.vlgmr.msra.gmra.mxu2 %v11811_v18  ;;  %6086 = vmatmul.bf16.vlgmr.msrb.gmra.mxu1 %v11401_v15 }
 0x624   : > { %6091 = vmatpush.bf16.msrb.mxu2 %v9112_v20  ;;  %6130 = vmatpush.bf16.msra.mxu1 %v7004_v19  ;;  %v9855_v20 = vld [vmem:[%s10622_s30 + $0x10e4] sm:$0xf]  ;;  %v9103_v19 = vld [vmem:[%s10622_s30 + $0x1118] sm:$0xf] }
 0x625   : > { %6370 = vmatpush.bf16.msrb.mxu0 %v8660_v57  ;;  %v9076_v14 = vor.u32 %v9855_v20, %v9073_v32  ;;  %v6180_v53 = vpop.f32.mrf.mxu3  ;;  %v9127_v57 = vld [vmem:[%s10622_s30 + $0x1148] sm:$0xf] }
 0x626   : > { %6433 = vmatpush.bf16.msra.mxu3 %v9164_v46  ;;  %v6968_v46 = vor.u32 %v9329_v40, %v6967_v3  ;;  %v9128_v42 = vor.u32 %v9869_v48, %v9127_v57  ;;  %v5840_v23 = vpop.f32.mrf.mxu2  ;;  %v9067_v57 = vld [vmem:[%s10622_s30 + $0x10d0] sm:$0xf]  ;;  %v9854_v48 = vld [vmem:[%s10622_s30 + $0x10d8] sm:$0xf0] }
 0x628   : > { %6092 = vmatpush.bf16.msrb.mxu2 %v9100_v24  ;;  %6131 = vmatpush.bf16.msra.mxu1 %v6992_v47  ;;  %v9104_v24 = vor.u32 %v9863_v8, %v9103_v19  ;;  %v9326_v47 = vld [vmem:[%s10622_s30 + $0x58] sm:$0xf0]  ;;  %v5881_v20 = vpop.f32.mrf.mxu1 }
 0x629   : > { %6371 = vmatpush.bf16.msrb.mxu0 %v8648_v63  ;;  %v6956_v63 = vor.u32 %v9326_v47, %v6955_v39  ;;  %v9846_v8 = vld [vmem:[%s10622_s30 + $0x109c] sm:$0xf]  ;;  %v9068_v39 = vor.u32 %v9854_v48, %v9067_v57  ;;  %v9025_v47 = vld [vmem:[%s10622_s30 + $0x108c] sm:$0xf0]  ;;  %v7375_v20 = vld [vmem:[%s10622_s30 + $0x398] sm:$0xf] }
 0x62a   : > { %6434 = vmatpush.bf16.msra.mxu3 %v9152_v37  ;;  %v5841_v37 = vadd.f32 %v5840_v23, %v5828_v29  ;;  %v9055_v29 = vld [vmem:[%s10622_s30 + $0x10b8] sm:$0xf]  ;;  %v7387_v23 = vld [vmem:[%s10622_s30 + $0x3b0] sm:$0xf]  ;;  %v9356_v57 = vld [vmem:[%s10622_s30 + $0x148] sm:$0xf0] }
 0x62b   : > { %v12396_v32 = vpop.f32.mrf.mxu0  ;;  %v7363_v48 = vld [vmem:[%s10622_s30 + $0x380] sm:$0xf] }
 0x62c   : > { %6093 = vmatpush.bf16.msrb.mxu2 %v9088_v17  ;;  %6132 = vmatpush.bf16.msra.mxu1 %v6980_v27  ;;  %v9849_v17 = vld [vmem:[%s10622_s30 + $0x10b4] sm:$0xf]  ;;  %v9323_v27 = vld [vmem:[%s10622_s30 + $0x40] sm:$0xf0]  ;;  %v5854_v55 = vadd.f32 %v11935_v31, %v5841_v37  ;;  %v9320_v31 = vld [vmem:[%s10622_s30 + $0x28] sm:$0xf0] }
 0x62d   : > { %6416 = vmatpush.bf16.msra.mxu0 %v9116_v4  ;;  %v9079_v4 = vld [vmem:[%s10622_s30 + $0x10e8] sm:$0xf]  ;;  %v9052_v3 = vor.u32 %v9849_v17, %v9049_v61  ;;  %v6944_v40 = vor.u32 %v9323_v27, %v6943_v6  ;;  %v9043_v27 = vld [vmem:[%s10622_s30 + $0x10a0] sm:$0xf] }
 0x62e   : > { %6372 = vmatmul.bf16.vlgmr.msrb.gmra.mxu0 %v11811_v18  ;;  %6435 = vmatpush.bf16.msra.mxu3 %v9140_v38  ;;  %v9092_v18 = vor.u32 %v9860_v58, %v9091_v56  ;;  %v9080_v19 = vor.u32 %v9857_v49, %v9079_v4  ;;  %v9037_v38 = vld [vmem:[%s10622_s30 + $0x10a4] sm:$0xf0]  ;;  %v5867_v53 = vadd.f32 %v11896_v59, %v5854_v55  ;;  %v5842_v30 = vpop.f32.mrf.mxu2  ;;  %v9317_v58 = vld [vmem:[%s10622_s30 + $0x10] sm:$0xf0]  ;;  %v9848_v4 = vld [vmem:[%s10622_s30 + $0x10a8] sm:$0xf0] }
 0x62f   : > { %v6919_v56 = vld [vmem:[%s10622_s30 + $0x8] sm:$0xf]  ;;  %v7087_v49 = vld [vmem:[%s10622_s30 + $0x158] sm:$0xf]  ;;  %v9359_v55 = vld [vmem:[%s10622_s30 + $0x160] sm:$0xf0] }
 0x630   : > { %6094 = vmatpush.bf16.msrb.mxu2 %v9076_v14  ;;  %6133 = vmatpush.bf16.msra.mxu1 %v6968_v46  ;;  %v6931_v14 = vld [vmem:[%s10622_s30 + $0x20] sm:$0xf]  ;;  %v12406_v46 = vadd.f32 %v5879_v9, %v5867_v53  ;;  %v7099_v9 = vld [vmem:[%s10622_s30 + $0x170] sm:$0xf]  ;;  %v6920_v37 = vor.u32 %v9317_v58, %v6919_v56  ;;  %v9845_v53 = vld [vmem:[%s10622_s30 + $0x1090] sm:$0xf0] }
 0x631   : > { %6417 = vmatpush.bf16.msra.mxu0 %v9104_v24  ;;  %v9040_v24 = vor.u32 %v9846_v8, %v9037_v38  ;;  %v6932_v59 = vor.u32 %v9320_v31, %v6931_v14  ;;  %v9031_v14 = vld [vmem:[%s10622_s30 + $0x1088] sm:$0xf]  ;;  %v7075_v31 = vld [vmem:[%s10622_s30 + $0x140] sm:$0xf]  ;;  %v9425_v58 = vld [vmem:[%s10622_s30 + $0x370] sm:$0xf0] }
 0x632   : > { %6436 = vmatpush.bf16.msra.mxu3 %v9128_v42  ;;  %v9032_v30 = vor.u32 %v9845_v53, %v9031_v14  ;;  %v7351_v56 = vld [vmem:[%s10622_s30 + $0x368] sm:$0xf]  ;;  %v9416_v14 = vld [vmem:[%s10622_s30 + $0x328] sm:$0xf0] }
 0x633   : > { %v6167_v42 = vpop.f32.mrf.mxu0 }
 0x634   : > { %6095 = vmatpush.bf16.msrb.mxu2 %v9064_v54  ;;  %6134 = vmatpush.bf16.msra.mxu1 %v6956_v63  ;;  %v9362_v54 = vld [vmem:[%s10622_s30 + $0x178] sm:$0xf0]  ;;  %v7051_v42 = vld [vmem:[%s10622_s30 + $0x110] sm:$0xf] }
 0x635   : > { %6418 = vmatpush.bf16.msra.mxu0 %v9092_v18  ;;  %6437 = vmatmul.bf16.vlgmr.msra.gmra.mxu3 %v11972_v11  ;;  %v9851_v11 = vld [vmem:[%s10622_s30 + $0x10c0] sm:$0xf0]  ;;  %v9434_v63 = vld [vmem:[%s10622_s30 + $0x3b8] sm:$0xf0]  ;;  %v9028_v18 = vor.u32 %v9843_v28, %v9025_v47  ;;  %v7100_v61 = vor.u32 %v9362_v54, %v7099_v9  ;;  %v7076_v28 = vor.u32 %v9356_v57, %v7075_v31  ;;  %v9353_v47 = vld [vmem:[%s10622_s30 + $0x130] sm:$0xf0] }
 0x636   : > { %v9056_v17 = vor.u32 %v9851_v11, %v9055_v29  ;;  %v7388_v6 = vor.u32 %v9434_v63, %v7387_v23  ;;  %v7352_v11 = vor.u32 %v9425_v58, %v7351_v56  ;;  %v9350_v54 = vld [vmem:[%s10622_s30 + $0x118] sm:$0xf0]  ;;  %v7339_v23 = vld [vmem:[%s10622_s30 + $0x350] sm:$0xf] }
 0x637   : > { %v9422_v63 = vld [vmem:[%s10622_s30 + $0x358] sm:$0xf0]  ;;  %v7771_v56 = vld [vmem:[%s10622_s30 + $0x6b0] sm:$0xf] }
 0x638   : > { %6096 = vmatpush.bf16.msrb.mxu2 %v9052_v3  ;;  %6135 = vmatpush.bf16.msra.mxu1 %v6944_v40  ;;  %v9431_v3 = vld [vmem:[%s10622_s30 + $0x3a0] sm:$0xf0]  ;;  %v9044_v40 = vor.u32 %v9848_v4, %v9043_v27  ;;  %v12424_v38 = vpop.f32.mrf.mxu3  ;;  %v7327_v4 = vld [vmem:[%s10622_s30 + $0x338] sm:$0xf]  ;;  %v9530_v58 = vld [vmem:[%s10622_s30 + $0x6b8] sm:$0xf0] }
 0x639   : > { %6419 = vmatpush.bf16.msra.mxu0 %v9080_v19  ;;  %v7088_v19 = vor.u32 %v9359_v55, %v7087_v49  ;;  %v7376_v8 = vor.u32 %v9431_v3, %v7375_v20  ;;  %v9347_v27 = vld [vmem:[%s10622_s30 + $0x100] sm:$0xf0] }
 0x63a   : > { %v9419_v49 = vld [vmem:[%s10622_s30 + $0x340] sm:$0xf0] }
 0x63c   : > { %6097 = vmatpush.bf16.msrb.mxu2 %v9040_v24  ;;  %6136 = vmatpush.bf16.msra.mxu1 %v6932_v59  ;;  %v9428_v24 = vld [vmem:[%s10622_s30 + $0x388] sm:$0xf0] }
 0x63d   : > { %6420 = vmatpush.bf16.msra.mxu0 %v9068_v39  ;;  %v7364_v59 = vor.u32 %v9428_v24, %v7363_v48  ;;  %v7063_v39 = vld [vmem:[%s10622_s30 + $0x128] sm:$0xf] }
 0x63e   : > { %v7015_v24 = vld [vmem:[%s10622_s30 + $0xc8] sm:$0xf] }
 0x640   : > { %6098 = vmatpush.bf16.msrb.mxu2 %v9028_v18  ;;  %6137 = vmatpush.bf16.msra.mxu1 %v6920_v37  ;;  %v5931_v29 = vpop.f32.mrf.mxu1  ;;  %v6232_v9 = vpop.f32.mrf.mxu3  ;;  %v7052_v18 = vor.u32 %v9350_v54, %v7051_v42  ;;  %v7340_v37 = vor.u32 %v9422_v63, %v7339_v23  ;;  %v7471_v42 = vld [vmem:[%s10622_s30 + $0x458] sm:$0xf]  ;;  %v9455_v54 = vld [vmem:[%s10622_s30 + $0x460] sm:$0xf0] }
 0x641   : > { %6421 = vmatpush.bf16.msra.mxu0 %v9056_v17  ;;  %v7772_v9 = vor.u32 %v9530_v58, %v7771_v56  ;;  %v7759_v23 = vld [vmem:[%s10622_s30 + $0x698] sm:$0xf]  ;;  %v9527_v63 = vld [vmem:[%s10622_s30 + $0x6a0] sm:$0xf0] }
 0x643   : > { %6099 = vmatmul.bf16.vlgmr.msrb.gmra.mxu2 %v11894_v33  ;;  %6138 = vmatmul.bf16.vlgmr.msra.gmra.mxu1 %v11197_v10  ;;  %v7064_v10 = vor.u32 %v9353_v47, %v7063_v39  ;;  %v7483_v39 = vld [vmem:[%s10622_s30 + $0x470] sm:$0xf]  ;;  %v9458_v47 = vld [vmem:[%s10622_s30 + $0x478] sm:$0xf0] }
 0x644   : > { %6143 = vmatpush.bf16.msra.mxu2 %v7100_v61  ;;  %6182 = vmatpush.bf16.msrb.mxu1 %v7388_v6  ;;  %v7039_v61 = vld [vmem:[%s10622_s30 + $0xf8] sm:$0xf] }
 0x645   : > { %6422 = vmatpush.bf16.msra.mxu0 %v9044_v40  ;;  %v7328_v40 = vor.u32 %v9419_v49, %v7327_v4  ;;  %v9524_v4 = vld [vmem:[%s10622_s30 + $0x688] sm:$0xf0] }
 0x646   : > { %v5892_v17 = vpop.f32.mrf.mxu2 }
 0x647   : > { %v5893_v6 = vadd.f32 %v5892_v17, %v12406_v46  ;;  %v9344_v46 = vld [vmem:[%s10622_s30 + $0xe8] sm:$0xf0]  ;;  %v7459_v17 = vld [vmem:[%s10622_s30 + $0x440] sm:$0xf] }
 0x648   : > { %6144 = vmatpush.bf16.msra.mxu2 %v7088_v19  ;;  %6183 = vmatpush.bf16.msrb.mxu1 %v7376_v8  ;;  %v5933_v20 = vpop.f32.mrf.mxu1  ;;  %v7027_v19 = vld [vmem:[%s10622_s30 + $0xe0] sm:$0xf] }
 0x649   : > { %6423 = vmatpush.bf16.msra.mxu0 %v9032_v30  ;;  %v5906_v55 = vadd.f32 %v12014_v51, %v5893_v6  ;;  %v7315_v8 = vld [vmem:[%s10622_s30 + $0x320] sm:$0xf]  ;;  %v7028_v31 = vor.u32 %v9344_v46, %v7027_v19  ;;  %v9341_v30 = vld [vmem:[%s10622_s30 + $0xd0] sm:$0xf0]  ;;  %v9452_v6 = vld [vmem:[%s10622_s30 + $0x448] sm:$0xf0] }
 0x64a   : > { %v7316_v57 = vor.u32 %v9416_v14, %v7315_v8  ;;  %v7460_v49 = vor.u32 %v9452_v6, %v7459_v17  ;;  %v7447_v20 = vld [vmem:[%s10622_s30 + $0x428] sm:$0xf]  ;;  %v9521_v19 = vld [vmem:[%s10622_s30 + $0x670] sm:$0xf0]  ;;  %v7435_v8 = vld [vmem:[%s10622_s30 + $0x410] sm:$0xf] }
 0x64b   : > { %v12449_v3 = vpop.f32.mrf.mxu0  ;;  %v5919_v51 = vadd.f32 %v11975_v0, %v5906_v55 }
 0x64c   : > { %6145 = vmatpush.bf16.msra.mxu2 %v7076_v28  ;;  %6184 = vmatpush.bf16.msrb.mxu1 %v7364_v59  ;;  %v7303_v28 = vld [vmem:[%s10622_s30 + $0x308] sm:$0xf]  ;;  %v9413_v59 = vld [vmem:[%s10622_s30 + $0x310] sm:$0xf0] }
 0x64d   : > { %6424 = vmatmul.bf16.vlgmr.msra.gmra.mxu0 %v11894_v33  ;;  %v7040_v33 = vor.u32 %v9347_v27, %v7039_v61  ;;  %v12456_v53 = vadd.f32 %v5931_v29, %v5919_v51  ;;  %v7016_v29 = vor.u32 %v9341_v30, %v7015_v24  ;;  %v7747_v27 = vld [vmem:[%s10622_s30 + $0x680] sm:$0xf]  ;;  %v9446_v51 = vld [vmem:[%s10622_s30 + $0x418] sm:$0xf0]  ;;  %v7423_v30 = vld [vmem:[%s10622_s30 + $0x3f8] sm:$0xf] }
 0x64e   : > { %v5894_v48 = vpop.f32.mrf.mxu2  ;;  %v7748_v55 = vor.u32 %v9524_v4, %v7747_v27  ;;  %v7687_v27 = vld [vmem:[%s10622_s30 + $0x608] sm:$0xf]  ;;  %v9509_v4 = vld [vmem:[%s10622_s30 + $0x610] sm:$0xf0] }
 0x64f   : > { %v7436_v48 = vor.u32 %v9446_v51, %v7435_v8  ;;  %v9551_v8 = vld [vmem:[%s10622_s30 + $0x760] sm:$0xf0] }
 0x650   : > { %6146 = vmatpush.bf16.msra.mxu2 %v7064_v10  ;;  %6185 = vmatpush.bf16.msrb.mxu1 %v7352_v11  ;;  %v7304_v10 = vor.u32 %v9413_v59, %v7303_v28  ;;  %v7484_v11 = vor.u32 %v9458_v47, %v7483_v39  ;;  %v9443_v59 = vld [vmem:[%s10622_s30 + $0x400] sm:$0xf0]  ;;  %v7711_v39 = vld [vmem:[%s10622_s30 + $0x638] sm:$0xf] }
 0x651   : > { %v9515_v47 = vld [vmem:[%s10622_s30 + $0x640] sm:$0xf0] }
 0x652   : > { %v9623_v51 = vld [vmem:[%s10622_s30 + $0x9a0] sm:$0xf0] }
 0x653   : > { %v6219_v0 = vpop.f32.mrf.mxu0 }
 0x654   : > { %6147 = vmatpush.bf16.msra.mxu2 %v7052_v18  ;;  %6186 = vmatpush.bf16.msrb.mxu1 %v7340_v37  ;;  %v7472_v18 = vor.u32 %v9455_v54, %v7471_v42  ;;  %v7760_v37 = vor.u32 %v9527_v63, %v7759_v23  ;;  %v9440_v42 = vld [vmem:[%s10622_s30 + $0x3e8] sm:$0xf0]  ;;  %v7699_v54 = vld [vmem:[%s10622_s30 + $0x620] sm:$0xf] }
 0x658   : > { %6148 = vmatpush.bf16.msra.mxu2 %v7040_v33  ;;  %6187 = vmatpush.bf16.msrb.mxu1 %v7328_v40  ;;  %v12471_v61 = vpop.f32.mrf.mxu3  ;;  %v9449_v33 = vld [vmem:[%s10622_s30 + $0x430] sm:$0xf0]  ;;  %v7735_v40 = vld [vmem:[%s10622_s30 + $0x668] sm:$0xf] }
 0x65c   : > { %6149 = vmatpush.bf16.msra.mxu2 %v7028_v31  ;;  %6188 = vmatpush.bf16.msrb.mxu1 %v7316_v57  ;;  %v7723_v31 = vld [vmem:[%s10622_s30 + $0x650] sm:$0xf]  ;;  %v9518_v57 = vld [vmem:[%s10622_s30 + $0x658] sm:$0xf0] }
 0x65d   : > { %v7724_v24 = vor.u32 %v9518_v57, %v7723_v31 }
 0x660   : > { %6150 = vmatpush.bf16.msra.mxu2 %v7016_v29  ;;  %6189 = vmatpush.bf16.msrb.mxu1 %v7304_v10  ;;  %v5983_v46 = vpop.f32.mrf.mxu1  ;;  %v6284_v14 = vpop.f32.mrf.mxu3  ;;  %v7424_v10 = vor.u32 %v9443_v59, %v7423_v30  ;;  %v8131_v30 = vld [vmem:[%s10622_s30 + $0x980] sm:$0xf] }
 0x661   : > { %v8143_v14 = vld [vmem:[%s10622_s30 + $0x998] sm:$0xf] }
 0x662   : > { %v8144_v57 = vor.u32 %v9623_v51, %v8143_v14  ;;  %v9533_v14 = vld [vmem:[%s10622_s30 + $0x6d0] sm:$0xf0]  ;;  %v8071_v51 = vld [vmem:[%s10622_s30 + $0x908] sm:$0xf] }
 0x663   : > { %6151 = vmatmul.bf16.vlgmr.msra.gmra.mxu2 %v11199_v12  ;;  %6190 = vmatmul.bf16.vlgmr.msrb.gmra.mxu1 %v11379_v25  ;;  %v7448_v12 = vor.u32 %v9449_v33, %v7447_v20  ;;  %v7736_v25 = vor.u32 %v9521_v19, %v7735_v40  ;;  %v8155_v20 = vld [vmem:[%s10622_s30 + $0x9b0] sm:$0xf]  ;;  %v9626_v33 = vld [vmem:[%s10622_s30 + $0x9b8] sm:$0xf0]  ;;  %v7688_v19 = vor.u32 %v9509_v4, %v7687_v27  ;;  %v9611_v27 = vld [vmem:[%s10622_s30 + $0x940] sm:$0xf0] }
 0x664   : > { %6195 = vmatpush.bf16.msrb.mxu2 %v7484_v11  ;;  %6234 = vmatpush.bf16.msra.mxu1 %v7772_v9  ;;  %v7712_v11 = vor.u32 %v9515_v47, %v7711_v39  ;;  %v7411_v9 = vld [vmem:[%s10622_s30 + $0x3e0] sm:$0xf] }
 0x666   : > { %v5944_v28 = vpop.f32.mrf.mxu2 }
 0x667   : > { %v5945_v56 = vadd.f32 %v5944_v28, %v12456_v53  ;;  %v9512_v53 = vld [vmem:[%s10622_s30 + $0x628] sm:$0xf0] }
 0x668   : > { %6196 = vmatpush.bf16.msrb.mxu2 %v7472_v18  ;;  %6235 = vmatpush.bf16.msra.mxu1 %v7760_v37  ;;  %v5985_v0 = vpop.f32.mrf.mxu1  ;;  %v7700_v63 = vor.u32 %v9512_v53, %v7699_v54  ;;  %v7399_v18 = vld [vmem:[%s10622_s30 + $0x3c8] sm:$0xf]  ;;  %v9437_v37 = vld [vmem:[%s10622_s30 + $0x3d0] sm:$0xf0]  ;;  %v9620_v28 = vld [vmem:[%s10622_s30 + $0x988] sm:$0xf0] }
 0x669   : > { %v5958_v58 = vadd.f32 %v12090_v60, %v5945_v56  ;;  %v7412_v60 = vor.u32 %v9440_v42, %v7411_v9  ;;  %v7400_v40 = vor.u32 %v9437_v37, %v7399_v18  ;;  %v8132_v47 = vor.u32 %v9620_v28, %v8131_v30  ;;  %v7831_v56 = vld [vmem:[%s10622_s30 + $0x728] sm:$0xf]  ;;  %v9542_v42 = vld [vmem:[%s10622_s30 + $0x718] sm:$0xf0]  ;;  %v8107_v54 = vld [vmem:[%s10622_s30 + $0x950] sm:$0xf] }
 0x66a   : > { %v8119_v0 = vld [vmem:[%s10622_s30 + $0x968] sm:$0xf]  ;;  %v9614_v53 = vld [vmem:[%s10622_s30 + $0x958] sm:$0xf0]  ;;  %v7807_v18 = vld [vmem:[%s10622_s30 + $0x6f8] sm:$0xf] }
 0x66b   : > { %v12492_v29 = vpop.f32.mrf.mxu0  ;;  %v5971_v23 = vadd.f32 %v12050_v13, %v5958_v58  ;;  %v9545_v58 = vld [vmem:[%s10622_s30 + $0x730] sm:$0xf0]  ;;  %v9539_v37 = vld [vmem:[%s10622_s30 + $0x700] sm:$0xf0]  ;;  %v8539_v30 = vld [vmem:[%s10622_s30 + $0xcb0] sm:$0xf] }
 0x66c   : > { %6197 = vmatpush.bf16.msrb.mxu2 %v7460_v49  ;;  %6236 = vmatpush.bf16.msra.mxu1 %v7748_v55  ;;  %v7867_v49 = vld [vmem:[%s10622_s30 + $0x770] sm:$0xf]  ;;  %v9554_v55 = vld [vmem:[%s10622_s30 + $0x778] sm:$0xf0] }
 0x66d   : > { %v12501_v17 = vadd.f32 %v5983_v46, %v5971_v23  ;;  %v7868_v46 = vor.u32 %v9554_v55, %v7867_v49  ;;  %v7808_v49 = vor.u32 %v9539_v37, %v7807_v18  ;;  %v9722_v28 = vld [vmem:[%s10622_s30 + $0xcb8] sm:$0xf0]  ;;  %v9644_v18 = vld [vmem:[%s10622_s30 + $0xa48] sm:$0xf0]  ;;  %v8515_v37 = vld [vmem:[%s10622_s30 + $0xc80] sm:$0xf] }
 0x66e   : > { %v5946_v6 = vpop.f32.mrf.mxu2 }
 0x66f   : > { %v8095_v6 = vld [vmem:[%s10622_s30 + $0x938] sm:$0xf] }
 0x670   : > { %6198 = vmatpush.bf16.msrb.mxu2 %v7448_v12  ;;  %6237 = vmatpush.bf16.msra.mxu1 %v7736_v25  ;;  %v8156_v12 = vor.u32 %v9626_v33, %v8155_v20  ;;  %v7855_v25 = vld [vmem:[%s10622_s30 + $0x758] sm:$0xf]  ;;  %v8096_v55 = vor.u32 %v9611_v27, %v8095_v6  ;;  %v7795_v20 = vld [vmem:[%s10622_s30 + $0x6e0] sm:$0xf]  ;;  %v9716_v6 = vld [vmem:[%s10622_s30 + $0xc88] sm:$0xf0] }
 0x671   : > { %v7856_v31 = vor.u32 %v9551_v8, %v7855_v25  ;;  %v7783_v8 = vld [vmem:[%s10622_s30 + $0x6c8] sm:$0xf]  ;;  %v6508_v27 = vld [vmem:[%s12553_s17 + $0xe0] sm:$0xff] }
 0x673   : > { %v6271_v13 = vpop.f32.mrf.mxu0 }
 0x674   : > { %6199 = vmatpush.bf16.msrb.mxu2 %v7436_v48  ;;  %6238 = vmatpush.bf16.msra.mxu1 %v7724_v24  ;;  %v7843_v48 = vld [vmem:[%s10622_s30 + $0x740] sm:$0xf]  ;;  %v9548_v24 = vld [vmem:[%s10622_s30 + $0x748] sm:$0xf0] }
 0x675   : > { %v7844_v39 = vor.u32 %v9548_v24, %v7843_v48  ;;  %v9650_v24 = vld [vmem:[%s10622_s30 + $0xa78] sm:$0xf0] }
 0x678   : > { %6200 = vmatpush.bf16.msrb.mxu2 %v7424_v10  ;;  %6239 = vmatpush.bf16.msra.mxu1 %v7712_v11  ;;  %v12519_v59 = vpop.f32.mrf.mxu3  ;;  %v9617_v10 = vld [vmem:[%s10622_s30 + $0x970] sm:$0xf0]  ;;  %v7819_v11 = vld [vmem:[%s10622_s30 + $0x710] sm:$0xf] }
 0x67c   : > { %6201 = vmatpush.bf16.msrb.mxu2 %v7412_v60  ;;  %6240 = vmatpush.bf16.msra.mxu1 %v7700_v63  ;;  %v7820_v60 = vor.u32 %v9542_v42, %v7819_v11  ;;  %v8108_v63 = vor.u32 %v9614_v53, %v8107_v54  ;;  %v8527_v11 = vld [vmem:[%s10622_s30 + $0xc98] sm:$0xf]  ;;  %v9719_v42 = vld [vmem:[%s10622_s30 + $0xca0] sm:$0xf0]  ;;  %v6510_v54 = vld [vmem:[%s12553_s17 + $0xf0] sm:$0xff] }
 0x680   : > { %6202 = vmatpush.bf16.msrb.mxu2 %v7400_v40  ;;  %6241 = vmatpush.bf16.msra.mxu1 %v7688_v19  ;;  %v12526_v9 = vpop.f32.mrf.mxu1  ;;  %v6336_v23 = vpop.f32.mrf.mxu3  ;;  %v9536_v40 = vld [vmem:[%s10622_s30 + $0x6e8] sm:$0xf0]  ;;  %v8083_v19 = vld [vmem:[%s10622_s30 + $0x920] sm:$0xf] }
 0x681   : > { %v8528_v23 = vor.u32 %v9719_v42, %v8527_v11  ;;  %v8179_v42 = vld [vmem:[%s10622_s30 + $0x9e0] sm:$0xf] }
 0x683   : > { %6203 = vmatmul.bf16.vlgmr.msrb.gmra.mxu2 %v11386_v43  ;;  %6242 = vmatmul.bf16.vlgmr.msra.gmra.mxu1 %v11560_v7  ;;  %v7832_v43 = vor.u32 %v9545_v58, %v7831_v56  ;;  %v8120_v7 = vor.u32 %v9617_v10, %v8119_v0  ;;  %v8540_v0 = vor.u32 %v9722_v28, %v8539_v30  ;;  %v8239_v10 = vld [vmem:[%s10622_s30 + $0xa58] sm:$0xf] }
 0x684   : > { %6247 = vmatpush.bf16.msra.mxu2 %v7868_v46  ;;  %6286 = vmatpush.bf16.msrb.mxu1 %v8156_v12  ;;  %v9608_v46 = vld [vmem:[%s10622_s30 + $0x928] sm:$0xf0]  ;;  %v7796_v12 = vor.u32 %v9536_v40, %v7795_v20  ;;  %v8516_v20 = vor.u32 %v9716_v6, %v8515_v37  ;;  %v6507_v40 = vld [vmem:[%s12553_s17 + $0xd8] sm:$0xff] }
 0x685   : > { %v8084_v25 = vor.u32 %v9608_v46, %v8083_v19  ;;  %v9641_v19 = vld [vmem:[%s10622_s30 + $0xa30] sm:$0xf0]  ;;  %v8503_v46 = vld [vmem:[%s10622_s30 + $0xc68] sm:$0xf] }
 0x686   : > { %v12535_v4 = vpop.f32.mrf.mxu2  ;;  %v8167_v37 = vld [vmem:[%s10622_s30 + $0x9c8] sm:$0xf] }
 0x688   : > { %6248 = vmatpush.bf16.msra.mxu2 %v7856_v31  ;;  %6287 = vmatpush.bf16.msrb.mxu1 %v8144_v57  ;;  %v6037_v33 = vpop.f32.mrf.mxu1  ;;  %v9605_v31 = vld [vmem:[%s10622_s30 + $0x910] sm:$0xf0]  ;;  %v8251_v57 = vld [vmem:[%s10622_s30 + $0xa70] sm:$0xf] }
 0x689   : > { %v8252_v58 = vor.u32 %v9650_v24, %v8251_v57  ;;  %v8215_v33 = vld [vmem:[%s10622_s30 + $0xa28] sm:$0xf]  ;;  %v9710_v57 = vld [vmem:[%s10622_s30 + $0xc58] sm:$0xf0]  ;;  %v6504_v24 = vld [vmem:[%s12553_s17 + $0xc0] sm:$0xff] }
 0x68b   : > { %v12539_v13 = vpop.f32.mrf.mxu0 }
 0x68c   : > { %6249 = vmatpush.bf16.msra.mxu2 %v7844_v39  ;;  %6288 = vmatpush.bf16.msrb.mxu1 %v8132_v47  ;;  %v7784_v39 = vor.u32 %v9533_v14, %v7783_v8  ;;  %v8072_v47 = vor.u32 %v9605_v31, %v8071_v51  ;;  %v8203_v8 = vld [vmem:[%s10622_s30 + $0xa10] sm:$0xf]  ;;  %v6505_v14 = vld [vmem:[%s12553_s17 + $0xc8] sm:$0xff]  ;;  %v9638_v51 = vld [vmem:[%s10622_s30 + $0xa18] sm:$0xf0] }
 0x68d   : > { %v8491_v31 = vld [vmem:[%s10622_s30 + $0xc50] sm:$0xf]  ;;  %v8204_v28 = vor.u32 %v9638_v51, %v8203_v8  ;;  %v6499_v51 = vld [vmem:[%s12553_s17 + $0x98] sm:$0xff] }
 0x68e   : > { %v5998_v48 = vpop.f32.mrf.mxu2 }
 0x690   : > { %6250 = vmatpush.bf16.msra.mxu2 %v7832_v43  ;;  %6289 = vmatpush.bf16.msrb.mxu1 %v8120_v7  ;;  %v6511_v43 = vld [vmem:[%s12553_s17 + $0xf8] sm:$0xff] }
 0x691   : > { %v9647_v7 = vld [vmem:[%s10622_s30 + $0xa60] sm:$0xf0]  ;;  %6548 = vmatpush.msrb.mxu0 %v6511_v43 }
 0x692   : > { %v8240_v53 = vor.u32 %v9647_v7, %v8239_v10  ;;  %v9707_v10 = vld [vmem:[%s10622_s30 + $0xc40] sm:$0xf0] }
 0x693   : > { %v6323_v56 = vpop.f32.mrf.mxu0  ;;  %6549 = vmatpush.msrb.mxu0 %v6510_v54  ;;  %v9632_v54 = vld [vmem:[%s10622_s30 + $0x9e8] sm:$0xf0] }
 0x694   : > { %6251 = vmatpush.bf16.msra.mxu2 %v7820_v60  ;;  %6290 = vmatpush.bf16.msrb.mxu1 %v8108_v63  ;;  %v8227_v60 = vld [vmem:[%s10622_s30 + $0xa40] sm:$0xf]  ;;  %v6509_v63 = vld [vmem:[%s12553_s17 + $0xe8] sm:$0xff]  ;;  %v6503_v56 = vld [vmem:[%s12553_s17 + $0xb8] sm:$0xff]  ;;  %v8180_v6 = vor.u32 %v9632_v54, %v8179_v42 }
 0x695   : > { %6550 = vmatpush.msrb.mxu0 %v6509_v63  ;;  %v8899_v42 = vld [vmem:[%s10622_s30 + $0xf80] sm:$0xf]  ;;  %v9812_v54 = vld [vmem:[%s10622_s30 + $0xf88] sm:$0xf0] }
 0x697   : > { %6551 = vmatpush.msrb.mxu0 %v6508_v27 }
 0x698   : > { %6252 = vmatpush.bf16.msra.mxu2 %v7808_v49  ;;  %6291 = vmatpush.bf16.msrb.mxu1 %v8096_v55  ;;  %v12568_v49 = vpop.f32.mrf.mxu3  ;;  %v8228_v55 = vor.u32 %v9644_v18, %v8227_v60  ;;  %v5997_v60 = vadd.f32 %v12535_v4, %v12501_v17  ;;  %v8923_v4 = vld [vmem:[%s10622_s30 + $0xfb0] sm:$0xf] }
 0x699   : > { %6552 = vmatpush.msrb.mxu0 %v6507_v40  ;;  %v9701_v40 = vld [vmem:[%s10622_s30 + $0xc10] sm:$0xf0] }
 0x69a   : > { %v6010_v17 = vadd.f32 %v12166_v44, %v5997_v60 }
 0x69c   : > { %6253 = vmatpush.bf16.msra.mxu2 %v7796_v12  ;;  %6292 = vmatpush.bf16.msrb.mxu1 %v8084_v25  ;;  %v8216_v12 = vor.u32 %v9641_v19, %v8215_v33  ;;  %v6502_v33 = vld [vmem:[%s12553_s17 + $0xb0] sm:$0xff]  ;;  %v8635_v19 = vld [vmem:[%s10622_s30 + $0xd70] sm:$0xf]  ;;  %v6023_v44 = vadd.f32 %v12126_v34, %v6010_v17 }
 0x69e   : > { %v6036_v34 = vadd.f32 %v12526_v9, %v6023_v44  ;;  %v9728_v44 = vld [vmem:[%s10622_s30 + $0xce8] sm:$0xf0] }
 0x6a0   : > { %6254 = vmatpush.bf16.msra.mxu2 %v7784_v39  ;;  %6293 = vmatpush.bf16.msrb.mxu1 %v8072_v47  ;;  %v12581_v48 = vpop.f32.mrf.mxu1  ;;  %v6388_v30 = vpop.f32.mrf.mxu3  ;;  %v8492_v39 = vor.u32 %v9710_v57, %v8491_v31  ;;  %v8191_v47 = vld [vmem:[%s10622_s30 + $0x9f8] sm:$0xf] }
 0x6a3   : > { %6255 = vmatmul.bf16.vlgmr.msra.gmra.mxu2 %v11565_v1  ;;  %6294 = vmatmul.bf16.vlgmr.msrb.gmra.mxu1 %v11687_v36  ;;  %v9713_v1 = vld [vmem:[%s10622_s30 + $0xc70] sm:$0xf0]  ;;  %v6506_v36 = vld [vmem:[%s12553_s17 + $0xd0] sm:$0xff] }
 0x6a4   : > { %6299 = vmatpush.bf16.msrb.mxu2 %v8252_v58  ;;  %6338 = vmatpush.bf16.msra.mxu1 %v8540_v0  ;;  %v8504_v25 = vor.u32 %v9713_v1, %v8503_v46  ;;  %v9635_v58 = vld [vmem:[%s10622_s30 + $0xa00] sm:$0xf0]  ;;  %v8479_v0 = vld [vmem:[%s10622_s30 + $0xc38] sm:$0xf]  ;;  %v9746_v46 = vld [vmem:[%s10622_s30 + $0xd78] sm:$0xf0] }
 0x6a5   : > { %6553 = vmatpush.msrb.mxu0 %v6506_v36  ;;  %v8192_v7 = vor.u32 %v9635_v58, %v8191_v47  ;;  %v8480_v11 = vor.u32 %v9707_v10, %v8479_v0  ;;  %v9818_v1 = vld [vmem:[%s10622_s30 + $0xfb8] sm:$0xf0]  ;;  %v6501_v36 = vld [vmem:[%s12553_s17 + $0xa8] sm:$0xff]  ;;  %v8636_v31 = vor.u32 %v9746_v46, %v8635_v19  ;;  %v9815_v47 = vld [vmem:[%s10622_s30 + $0xfa0] sm:$0xf0] }
 0x6a6   : > { %v12589_v43 = vpop.f32.mrf.mxu2  ;;  %v8924_v57 = vor.u32 %v9818_v1, %v8923_v4  ;;  %v8611_v10 = vld [vmem:[%s10622_s30 + $0xd40] sm:$0xf]  ;;  %v9806_v19 = vld [vmem:[%s10622_s30 + $0xf58] sm:$0xf0] }
 0x6a7   : > { %6554 = vmatpush.msrb.mxu0 %v6505_v14  ;;  %v6500_v14 = vld [vmem:[%s12553_s17 + $0xa0] sm:$0xff] }
 0x6a8   : > { %6300 = vmatpush.bf16.msrb.mxu2 %v8240_v53  ;;  %6339 = vmatpush.bf16.msra.mxu1 %v8528_v23  ;;  %v8467_v53 = vld [vmem:[%s10622_s30 + $0xc20] sm:$0xf]  ;;  %v9704_v23 = vld [vmem:[%s10622_s30 + $0xc28] sm:$0xf0]  ;;  %v6089_v63 = vpop.f32.mrf.mxu1 }
 0x6a9   : > { %6555 = vmatpush.msrb.mxu0 %v6504_v24  ;;  %v8468_v27 = vor.u32 %v9704_v23, %v8467_v53  ;;  %v8623_v24 = vld [vmem:[%s10622_s30 + $0xd58] sm:$0xf]  ;;  %v6496_v53 = vld [vmem:[%s12553_s17 + $0x80] sm:$0xff]  ;;  %v6049_v23 = vadd.f32 %v12589_v43, %v6036_v34  ;;  %v8900_v63 = vor.u32 %v9812_v54, %v8899_v42  ;;  %v9725_v42 = vld [vmem:[%s10622_s30 + $0xcd0] sm:$0xf0] }
 0x6ab   : > { %6556 = vmatpush.msrb.mxu0 %v6503_v56  ;;  %v12597_v18 = vpop.f32.mrf.mxu0  ;;  %v6498_v56 = vld [vmem:[%s12553_s17 + $0x90] sm:$0xff] }
 0x6ac   : > { %6301 = vmatpush.bf16.msrb.mxu2 %v8228_v55  ;;  %6340 = vmatpush.bf16.msra.mxu1 %v8516_v20  ;;  %v9629_v55 = vld [vmem:[%s10622_s30 + $0x9d0] sm:$0xf0]  ;;  %v8455_v20 = vld [vmem:[%s10622_s30 + $0xc08] sm:$0xf] }
 0x6ad   : > { %6557 = vmatpush.msrb.mxu0 %v6502_v33  ;;  %v8456_v8 = vor.u32 %v9701_v40, %v8455_v20  ;;  %v8587_v20 = vld [vmem:[%s10622_s30 + $0xd10] sm:$0xf]  ;;  %v9734_v33 = vld [vmem:[%s10622_s30 + $0xd18] sm:$0xf0] }
 0x6ae   : > { %v8875_v40 = vld [vmem:[%s10622_s30 + $0xf50] sm:$0xf]  ;;  %v8588_v4 = vor.u32 %v9734_v33, %v8587_v20  ;;  %v9007_v20 = vld [vmem:[%s10622_s30 + $0x1058] sm:$0xf]  ;;  %v9839_v33 = vld [vmem:[%s10622_s30 + $0x1060] sm:$0xf0] }
 0x6af   : > { %6558 = vmatpush.msrb.mxu0 %v6501_v36  ;;  %v8876_v1 = vor.u32 %v9806_v19, %v8875_v40  ;;  %v8575_v36 = vld [vmem:[%s10622_s30 + $0xcf8] sm:$0xf]  ;;  %v9911_v19 = vld [vmem:[%s10622_s30 + $0x12a0] sm:$0xf0] }
 0x6b0   : > { %6302 = vmatpush.bf16.msrb.mxu2 %v8216_v12  ;;  %6341 = vmatpush.bf16.msra.mxu1 %v8504_v25  ;;  %v6050_v12 = vpop.f32.mrf.mxu2  ;;  %v8168_v25 = vor.u32 %v9629_v55, %v8167_v37  ;;  %v8599_v37 = vld [vmem:[%s10622_s30 + $0xd28] sm:$0xf]  ;;  %v9295_v40 = vld [vmem:[%s10622_s30 + $0x1298] sm:$0xf] }
 0x6b1   : > { %6559 = vmatpush.msrb.mxu0 %v6500_v14  ;;  %v9731_v12 = vld [vmem:[%s10622_s30 + $0xd00] sm:$0xf0] }
 0x6b3   : > { %v6375_v30 = vpop.f32.mrf.mxu0  ;;  %6560 = vmatpush.msrb.mxu0 %v6499_v51 }
 0x6b4   : > { %6303 = vmatpush.bf16.msrb.mxu2 %v8204_v28  ;;  %6342 = vmatpush.bf16.msra.mxu1 %v8492_v39  ;;  %v9743_v28 = vld [vmem:[%s10622_s30 + $0xd60] sm:$0xf0]  ;;  %v8911_v39 = vld [vmem:[%s10622_s30 + $0xf98] sm:$0xf]  ;;  %v8851_v30 = vld [vmem:[%s10622_s30 + $0xf20] sm:$0xf] }
 0x6b5   : > { %v8624_v58 = vor.u32 %v9743_v28, %v8623_v24  ;;  %v8912_v0 = vor.u32 %v9815_v47, %v8911_v39  ;;  %6561 = vmatpush.msrb.mxu0 %v6498_v56  ;;  %v9800_v28 = vld [vmem:[%s10622_s30 + $0xf28] sm:$0xf0]  ;;  %v12652_v39 = vld [vmem:[%s453_s14] sm:$0x7] }
 0x6b6   : > { %v6458_v56 = vperm.slane %v12652_v39, 1  ;;  %v8852_v34 = vor.u32 %v9800_v28, %v8851_v30  ;;  %v8971_v30 = vld [vmem:[%s10622_s30 + $0x1010] sm:$0xf]  ;;  %v9830_v28 = vld [vmem:[%s10622_s30 + $0x1018] sm:$0xf0] }
 0x6b8   : > { %6304 = vmatpush.bf16.msrb.mxu2 %v8192_v7  ;;  %6343 = vmatpush.bf16.msra.mxu1 %v8480_v11  ;;  %v6497_v7 = vld [vmem:[%s12553_s17 + $0x88] sm:$0xff]  ;;  %v9740_v11 = vld [vmem:[%s10622_s30 + $0xd48] sm:$0xf0]  ;;  %v12628_v9 = vpop.f32.mrf.mxu3 }
 0x6b9   : > { %6562 = vmatpush.msrb.mxu0 %v6497_v7  ;;  %v8612_v60 = vor.u32 %v9740_v11, %v8611_v10  ;;  %v8551_v11 = vld [vmem:[%s10622_s30 + $0xcc8] sm:$0xf] }
 0x6bb   : > { %6563 = vmatpush.msrb.mxu0 %v6496_v53  ;;  %v8839_v53 = vld [vmem:[%s10622_s30 + $0xf08] sm:$0xf] }
 0x6bc   : > { %6305 = vmatpush.bf16.msrb.mxu2 %v8180_v6  ;;  %6344 = vmatpush.bf16.msra.mxu1 %v8468_v27  ;;  %v9737_v6 = vld [vmem:[%s10622_s30 + $0xd30] sm:$0xf0] }
 0x6bd   : > { %v9809_v27 = vld [vmem:[%s10622_s30 + $0xf70] sm:$0xf0]  ;;  %v8600_v43 = vor.u32 %v9737_v6, %v8599_v37  ;;  %v9914_v37 = vld [vmem:[%s10622_s30 + $0x12b8] sm:$0xf0] }
 0x6c0   : > { %6306 = vmatpush.bf16.msrb.mxu2 %v8168_v25  ;;  %6345 = vmatpush.bf16.msra.mxu1 %v8456_v8  ;;  %v12640_v46 = vpop.f32.mrf.mxu1  ;;  %v8863_v25 = vld [vmem:[%s10622_s30 + $0xf38] sm:$0xf]  ;;  %v9803_v8 = vld [vmem:[%s10622_s30 + $0xf40] sm:$0xf0] }
 0x6c3   : > { %6307 = vmatmul.bf16.vlgmr.msrb.gmra.mxu2 %v11236_v22  ;;  %6346 = vmatmul.bf16.vlgmr.msra.gmra.mxu1 %v11334_v16  ;;  %v8887_v22 = vld [vmem:[%s10622_s30 + $0xf68] sm:$0xf]  ;;  %v6062_v16 = vadd.f32 %v12243_v62, %v6049_v23  ;;  %v6440_v62 = vpop.f32.mrf.mxu3  ;;  %v9019_v23 = vld [vmem:[%s10622_s30 + $0x1070] sm:$0xf] }
 0x6c4   : > { %6351 = vmatpush.bf16.msra.mxu2 %v8636_v31  ;;  %6390 = vmatpush.bf16.msrb.mxu1 %v8924_v57  ;;  %v8888_v55 = vor.u32 %v9809_v27, %v8887_v22  ;;  %v8576_v31 = vor.u32 %v9731_v12, %v8575_v36  ;;  %v8563_v57 = vld [vmem:[%s10622_s30 + $0xce0] sm:$0xf]  ;;  %v8552_v27 = vor.u32 %v9725_v42, %v8551_v11  ;;  %v9836_v12 = vld [vmem:[%s10622_s30 + $0x1048] sm:$0xf0]  ;;  %v9247_v11 = vld [vmem:[%s10622_s30 + $0x1238] sm:$0xf] }
 0x6c5   : > { %v6075_v17 = vadd.f32 %v12203_v2, %v6062_v16  ;;  %v8864_v2 = vor.u32 %v9803_v8, %v8863_v25  ;;  %v8564_v7 = vor.u32 %v9728_v44, %v8563_v57  ;;  %v8995_v36 = vld [vmem:[%s10622_s30 + $0x1040] sm:$0xf]  ;;  %v9908_v8 = vld [vmem:[%s10622_s30 + $0x1288] sm:$0xf0]  ;;  %v9271_v57 = vld [vmem:[%s10622_s30 + $0x1268] sm:$0xf] }
 0x6c6   : > { %v6100_v51 = vpop.f32.mrf.mxu2  ;;  %v9283_v25 = vld [vmem:[%s10622_s30 + $0x1280] sm:$0xf]  ;;  %v9899_v42 = vld [vmem:[%s10622_s30 + $0x1240] sm:$0xf0] }
 0x6c7   : > { %v6088_v14 = vadd.f32 %v12581_v48, %v6075_v17  ;;  %v12654_v48 = vld [vmem:[%s463_s24] sm:$0x7] }
 0x6c8   : > { %6352 = vmatpush.bf16.msra.mxu2 %v8624_v58  ;;  %6391 = vmatpush.bf16.msrb.mxu1 %v8912_v0  ;;  %v6141_v58 = vpop.f32.mrf.mxu1  ;;  %v6469_v10 = vperm.slane %v12654_v48, 1 }
 0x6c9   : > { %v6101_v24 = vadd.f32 %v6100_v51, %v6088_v14  ;;  %v8996_v14 = vor.u32 %v9836_v12, %v8995_v36  ;;  %v9284_v51 = vor.u32 %v9908_v8, %v9283_v25  ;;  %v8972_v58 = vor.u32 %v9830_v28, %v8971_v30  ;;  %v6491_v36 = vld [vmem:[%s12553_s17 + $0x58] sm:$0xff]  ;;  %v6490_v12 = vld [vmem:[%s12553_s17 + $0x50] sm:$0xff]  ;;  %v6489_v25 = vld [vmem:[%s12553_s17 + $0x48] sm:$0xff] }
 0x6ca   : > { %v12658_v0 = vpop.f32.mrf.mxu0  ;;  %v6484_v30 = vld [vmem:[%s12553_s17 + $0x20] sm:$0xff] }
 0x6cb   : > { %v6114_v47 = vadd.f32 %v12323_v21, %v6101_v24  ;;  %v9797_v21 = vld [vmem:[%s10622_s30 + $0xf10] sm:$0xf0] }
 0x6cc   : > { %6353 = vmatpush.bf16.msra.mxu2 %v8612_v60  ;;  %6392 = vmatpush.bf16.msrb.mxu1 %v8900_v63  ;;  %v9842_v60 = vld [vmem:[%s10622_s30 + $0x1078] sm:$0xf0]  ;;  %v9307_v63 = vld [vmem:[%s10622_s30 + $0x12b0] sm:$0xf]  ;;  %v8840_v16 = vor.u32 %v9797_v21, %v8839_v53  ;;  %v9905_v24 = vld [vmem:[%s10622_s30 + $0x1270] sm:$0xf0]  ;;  %v9248_v53 = vor.u32 %v9899_v42, %v9247_v11 }
 0x6cd   : > { %v6127_v54 = vadd.f32 %v12280_v45, %v6114_v47  ;;  %v9308_v45 = vor.u32 %v9914_v37, %v9307_v63  ;;  %v9902_v47 = vld [vmem:[%s10622_s30 + $0x1258] sm:$0xf0]  ;;  %v8947_v21 = vld [vmem:[%s10622_s30 + $0xfe0] sm:$0xf]  ;;  %v9896_v37 = vld [vmem:[%s10622_s30 + $0x1228] sm:$0xf0] }
 0x6ce   : > { %v6102_v22 = vpop.f32.mrf.mxu2  ;;  %v9235_v63 = vld [vmem:[%s10622_s30 + $0x1220] sm:$0xf] }
 0x6cf   : > { %v6464_v6 = vmul.f32 %v6458_v56, %v6127_v54 }
 0x6d0   : > { %6354 = vmatpush.bf16.msra.mxu2 %v8600_v43  ;;  %6393 = vmatpush.bf16.msrb.mxu1 %v8888_v55  ;;  %v9020_v55 = vor.u32 %v9842_v60, %v9019_v23  ;;  %v9824_v60 = vld [vmem:[%s10622_s30 + $0xfe8] sm:$0xf0] }
 0x6d1   : > { %v6475_v43 = vadd.f32 %v6469_v10, %v6464_v6 }
 0x6d2   : > { %v6427_v62 = vpop.f32.mrf.mxu0 }
 0x6d3   : > { %v6478_v17 = vmax.f32 %v6475_v43, 0.0  ;;  %v9236_v43 = vor.u32 %v9896_v37, %v9235_v63  ;;  %v6495_v62 = vld [vmem:[%s12553_s17 + $0x78] sm:$0xff] }
 0x6d4   : > { %6355 = vmatpush.bf16.msra.mxu2 %v8588_v4  ;;  %6394 = vmatpush.bf16.msrb.mxu1 %v8876_v1  ;;  %v9008_v4 = vor.u32 %v9839_v33, %v9007_v20  ;;  %v9296_v1 = vor.u32 %v9911_v19, %v9295_v40  ;;  %v9223_v20 = vld [vmem:[%s10622_s30 + $0x1208] sm:$0xf]  ;;  %v9893_v33 = vld [vmem:[%s10622_s30 + $0x1210] sm:$0xf0] }
 0x6d5   : > { %6564 = vmatmul.f32.vlgmr.msrb.gmra.mxu0 %v6478_v17  ;;  %v9224_v19 = vor.u32 %v9893_v33, %v9223_v20  ;;  %v6520_v20 = vld [vmem:[%s12553_s17 + $0x140] sm:$0xff] }
 0x6d8   : > { %6356 = vmatpush.bf16.msra.mxu2 %v8576_v31  ;;  %6395 = vmatpush.bf16.msrb.mxu1 %v8864_v2  ;;  %v8983_v31 = vld [vmem:[%s10622_s30 + $0x1028] sm:$0xf]  ;;  %v9833_v2 = vld [vmem:[%s10622_s30 + $0x1030] sm:$0xf0] }
 0x6d9   : > { %v8984_v44 = vor.u32 %v9833_v2, %v8983_v31  ;;  %v5802_v31 = vadd.f32 %v11852_v52, %v12315_v5  ;;  %v6457_v2 = vperm.slane %v12652_v39, 0  ;;  %v6482_v52 = vld [vmem:[%s12553_s17 + $0x10] sm:$0xff] }
 0x6db   : > { %v6463_v28 = vmul.f32 %v6457_v2, %v5802_v31 }
 0x6dc   : > { %6357 = vmatpush.bf16.msra.mxu2 %v8564_v7  ;;  %6396 = vmatpush.bf16.msrb.mxu1 %v8852_v34  ;;  %v8959_v7 = vld [vmem:[%s10622_s30 + $0xff8] sm:$0xf]  ;;  %v9827_v34 = vld [vmem:[%s10622_s30 + $0x1000] sm:$0xf0] }
 0x6dd   : > { %v8960_v54 = vor.u32 %v9827_v34, %v8959_v7  ;;  %v6481_v7 = vld [vmem:[%s12553_s17 + $0x8] sm:$0xff]  ;;  %v6480_v34 = vld [vmem:[%s12553_s17] sm:$0xff] }
 0x6e0   : > { %6358 = vmatpush.bf16.msra.mxu2 %v8552_v27  ;;  %6397 = vmatpush.bf16.msrb.mxu1 %v8840_v16  ;;  %v6191_v56 = vpop.f32.mrf.mxu1  ;;  %v8948_v16 = vor.u32 %v9824_v60, %v8947_v21 }
 0x6e3   : > { %6359 = vmatmul.bf16.vlgmr.msra.gmra.mxu2 %v11296_v41  ;;  %6398 = vmatmul.bf16.vlgmr.msrb.gmra.mxu1 %v11420_v26  ;;  %v9272_v41 = vor.u32 %v9905_v24, %v9271_v57  ;;  %v9259_v26 = vld [vmem:[%s10622_s30 + $0x1250] sm:$0xf]  ;;  %v6485_v24 = vld [vmem:[%s12553_s17 + $0x28] sm:$0xff] }
 0x6e4   : > { %6403 = vmatpush.bf16.msrb.mxu2 %v9020_v55  ;;  %6442 = vmatpush.bf16.msra.mxu1 %v9308_v45  ;;  %v9260_v10 = vor.u32 %v9902_v47, %v9259_v26  ;;  %v8935_v55 = vld [vmem:[%s10622_s30 + $0xfc8] sm:$0xf]  ;;  %v9821_v45 = vld [vmem:[%s10622_s30 + $0xfd0] sm:$0xf0]  ;;  %v6468_v26 = vperm.slane %v12654_v48, 0  ;;  %s6787_s30 = sshll.u32 %s10619_s16, 1 }
 0x6e5   : > { %v6483_v47 = vld [vmem:[%s12553_s17 + $0x18] sm:$0xff]  ;;  %s523_s22 = scalar_lea.vmem [#allocation14], %s6787_s30 }
 0x6e6   : > { %v6152_v23 = vpop.f32.mrf.mxu2  ;;  %s6602_s19 = sshll.u32 %s523_s22, 4  ;;  %s6603_s19 = int_to_ptr.vmem [resolvable:$true] %s6602_s19 }
 0x6e7   : > { %v6153_v6 = vadd.f32 %v6152_v23, %v12640_v46  ;;  %v8936_v46 = vor.u32 %v9821_v45, %v8935_v55  ;;  %v6524_v55 = vld [vmem:[%s12553_s17 + $0x160] sm:$0xff]  ;;  %v6521_v45 = vld [vmem:[%s12553_s17 + $0x148] sm:$0xff] }
 0x6e8   : > { %6404 = vmatpush.bf16.msrb.mxu2 %v9008_v4  ;;  %6443 = vmatpush.bf16.msra.mxu1 %v9296_v1  ;;  %v6193_v22 = vpop.f32.mrf.mxu1  ;;  %v6494_v4 = vld [vmem:[%s12553_s17 + $0x70] sm:$0xff]  ;;  %v6492_v1 = vld [vmem:[%s12553_s17 + $0x60] sm:$0xff] }
 0x6e9   : > { %v6166_v27 = vadd.f32 %v12396_v32, %v6153_v6  ;;  %v6527_v22 = vld [vmem:[%s12553_s17 + $0x178] sm:$0xff] }
 0x6ea   : > { %6568 = vmatpush.msrb.mxu3 %v6527_v22 }
 0x6eb   : > { %v6179_v40 = vadd.f32 %v12357_v35, %v6166_v27  ;;  %v6493_v35 = vld [vmem:[%s12553_s17 + $0x68] sm:$0xff]  ;;  %v6526_v27 = vld [vmem:[%s12553_s17 + $0x170] sm:$0xff] }
 0x6ec   : > { %6405 = vmatpush.bf16.msrb.mxu2 %v8996_v14  ;;  %6444 = vmatpush.bf16.msra.mxu1 %v9284_v51  ;;  %v6488_v14 = vld [vmem:[%s12553_s17 + $0x40] sm:$0xff]  ;;  %v6487_v51 = vld [vmem:[%s12553_s17 + $0x38] sm:$0xff] }
 0x6ed   : > { %v6192_v32 = vadd.f32 %v6191_v56, %v6179_v40  ;;  %6569 = vmatpush.msrb.mxu3 %v6526_v27 }
 0x6ee   : > { %v6154_v17 = vpop.f32.mrf.mxu2 }
 0x6ef   : > { %v6518_v17 = vld [vmem:[%s12553_s17 + $0x130] sm:$0xff] }
 0x6f0   : > { %6406 = vmatpush.bf16.msrb.mxu2 %v8984_v44  ;;  %6445 = vmatpush.bf16.msra.mxu1 %v9272_v41 }
 0x6f4   : > { %6407 = vmatpush.bf16.msrb.mxu2 %v8972_v58  ;;  %6446 = vmatpush.bf16.msra.mxu1 %v9260_v10  ;;  %v6474_v10 = vadd.f32 %v6468_v26, %v6463_v28  ;;  %v6470_v26 = vperm.slane %v12654_v48, 2 }
 0x6f8   : > { %6408 = vmatpush.bf16.msrb.mxu2 %v8960_v54  ;;  %6447 = vmatpush.bf16.msra.mxu1 %v9248_v53 }
 0x6fc   : > { %6409 = vmatpush.bf16.msrb.mxu2 %v8948_v16  ;;  %6448 = vmatpush.bf16.msra.mxu1 %v9236_v43  ;;  %v6525_v16 = vld [vmem:[%s12553_s17 + $0x168] sm:$0xff] }
 0x6fd   : > { %6570 = vmatpush.msrb.mxu3 %v6525_v16 }
 0x6ff   : > { %6571 = vmatpush.msrb.mxu3 %v6524_v55 }
 0x700   : > { %6410 = vmatpush.bf16.msrb.mxu2 %v8936_v46  ;;  %6449 = vmatpush.bf16.msra.mxu1 %v9224_v19  ;;  %v6243_v8 = vpop.f32.mrf.mxu1 }
 0x703   : > { %6411 = vmatmul.bf16.vlgmr.msrb.gmra.mxu2 %v11401_v15  ;;  %6450 = vmatmul.bf16.vlgmr.msra.gmra.mxu1 %v11508_v50  ;;  %v6486_v15 = vld [vmem:[%s12553_s17 + $0x30] sm:$0xff] }
 0x704   : > { %6528 = vmatpush.msra.mxu2 %v6495_v62 }
 0x706   : > { %6529 = vmatpush.msra.mxu2 %v6494_v4  ;;  %v6204_v50 = vpop.f32.mrf.mxu2  ;;  %v6517_v4 = vld [vmem:[%s12553_s17 + $0x128] sm:$0xff] }
 0x707   : > { %v6205_v57 = vadd.f32 %v6204_v50, %v6192_v32  ;;  %v6519_v32 = vld [vmem:[%s12553_s17 + $0x138] sm:$0xff] }
 0x708   : > { %6530 = vmatpush.msra.mxu2 %v6493_v35  ;;  %v6245_v44 = vpop.f32.mrf.mxu1 }
 0x709   : > { %v6218_v41 = vadd.f32 %v12449_v3, %v6205_v57  ;;  %v6477_v3 = vmax.f32 %v6474_v10, 0.0 }
 0x70a   : > { %6531 = vmatpush.msra.mxu2 %v6492_v1  ;;  %v6516_v1 = vld [vmem:[%s12553_s17 + $0x120] sm:$0xff] }
 0x70b   : > { %v6231_v56 = vadd.f32 %v12424_v38, %v6218_v41 }
 0x70c   : > { %6532 = vmatpush.msra.mxu2 %v6491_v36 }
 0x70d   : > { %v6244_v5 = vadd.f32 %v6243_v8, %v6231_v56  ;;  %v6513_v8 = vld [vmem:[%s12553_s17 + $0x108] sm:$0xff] }
 0x70e   : > { %6533 = vmatpush.msra.mxu2 %v6490_v12  ;;  %v6206_v58 = vpop.f32.mrf.mxu2  ;;  %v6515_v12 = vld [vmem:[%s12553_s17 + $0x118] sm:$0xff] }
 0x710   : > { %6534 = vmatpush.msra.mxu2 %v6489_v25  ;;  %v6514_v25 = vld [vmem:[%s12553_s17 + $0x110] sm:$0xff] }
 0x712   : > { %6535 = vmatpush.msra.mxu2 %v6488_v14 }
 0x714   : > { %6536 = vmatpush.msra.mxu2 %v6487_v51  ;;  %v6512_v51 = vld [vmem:[%s12553_s17 + $0x100] sm:$0xff] }
 0x716   : > { %6537 = vmatpush.msra.mxu2 %v6486_v15 }
 0x718   : > { %6538 = vmatpush.msra.mxu2 %v6485_v24 }
 0x71a   : > { %6539 = vmatpush.msra.mxu2 %v6484_v30  ;;  %v6459_v30 = vperm.slane %v12652_v39, 2 }
 0x71c   : > { %6540 = vmatpush.msra.mxu2 %v6483_v47 }
 0x71e   : > { %6541 = vmatpush.msra.mxu2 %v6482_v52 }
 0x720   : > { %6542 = vmatpush.msra.mxu2 %v6481_v7  ;;  %v6295_v11 = vpop.f32.mrf.mxu1 }
 0x722   : > { %6543 = vmatpush.msra.mxu2 %v6480_v34 }
 0x723   : > { %6544 = vmatmul.f32.vlgmr.msra.gmra.mxu2 %v6477_v3 }
 0x726   : > { %v6256_v42 = vpop.f32.mrf.mxu2 }
 0x727   : > { %v6257_v38 = vadd.f32 %v6256_v42, %v6244_v5 }
 0x728   : > { %v6297_v54 = vpop.f32.mrf.mxu1 }
 0x729   : > { %v6270_v53 = vadd.f32 %v12492_v29, %v6257_v38  ;;  %v6523_v29 = vld [vmem:[%s12553_s17 + $0x158] sm:$0xff] }
 0x72a   : > { %6572 = vmatpush.msrb.mxu3 %v6523_v29 }
 0x72b   : > { %v6283_v21 = vadd.f32 %v12471_v61, %v6270_v53  ;;  %v6522_v61 = vld [vmem:[%s12553_s17 + $0x150] sm:$0xff] }
 0x72c   : > { %6573 = vmatpush.msrb.mxu3 %v6522_v61 }
 0x72d   : > { %v6296_v23 = vadd.f32 %v6295_v11, %v6283_v21 }
 0x72e   : > { %v6258_v60 = vpop.f32.mrf.mxu2  ;;  %6574 = vmatpush.msrb.mxu3 %v6521_v45 }
 0x730   : > { %6575 = vmatpush.msrb.mxu3 %v6520_v20 }
 0x732   : > { %6576 = vmatpush.msrb.mxu3 %v6519_v32 }
 0x734   : > { %6577 = vmatpush.msrb.mxu3 %v6518_v17 }
 0x736   : > { %6578 = vmatpush.msrb.mxu3 %v6517_v4 }
 0x738   : > { %6579 = vmatpush.msrb.mxu3 %v6516_v1 }
 0x73a   : > { %6580 = vmatpush.msrb.mxu3 %v6515_v12 }
 0x73c   : > { %6581 = vmatpush.msrb.mxu3 %v6514_v25 }
 0x73e   : > { %6582 = vmatpush.msrb.mxu3 %v6513_v8 }
 0x740   : > { %v6347_v63 = vpop.f32.mrf.mxu1  ;;  %6583 = vmatpush.msrb.mxu3 %v6512_v51 }
 0x746   : > { %v6308_v37 = vpop.f32.mrf.mxu2 }
 0x747   : > { %v6309_v46 = vadd.f32 %v6308_v37, %v6296_v23 }
 0x748   : > { %v6349_v6 = vpop.f32.mrf.mxu1 }
 0x749   : > { %v6322_v62 = vadd.f32 %v12539_v13, %v6309_v46 }
 0x74b   : > { %v6335_v36 = vadd.f32 %v12519_v59, %v6322_v62 }
 0x74d   : > { %v6348_v14 = vadd.f32 %v6347_v63, %v6335_v36 }
 0x74e   : > { %v6310_v43 = vpop.f32.mrf.mxu2 }
 0x760   : > { %v6399_v33 = vpop.f32.mrf.mxu1 }
 0x766   : > { %v6360_v40 = vpop.f32.mrf.mxu2 }
 0x767   : > { %v6361_v15 = vadd.f32 %v6360_v40, %v6348_v14 }
 0x768   : > { %v6401_v19 = vpop.f32.mrf.mxu1 }
 0x769   : > { %v6374_v13 = vadd.f32 %v12597_v18, %v6361_v15 }
 0x76b   : > { %v6387_v31 = vadd.f32 %v12568_v49, %v6374_v13 }
 0x76d   : > { %v6400_v2 = vadd.f32 %v6399_v33, %v6387_v31 }
 0x76e   : > { %v6362_v35 = vpop.f32.mrf.mxu2 }
 0x780   : > { %v6451_v50 = vpop.f32.mrf.mxu1 }
 0x786   : > { %v6412_v59 = vpop.f32.mrf.mxu2 }
 0x787   : > { %v6413_v57 = vadd.f32 %v6412_v59, %v6400_v2 }
 0x788   : > { %v6453_v24 = vpop.f32.mrf.mxu1 }
 0x789   : > { %v6426_v44 = vadd.f32 %v12658_v0, %v6413_v57 }
 0x78b   : > { %v6439_v41 = vadd.f32 %v12628_v9, %v6426_v44  ;;  %v6565_v9 = vpop.f32.mrf.mxu0 }
 0x78d   : > { %v6452_v28 = vadd.f32 %v6451_v50, %v6439_v41 }
 0x78e   : > { %v6414_v47 = vpop.f32.mrf.mxu2 }
 0x78f   : > { %v6465_v18 = vmul.f32 %v6459_v30, %v6452_v28 }
 0x791   : > { %v6476_v56 = vadd.f32 %v6470_v26, %v6465_v18 }
 0x793   : > { %v6479_v52 = vmax.f32 %v6476_v56, 0.0 }
 0x795   : > { %6584 = vmatmul.f32.vlgmr.msrb.gmra.mxu3 %v6479_v52 }
 0x7a6   : > { %v6545_v49 = vpop.f32.mrf.mxu2 }
 0x7a7   : > { %v6566_v39 = vadd.f32 %v6565_v9, %v6545_v49 }
 0x818   : > { %v6585_v48 = vpop.f32.mrf.mxu3 }
 0x819   : > { %v6586_v0 = vadd.f32 %v6585_v48, %v6566_v39 }
 0x81b   : > { %6588 = vst [vmem:[%s523_s22] sm:$0x3] %v6586_v0 }
 0x81c   : > { %10299 = shalt.err (!%p10296_p8)
}
 0x81d   : > { %9946 = dma.vmem_to_hbm [thread:$0]  (%p10464_p11), %s6603_s19, 32, %s6605_s11, %s6590_s25  }
 0x81e PF: > { %s12843_s16 = sld [smem:[#allocation20_spill]]  ;;  %p12845_p3 = scmp.ge.s32.totalorder %s10350_s12, 2 }
 0x820   : > { %p9975_p4 = pnand %p12845_p3, %p10468_p12 }
 0x822   : > { %p9976_p2 = pneg %p9975_p4 }
 0x824   : > { %s6616_s14 = sand.u32 1, %s12843_s16  }
 0x825   : > { %s6617_s24 = scalar_lea.sflag [#allocation4], %s6616_s14 }
 0x826   : > { %10333 = dma.done.wait (%p9976_p2), %s6617_s24, 32  }
 0x827   : > { %10335 = vsyncadd (%p9976_p2), %s6617_s24, 4294967264  ;;  %s12846_s12 = sld [smem:[#allocation22_spill]]  ;;  %s12849_s30 = smov %s10342_s10 }
 0x828   : > { %s12847_s27 = sld [smem:[#allocation21_spill]] }
 0x829   : > { %s12848_s11 = sld [smem:[#allocation23_spill]] }
 0x82d   : > { %p22_p5 = scmp.ge.s32.totalorder %s12846_s12, 4  }
 0x82e   : > { %s12850_s10 = smov %s12847_s27 }
 0x82f   :  { %24 = sbr.rel (!%p22_p5) target bundleno = 11 (0xb), region = 150 }
 0x834   :  { %6623 = vsyncpa [#allocation3], 1 }
 0x835   :  { %6625 = vsyncpa [#allocation3 + $0x1], 1 }
 0x836   :  { %6626 = vsyncpa [#allocation6], 1 }
 0x837   :  { %6627 = vsyncpa [#allocation9], 1 }
 0x838   :  { %6628 = vsyncpa [#allocation4], 1 }
 0x839   :  { %6630 = vsyncpa [#allocation4 + $0x1], 1 }

</bundles_post_ra>
